<compile_context>
chip_gen: v7x
topology: tpu7x:2x2x1
jax: 0.10.0
libtpu: 0.0.40
codegen_flags: <defaults>
</compile_context>

<pallas_src>
import functools
import math

import jax
import jax.numpy as jnp
import numpy as np
from jax.experimental import pallas as pl
from jax.experimental.pallas import tpu as pltpu


# ------------------------------ small helpers --------------------------------

def _layernorm(v, gamma, beta, eps):
    u = jnp.mean(v, axis=-1, keepdims=True)
    s = jnp.mean(jnp.square(v - u), axis=-1, keepdims=True)
    return gamma * ((v - u) * jax.lax.rsqrt(s + eps)) + beta


def _device_kind():
    try:
        return jax.devices()[0].device_kind.lower()
    except Exception:
        return ""


def _vmem_budget_bytes():
    """Per-core VMEM capacity; generation-aware fallback (64 MiB only on v7x)."""
    try:
        info = pltpu.get_tpu_info()
        cap = getattr(info, "vmem_capacity_bytes", None)
        if cap:
            return int(cap)
    except Exception:
        pass
    kind = _device_kind()
    if "v7" in kind:
        return 64 * 1024 * 1024
    return 128 * 1024 * 1024           # v5e / v6e / unknown 128-MiB parts


def _bf16_eup_ok():
    kind = _device_kind()
    return ("v6" in kind) or ("v7" in kind)


@functools.lru_cache(maxsize=None)
def _buffered_one_ok():
    """Probe pipeline_mode=pl.Buffered(1) support (single-buffered resident
    weights).  Falls back to default double-buffering if unsupported."""
    try:
        def k(a_ref, o_ref):
            o_ref[...] = a_ref[...]
        f = pl.pallas_call(
            k,
            out_shape=jax.ShapeDtypeStruct((16, 128), jnp.float32),
            grid=(2,),
            in_specs=[pl.BlockSpec((8, 128), lambda i: (0, 0),
                                   pipeline_mode=pl.Buffered(1))],
            out_specs=pl.BlockSpec((8, 128), lambda i: (i, 0)))
        jax.block_until_ready(f(jnp.zeros((8, 128), jnp.float32)))
        return True
    except Exception:
        return False


def _pick_mlp_chunk(dff):
    if dff <= 1024:
        return dff
    for ch in (512, 1024, 256, 128):
        if dff % ch == 0:
            return ch
    return dff


def _per_batch_bytes(lp, d, ch):
    # x + out blocks (f32, double-buffered), qkv / ctx / ln_2 staging,
    # per-head attention scores and one MLP hidden chunk (rough upper bound).
    return lp * (32 * d + 12 * lp + 12 * ch)


def _fixed_bytes(d, lp, ch, single_buf_w):
    wb = 1 if single_buf_w else 2
    return (wb * 2 * (3 * d * d + d * d)      # resident bf16 attention weights
            + 8 * d * ch                      # streamed MLP chunk, double-buffered
            + 4 * lp * lp                     # additive mask
            + (1 << 20))


def _pick_batch_block(n, lp, d, ch, vmem_budget, single_buf_w):
    fixed = _fixed_bytes(d, lp, ch, single_buf_w)
    per_b = _per_batch_bytes(lp, d, ch)
    avail = max(int(vmem_budget * 0.75) - fixed, per_b)
    cap = int(min(n, max(avail // per_b, 1), 8))
    if n >= 2:                                # keep >= 2 grid steps (v7x 2 TCs)
        cap = min(cap, max(n // 2, 1))
    nb = 1
    for dd in range(1, cap + 1):
        if n % dd == 0:
            nb = dd
    return nb


# --------------------------------- kernel ------------------------------------

def _rab_kernel(n_head, eps, apply_mask, bf16_eup,
                x_ref, wqkv_ref, bqkv_ref, wo_ref, bo_ref,
                g1_ref, be1_ref, g2_ref, be2_ref, mask_ref,
                w1_ref, b1_ref, w2_ref, b2_ref,
                o_ref, xn2_ref):
    nb, Lp, D = x_ref.shape
    M = nb * Lp
    H = n_head
    hd = D // H
    c = pl.program_id(1)

    # -- grid step (b, 0): ln_1 -> fused QKV -> per-head attention -> out-proj
    # -- -> residual; ln_2(x1) is staged in VMEM for all MLP chunk steps.
    @pl.when(c == 0)
    def _attention_phase():
        x = x_ref[...].reshape(M, D)
        xn = _layernorm(x, g1_ref[...], be1_ref[...], eps).astype(jnp.bfloat16)
        # single fused QKV matmul; q already scaled by 1/sqrt(hd) (weight fold)
        qkv = (jnp.dot(xn, wqkv_ref[...], preferred_element_type=jnp.float32)
               + bqkv_ref[...]).astype(jnp.bfloat16)

        ctx_parts = []
        for h in range(H):                        # static unroll over heads
            qh = qkv[:, h * hd:(h + 1) * hd].reshape(nb, Lp, hd)
            kh = qkv[:, D + h * hd:D + (h + 1) * hd].reshape(nb, Lp, hd)
            vh = qkv[:, 2 * D + h * hd:2 * D + (h + 1) * hd].reshape(nb, Lp, hd)
            s = jnp.einsum('bqd,bkd->bqk', qh, kh,
                           preferred_element_type=jnp.float32)
            if apply_mask:
                s = s + mask_ref[...]             # user mask + padded-key mask
            z = s - jnp.max(s, axis=-1, keepdims=True)
            if bf16_eup:                          # bf16 EUP on v6e / v7x
                z = z.astype(jnp.bfloat16)
            p = jnp.exp(z)
            denom = jnp.sum(p.astype(jnp.float32), axis=-1, keepdims=True)
            ctx = jnp.einsum('bqk,bkd->bqd', p.astype(jnp.bfloat16), vh,
                             preferred_element_type=jnp.float32)
            # normalize the (small) context instead of the (Lp x Lp) probs
            ctx = ctx * pl.reciprocal(denom, approx=True)
            ctx_parts.append(ctx.reshape(M, hd).astype(jnp.bfloat16))

        ctx_all = jnp.concatenate(ctx_parts, axis=-1)         # (M, D) bf16
        attn_out = (jnp.dot(ctx_all, wo_ref[...],
                            preferred_element_type=jnp.float32) + bo_ref[...])
        x1 = x + attn_out
        # output starts as residual + c_proj bias; MLP chunks accumulate below
        o_ref[...] = (x1 + b2_ref[...]).reshape(nb, Lp, D)
        xn2_ref[...] = _layernorm(x1, g2_ref[...], be2_ref[...],
                                  eps).astype(jnp.bfloat16)

    # -- every grid step: one Dff chunk of c_fc -> QuickGELU -> c_proj, ------
    # -- accumulated into the resident output block. --------------------------
    h1 = (jnp.dot(xn2_ref[...], w1_ref[...],
                  preferred_element_type=jnp.float32) + b1_ref[...])
    if bf16_eup:
        gate = jax.nn.sigmoid((1.702 * h1).astype(jnp.bfloat16)).astype(jnp.float32)
    else:
        gate = jax.nn.sigmoid(1.702 * h1)
    h1 = (h1 * gate).astype(jnp.bfloat16)
    o_ref[...] += jnp.dot(h1, w2_ref[...],
                          preferred_element_type=jnp.float32).reshape(nb, Lp, D)


# ----------------------------- parameter prep --------------------------------

def prepare_params(params, n_head):
    """Fuse wq/wk/wv, fold the 1/sqrt(hd) scale into wq/bq, and pre-cast the
    MXU weights to bf16.  Call once; the result can be reused across calls.
    Linear layers use the  y = x @ W + b  convention (W already transposed from
    PyTorch's (out, in) layout)."""
    if "wqkv" in params:
        return params
    D = params["wq"].shape[0]
    scale = 1.0 / math.sqrt(D // n_head)
    bf16 = lambda a: jnp.asarray(a, jnp.bfloat16)
    row = lambda a: jnp.asarray(a, jnp.float32).reshape(1, -1)
    wqkv = jnp.concatenate(
        [jnp.asarray(params["wq"], jnp.float32) * scale,
         jnp.asarray(params["wk"], jnp.float32),
         jnp.asarray(params["wv"], jnp.float32)], axis=1)
    bqkv = jnp.concatenate(
        [jnp.asarray(params["bq"], jnp.float32) * scale,
         jnp.asarray(params["bk"], jnp.float32),
         jnp.asarray(params["bv"], jnp.float32)], axis=0)
    return {
        "wqkv": bf16(wqkv), "bqkv": row(bqkv),
        "wo": bf16(params["wo"]), "bo": row(params["bo"]),
        "g1": row(params["g1"]), "be1": row(params["be1"]),
        "g2": row(params["g2"]), "be2": row(params["be2"]),
        "w1": bf16(params["w1"]), "b1": row(params["b1"]),
        "w2": bf16(params["w2"]), "b2": row(params["b2"]),
    }


# --------------------------------- wrappers -----------------------------------

def residual_attention_block_nld(x_nld, params, n_head, *, attn_mask=None,
                                 batch_block=None, mlp_chunk=None, eps=1e-12):
    """Batch-major entry point: x_nld is (N, L, D) float32."""
    params = prepare_params(params, n_head)
    N, L, D = x_nld.shape
    Dff = params["w1"].shape[1]
    assert D % n_head == 0

    Lp = ((L + 127) // 128) * 128                  # lane-dense softmax length
    ch = mlp_chunk if mlp_chunk is not None else _pick_mlp_chunk(Dff)
    assert Dff % ch == 0 and (ch % 128 == 0 or ch == Dff)

    buffered = _buffered_one_ok()
    vmem_budget = _vmem_budget_bytes()
    nb = batch_block if batch_block is not None else _pick_batch_block(
        N, Lp, D, ch, vmem_budget, buffered)
    assert N % nb == 0, "batch_block must divide the batch size"

    x = jnp.asarray(x_nld, jnp.float32)
    if Lp != L:
        x = jnp.pad(x, ((0, 0), (0, Lp - L), (0, 0)))

    apply_mask = (attn_mask is not None) or (Lp != L)
    mask = jnp.zeros((Lp, Lp), jnp.float32)
    if attn_mask is not None:
        mask = mask.at[:L, :L].set(jnp.asarray(attn_mask, jnp.float32))
    if Lp != L:
        mask = mask.at[:, L:].set(-1e30)           # padded keys never attended

    def const(shape):
        imap = lambda b, c: (0,) * len(shape)
        if buffered:
            return pl.BlockSpec(shape, imap, pipeline_mode=pl.Buffered(1))
        return pl.BlockSpec(shape, imap)

    in_specs = [
        pl.BlockSpec((nb, Lp, D), lambda b, c: (b, 0, 0)),            # x
        const((D, 3 * D)), const((1, 3 * D)),                         # wqkv/bqkv
        const((D, D)), const((1, D)),                                 # wo/bo
        const((1, D)), const((1, D)), const((1, D)), const((1, D)),   # ln params
        const((Lp, Lp)),                                              # mask
        pl.BlockSpec((D, ch), lambda b, c: (0, c)),                   # w1 chunk
        pl.BlockSpec((1, ch), lambda b, c: (0, c)),                   # b1 chunk
        pl.BlockSpec((ch, D), lambda b, c: (c, 0)),                   # w2 chunk
        const((1, D)),                                                # b2
    ]

    fixed = _fixed_bytes(D, Lp, ch, buffered)
    act = nb * _per_batch_bytes(Lp, D, ch)
    cap = min(int(vmem_budget * 7 // 8), 100 * 1024 * 1024)
    vmem_limit = int(min(max(fixed + act + (6 << 20), 32 << 20), cap))

    kernel = functools.partial(_rab_kernel, n_head, float(eps),
                               bool(apply_mask), _bf16_eup_ok())

    out = pl.pallas_call(
        kernel,
        out_shape=jax.ShapeDtypeStruct((N, Lp, D), jnp.float32),
        grid_spec=pltpu.PrefetchScalarGridSpec(
            num_scalar_prefetch=0,
            grid=(N // nb, Dff // ch),
            in_specs=in_specs,
            out_specs=pl.BlockSpec((nb, Lp, D), lambda b, c: (b, 0, 0)),
            scratch_shapes=[pltpu.VMEM((nb * Lp, D), jnp.bfloat16)],
        ),
        compiler_params=pltpu.CompilerParams(
            dimension_semantics=("parallel", "arbitrary"),
            vmem_limit_bytes=vmem_limit),
    )(x, params["wqkv"], params["bqkv"], params["wo"], params["bo"],
      params["g1"], params["be1"], params["g2"], params["be2"], mask,
      params["w1"], params["b1"], params["w2"], params["b2"])

    if Lp != L:
        out = out[:, :L, :]
    return out


def residual_attention_block(x_lnd, params, n_head, **kw):
    """(L, N, D) entry point matching the PyTorch module's layout.
    Prefer residual_attention_block_nld when the caller already has (N, L, D)
    data (avoids the two HBM transposes)."""
    out = residual_attention_block_nld(jnp.transpose(x_lnd, (1, 0, 2)),
                                       params, n_head, **kw)
    return jnp.transpose(out, (1, 0, 2))


# ----------------------------- pure-JAX reference -----------------------------

def reference_block(x_lnd, params, n_head, attn_mask=None, eps=1e-12):
    L, N, D = x_lnd.shape
    hd = D // n_head

    def ln(v, g, b):
        u = v.mean(-1, keepdims=True)
        s = ((v - u) ** 2).mean(-1, keepdims=True)
        return g * ((v - u) / jnp.sqrt(s + eps)) + b

    x = x_lnd
    xn = ln(x, params['g1'], params['be1'])
    q = xn @ params['wq'] + params['bq']
    k = xn @ params['wk'] + params['bk']
    v = xn @ params['wv'] + params['bv']
    qh = q.reshape(L, N, n_head, hd)
    kh = k.reshape(L, N, n_head, hd)
    vh = v.reshape(L, N, n_head, hd)
    scores = jnp.einsum('qnhd,knhd->nhqk', qh, kh) / math.sqrt(hd)
    if attn_mask is not None:
        scores = scores + attn_mask
    p = jax.nn.softmax(scores, axis=-1)
    ctx = jnp.einsum('nhqk,knhd->qnhd', p, vh).reshape(L, N, D)
    x1 = x + (ctx @ params['wo'] + params['bo'])
    xn2 = ln(x1, params['g2'], params['be2'])
    h = xn2 @ params['w1'] + params['b1']
    h = h * jax.nn.sigmoid(1.702 * h)
    return x1 + (h @ params['w2'] + params['b2'])


def init_params(key, d_model, n_head):
    dff = 4 * d_model
    ks = jax.random.split(key, 8)
    s = 0.02
    return {
        'wq': s * jax.random.normal(ks[0], (d_model, d_model), jnp.float32),
        'wk': s * jax.random.normal(ks[1], (d_model, d_model), jnp.float32),
        'wv': s * jax.random.normal(ks[2], (d_model, d_model), jnp.float32),
        'bq': s * jax.random.normal(ks[3], (d_model,), jnp.float32),
        'bk': jnp.zeros((d_model,), jnp.float32),
        'bv': s * jax.random.normal(ks[4], (d_model,), jnp.float32),
        'wo': s * jax.random.normal(ks[5], (d_model, d_model), jnp.float32),
        'bo': jnp.zeros((d_model,), jnp.float32),
        'g1': jnp.ones((d_model,), jnp.float32),
        'be1': jnp.zeros((d_model,), jnp.float32),
        'g2': jnp.ones((d_model,), jnp.float32),
        'be2': jnp.zeros((d_model,), jnp.float32),
        'w1': s * jax.random.normal(ks[6], (d_model, dff), jnp.float32),
        'b1': jnp.zeros((dff,), jnp.float32),
        'w2': s * jax.random.normal(ks[7], (dff, d_model), jnp.float32),
        'b2': jnp.zeros((d_model,), jnp.float32),
    }


if __name__ == "__main__":
    key = jax.random.PRNGKey(0)
    kx, kp, kx2, kp2 = jax.random.split(key, 4)

    # Test 1: no mask, single MLP chunk, nb = 1 (L pads 8 -> 128).
    L, N, D, H = 8, 2, 32, 4
    x = jax.random.normal(kx, (L, N, D), jnp.float32)
    raw = init_params(kp, D, H)
    prepped = prepare_params(raw, H)                 # fuse/cast weights once
    out = jax.block_until_ready(residual_attention_block(x, prepped, H))
    ref = reference_block(x, raw, H)
    np.testing.assert_allclose(np.asarray(out), np.asarray(ref),
                               rtol=2e-2, atol=2e-2)

    # Test 2: causal attn_mask + multiple batch blocks + Dff-chunk accumulation.
    L2, N2, D2, H2 = 8, 4, 64, 4
    x2 = jax.random.normal(kx2, (L2, N2, D2), jnp.float32)
    raw2 = init_params(kp2, D2, H2)
    causal = jnp.where(jnp.arange(L2)[None, :] <= jnp.arange(L2)[:, None],
                       0.0, -1e9).astype(jnp.float32)
    out2 = jax.block_until_ready(
        residual_attention_block(x2, prepare_params(raw2, H2), H2,
                                 attn_mask=causal, mlp_chunk=128))
    ref2 = reference_block(x2, raw2, H2, attn_mask=causal)
    np.testing.assert_allclose(np.asarray(out2), np.asarray(ref2),
                               rtol=2e-2, atol=2e-2)

    print("KERNEL_OK")
</pallas_src>

<mosaic_0001>
module attributes {stable_mosaic.version = 11 : i64} {
  func.func @k(%arg0: i32, %arg1: memref<8x128xf32, #tpu.memory_space<vmem>>, %arg2: memref<8x128xf32, #tpu.memory_space<vmem>>) attributes {dimension_semantics = [#tpu.dimension_semantics<arbitrary>], iteration_bounds = array<i64: 2>, scalar_prefetch = 0 : i64, scratch_operands = 0 : i64, tpu.core_type = #tpu.core_type<tc>, window_params = [{pipeline_mode = #tpu.pipeline_mode<synchronous>, transform_indices = @transform_0, window_bounds = array<i64: 8, 128>}, {transform_indices = @transform_1, window_bounds = array<i64: 8, 128>}]} {
    %c0 = arith.constant 0 : index
    %c0_0 = arith.constant 0 : index
    %0 = vector.load %arg1[%c0, %c0_0] : memref<8x128xf32, #tpu.memory_space<vmem>>, vector<8x128xf32>
    %c0_1 = arith.constant 0 : index
    %c0_2 = arith.constant 0 : index
    %1 = vector.load %arg2[%c0_1, %c0_2] : memref<8x128xf32, #tpu.memory_space<vmem>>, vector<8x128xf32>
    tpu.vector_store %arg2[%c0_1, %c0_2], %0 {strides = array<i32>} : memref<8x128xf32, #tpu.memory_space<vmem>>, vector<8x128xf32>,
    return
  }
  func.func @transform_0(%arg0: i32) -> (i32, i32) {
    %c0_i32 = arith.constant 0 : i32
    %c0_i32_0 = arith.constant 0 : i32
    %c0_i32_1 = arith.constant 0 : i32
    return %c0_i32, %c0_i32_0 : i32, i32
  }
  func.func @transform_1(%arg0: i32) -> (i32, i32) {
    %c0_i32 = arith.constant 0 : i32
    %c0_i32_0 = arith.constant 0 : i32
    return %arg0, %c0_i32 : i32, i32
  }
}

module attributes {stable_mosaic.version = 11 : i64} {
  func.func @_rab_kernel(%arg0: i32, %arg1: i32, %arg2: memref<1x128x32xf32, #tpu.memory_space<vmem>>, %arg3: memref<32x96xbf16, #tpu.memory_space<vmem>>, %arg4: memref<1x96xf32, #tpu.memory_space<vmem>>, %arg5: memref<32x32xbf16, #tpu.memory_space<vmem>>, %arg6: memref<1x32xf32, #tpu.memory_space<vmem>>, %arg7: memref<1x32xf32, #tpu.memory_space<vmem>>, %arg8: memref<1x32xf32, #tpu.memory_space<vmem>>, %arg9: memref<1x32xf32, #tpu.memory_space<vmem>>, %arg10: memref<1x32xf32, #tpu.memory_space<vmem>>, %arg11: memref<128x128xf32, #tpu.memory_space<vmem>>, %arg12: memref<32x128xbf16, #tpu.memory_space<vmem>>, %arg13: memref<1x128xf32, #tpu.memory_space<vmem>>, %arg14: memref<128x32xbf16, #tpu.memory_space<vmem>>, %arg15: memref<1x32xf32, #tpu.memory_space<vmem>>, %arg16: memref<1x128x32xf32, #tpu.memory_space<vmem>>, %arg17: memref<128x32xbf16, #tpu.memory_space<vmem>>) attributes {dimension_semantics = [#tpu.dimension_semantics<parallel>, #tpu.dimension_semantics<arbitrary>], iteration_bounds = array<i64: 2, 1>, scalar_prefetch = 0 : i64, scratch_operands = 1 : i64, tpu.core_type = #tpu.core_type<tc>, window_params = [{transform_indices = @transform_0, window_bounds = array<i64: 1, 128, 32>}, {pipeline_mode = #tpu.pipeline_mode<synchronous>, transform_indices = @transform_1, window_bounds = array<i64: 32, 96>}, {pipeline_mode = #tpu.pipeline_mode<synchronous>, transform_indices = @transform_2, window_bounds = array<i64: 1, 96>}, {pipeline_mode = #tpu.pipeline_mode<synchronous>, transform_indices = @transform_3, window_bounds = array<i64: 32, 32>}, {pipeline_mode = #tpu.pipeline_mode<synchronous>, transform_indices = @transform_4, window_bounds = array<i64: 1, 32>}, {pipeline_mode = #tpu.pipeline_mode<synchronous>, transform_indices = @transform_5, window_bounds = array<i64: 1, 32>}, {pipeline_mode = #tpu.pipeline_mode<synchronous>, transform_indices = @transform_6, window_bounds = array<i64: 1, 32>}, {pipeline_mode = #tpu.pipeline_mode<synchronous>, transform_indices = @transform_7, window_bounds = array<i64: 1, 32>}, {pipeline_mode = #tpu.pipeline_mode<synchronous>, transform_indices = @transform_8, window_bounds = array<i64: 1, 32>}, {pipeline_mode = #tpu.pipeline_mode<synchronous>, transform_indices = @transform_9, window_bounds = array<i64: 128, 128>}, {transform_indices = @transform_10, window_bounds = array<i64: 32, 128>}, {transform_indices = @transform_11, window_bounds = array<i64: 1, 128>}, {transform_indices = @transform_12, window_bounds = array<i64: 128, 32>}, {pipeline_mode = #tpu.pipeline_mode<synchronous>, transform_indices = @transform_13, window_bounds = array<i64: 1, 32>}, {transform_indices = @transform_14, window_bounds = array<i64: 1, 128, 32>}]} {
    %c0_i32 = arith.constant 0 : i32
    %0 = arith.cmpi eq, %arg1, %c0_i32 : i32
    %1 = arith.extui %0 : i1 to i32
    %c0_i32_0 = arith.constant 0 : i32
    %2 = arith.cmpi ne, %1, %c0_i32_0 : i32
    scf.if %2 {
      %c0_17 = arith.constant 0 : index
      %c0_18 = arith.constant 0 : index
      %c0_19 = arith.constant 0 : index
      %24 = vector.load %arg2[%c0_17, %c0_18, %c0_19] : memref<1x128x32xf32, #tpu.memory_space<vmem>>, vector<1x128x32xf32>
      %25 = vector.shape_cast %24 : vector<1x128x32xf32> to vector<128x32xf32>
      %c0_20 = arith.constant 0 : index
      %c0_21 = arith.constant 0 : index
      %26 = vector.load %arg7[%c0_20, %c0_21] : memref<1x32xf32, #tpu.memory_space<vmem>>, vector<1x32xf32>
      %c0_22 = arith.constant 0 : index
      %c0_23 = arith.constant 0 : index
      %27 = vector.load %arg8[%c0_22, %c0_23] : memref<1x32xf32, #tpu.memory_space<vmem>>, vector<1x32xf32>
      %cst_24 = arith.constant dense<0.000000e+00> : vector<128xf32>
      %28 = vector.multi_reduction <add>, %25, %cst_24 [1] : vector<128x32xf32> to vector<128xf32>
      %29 = vector.shape_cast %28 : vector<128xf32> to vector<128x1xf32>
      %cst_25 = arith.constant 3.200000e+01 : f32
      %30 = vector.broadcast %cst_25 : f32 to vector<128x1xf32>
      %31 = arith.divf %29, %30 : vector<128x1xf32>
      %32 = vector.broadcast %31 : vector<128x1xf32> to vector<128x32xf32>
      %33 = arith.subf %25, %32 : vector<128x32xf32>
      %34 = arith.mulf %33, %33 : vector<128x32xf32>
      %cst_26 = arith.constant dense<0.000000e+00> : vector<128xf32>
      %35 = vector.multi_reduction <add>, %34, %cst_26 [1] : vector<128x32xf32> to vector<128xf32>
      %36 = vector.shape_cast %35 : vector<128xf32> to vector<128x1xf32>
      %cst_27 = arith.constant 3.200000e+01 : f32
      %37 = vector.broadcast %cst_27 : f32 to vector<128x1xf32>
      %38 = arith.divf %36, %37 : vector<128x1xf32>
      %39 = vector.broadcast %31 : vector<128x1xf32> to vector<128x32xf32>
      %40 = arith.subf %25, %39 : vector<128x32xf32>
      %cst_28 = arith.constant 9.99999996E-13 : f32
      %41 = vector.broadcast %cst_28 : f32 to vector<128x1xf32>
      %42 = arith.addf %38, %41 : vector<128x1xf32>
      %43 = math.rsqrt %42 : vector<128x1xf32>
      %44 = vector.broadcast %43 : vector<128x1xf32> to vector<128x32xf32>
      %45 = arith.mulf %40, %44 : vector<128x32xf32>
      %46 = vector.broadcast %26 : vector<1x32xf32> to vector<128x32xf32>
      %47 = arith.mulf %46, %45 : vector<128x32xf32>
      %48 = vector.broadcast %27 : vector<1x32xf32> to vector<128x32xf32>
      %49 = arith.addf %47, %48 : vector<128x32xf32>
      %50 = arith.truncf %49 : vector<128x32xf32> to vector<128x32xbf16>
      %c0_29 = arith.constant 0 : index
      %c0_30 = arith.constant 0 : index
      %51 = vector.load %arg3[%c0_29, %c0_30] : memref<32x96xbf16, #tpu.memory_space<vmem>>, vector<32x96xbf16>
      %cst_31 = arith.constant dense<0.000000e+00> : vector<128x96xf32>
      %52 = tpu.matmul %50, %51, %cst_31 {dimension_numbers = #tpu.dot_dimension_numbers<[1], [0], [0], [1], [0, 0, 1, 1], [], []>} : vector<128x32xbf16>, vector<32x96xbf16>, vector<128x96xf32> -> vector<128x96xf32>
      %c0_32 = arith.constant 0 : index
      %c0_33 = arith.constant 0 : index
      %53 = vector.load %arg4[%c0_32, %c0_33] : memref<1x96xf32, #tpu.memory_space<vmem>>, vector<1x96xf32>
      %54 = vector.broadcast %53 : vector<1x96xf32> to vector<128x96xf32>
      %55 = arith.addf %52, %54 : vector<128x96xf32>
      %56 = arith.truncf %55 : vector<128x96xf32> to vector<128x96xbf16>
      %57 = vector.extract_strided_slice %56 {offsets = [0, 0], sizes = [128, 8], strides = [1, 1]} : vector<128x96xbf16> to vector<128x8xbf16>
      %58 = vector.shape_cast %57 : vector<128x8xbf16> to vector<1x128x8xbf16>
      %59 = vector.extract_strided_slice %56 {offsets = [0, 32], sizes = [128, 8], strides = [1, 1]} : vector<128x96xbf16> to vector<128x8xbf16>
      %60 = vector.shape_cast %59 : vector<128x8xbf16> to vector<1x128x8xbf16>
      %61 = vector.extract_strided_slice %56 {offsets = [0, 64], sizes = [128, 8], strides = [1, 1]} : vector<128x96xbf16> to vector<128x8xbf16>
      %62 = vector.shape_cast %61 : vector<128x8xbf16> to vector<1x128x8xbf16>
      "tpu.trace_start"() <{level = 10 : i32, message = "bqd,bkd->bqk"}> : () -> ()
      %cst_34 = arith.constant dense<0.000000e+00> : vector<1x128x128xf32>
      %63 = tpu.matmul %58, %60, %cst_34 {dimension_numbers = #tpu.dot_dimension_numbers<[2], [2], [1], [1], [0, 0, 0, 1, 1, 1], [0], [0]>} : vector<1x128x8xbf16>, vector<1x128x8xbf16>, vector<1x128x128xf32> -> vector<1x128x128xf32>
      "tpu.trace_stop"() : () -> ()
      %c0_35 = arith.constant 0 : index
      %c0_36 = arith.constant 0 : index
      %64 = vector.load %arg11[%c0_35, %c0_36] : memref<128x128xf32, #tpu.memory_space<vmem>>, vector<128x128xf32>
      %65 = vector.shape_cast %64 : vector<128x128xf32> to vector<1x128x128xf32>
      %66 = arith.addf %63, %65 : vector<1x128x128xf32>
      %cst_37 = arith.constant dense<0xFF800000> : vector<1x128xf32>
      %67 = vector.multi_reduction <maximumf>, %66, %cst_37 [2] : vector<1x128x128xf32> to vector<1x128xf32>
      %68 = vector.shape_cast %67 : vector<1x128xf32> to vector<1x128x1xf32>
      %69 = vector.broadcast %68 : vector<1x128x1xf32> to vector<1x128x128xf32>
      %70 = arith.subf %66, %69 : vector<1x128x128xf32>
      %71 = math.exp %70 : vector<1x128x128xf32>
      %cst_38 = arith.constant dense<0.000000e+00> : vector<1x128xf32>
      %72 = vector.multi_reduction <add>, %71, %cst_38 [2] : vector<1x128x128xf32> to vector<1x128xf32>
      %73 = vector.shape_cast %72 : vector<1x128xf32> to vector<1x128x1xf32>
      %74 = arith.truncf %71 : vector<1x128x128xf32> to vector<1x128x128xbf16>
      "tpu.trace_start"() <{level = 10 : i32, message = "bqk,bkd->bqd"}> : () -> ()
      %cst_39 = arith.constant dense<0.000000e+00> : vector<1x128x8xf32>
      %75 = tpu.matmul %74, %62, %cst_39 {dimension_numbers = #tpu.dot_dimension_numbers<[2], [1], [1], [2], [0, 0, 0, 1, 1, 2], [0], [0]>} : vector<1x128x128xbf16>, vector<1x128x8xbf16>, vector<1x128x8xf32> -> vector<1x128x8xf32>
      "tpu.trace_stop"() : () -> ()
      %76 = tpu.reciprocal %73 {approx = true} : vector<1x128x1xf32> -> vector<1x128x1xf32>
      %77 = vector.broadcast %76 : vector<1x128x1xf32> to vector<1x128x8xf32>
      %78 = arith.mulf %75, %77 : vector<1x128x8xf32>
      %79 = vector.shape_cast %78 : vector<1x128x8xf32> to vector<128x8xf32>
      %80 = arith.truncf %79 : vector<128x8xf32> to vector<128x8xbf16>
      %81 = vector.extract_strided_slice %56 {offsets = [0, 8], sizes = [128, 8], strides = [1, 1]} : vector<128x96xbf16> to vector<128x8xbf16>
      %82 = vector.shape_cast %81 : vector<128x8xbf16> to vector<1x128x8xbf16>
      %83 = vector.extract_strided_slice %56 {offsets = [0, 40], sizes = [128, 8], strides = [1, 1]} : vector<128x96xbf16> to vector<128x8xbf16>
      %84 = vector.shape_cast %83 : vector<128x8xbf16> to vector<1x128x8xbf16>
      %85 = vector.extract_strided_slice %56 {offsets = [0, 72], sizes = [128, 8], strides = [1, 1]} : vector<128x96xbf16> to vector<128x8xbf16>
      %86 = vector.shape_cast %85 : vector<128x8xbf16> to vector<1x128x8xbf16>
      "tpu.trace_start"() <{level = 10 : i32, message = "bqd,bkd->bqk"}> : () -> ()
      %cst_40 = arith.constant dense<0.000000e+00> : vector<1x128x128xf32>
      %87 = tpu.matmul %82, %84, %cst_40 {dimension_numbers = #tpu.dot_dimension_numbers<[2], [2], [1], [1], [0, 0, 0, 1, 1, 1], [0], [0]>} : vector<1x128x8xbf16>, vector<1x128x8xbf16>, vector<1x128x128xf32> -> vector<1x128x128xf32>
      "tpu.trace_stop"() : () -> ()
      %c0_41 = arith.constant 0 : index
      %c0_42 = arith.constant 0 : index
      %88 = vector.load %arg11[%c0_41, %c0_42] : memref<128x128xf32, #tpu.memory_space<vmem>>, vector<128x128xf32>
      %89 = vector.shape_cast %88 : vector<128x128xf32> to vector<1x128x128xf32>
      %90 = arith.addf %87, %89 : vector<1x128x128xf32>
      %cst_43 = arith.constant dense<0xFF800000> : vector<1x128xf32>
      %91 = vector.multi_reduction <maximumf>, %90, %cst_43 [2] : vector<1x128x128xf32> to vector<1x128xf32>
      %92 = vector.shape_cast %91 : vector<1x128xf32> to vector<1x128x1xf32>
      %93 = vector.broadcast %92 : vector<1x128x1xf32> to vector<1x128x128xf32>
      %94 = arith.subf %90, %93 : vector<1x128x128xf32>
      %95 = math.exp %94 : vector<1x128x128xf32>
      %cst_44 = arith.constant dense<0.000000e+00> : vector<1x128xf32>
      %96 = vector.multi_reduction <add>, %95, %cst_44 [2] : vector<1x128x128xf32> to vector<1x128xf32>
      %97 = vector.shape_cast %96 : vector<1x128xf32> to vector<1x128x1xf32>
      %98 = arith.truncf %95 : vector<1x128x128xf32> to vector<1x128x128xbf16>
      "tpu.trace_start"() <{level = 10 : i32, message = "bqk,bkd->bqd"}> : () -> ()
      %cst_45 = arith.constant dense<0.000000e+00> : vector<1x128x8xf32>
      %99 = tpu.matmul %98, %86, %cst_45 {dimension_numbers = #tpu.dot_dimension_numbers<[2], [1], [1], [2], [0, 0, 0, 1, 1, 2], [0], [0]>} : vector<1x128x128xbf16>, vector<1x128x8xbf16>, vector<1x128x8xf32> -> vector<1x128x8xf32>
      "tpu.trace_stop"() : () -> ()
      %100 = tpu.reciprocal %97 {approx = true} : vector<1x128x1xf32> -> vector<1x128x1xf32>
      %101 = vector.broadcast %100 : vector<1x128x1xf32> to vector<1x128x8xf32>
      %102 = arith.mulf %99, %101 : vector<1x128x8xf32>
      %103 = vector.shape_cast %102 : vector<1x128x8xf32> to vector<128x8xf32>
      %104 = arith.truncf %103 : vector<128x8xf32> to vector<128x8xbf16>
      %105 = vector.extract_strided_slice %56 {offsets = [0, 16], sizes = [128, 8], strides = [1, 1]} : vector<128x96xbf16> to vector<128x8xbf16>
      %106 = vector.shape_cast %105 : vector<128x8xbf16> to vector<1x128x8xbf16>
      %107 = vector.extract_strided_slice %56 {offsets = [0, 48], sizes = [128, 8], strides = [1, 1]} : vector<128x96xbf16> to vector<128x8xbf16>
      %108 = vector.shape_cast %107 : vector<128x8xbf16> to vector<1x128x8xbf16>
      %109 = vector.extract_strided_slice %56 {offsets = [0, 80], sizes = [128, 8], strides = [1, 1]} : vector<128x96xbf16> to vector<128x8xbf16>
      %110 = vector.shape_cast %109 : vector<128x8xbf16> to vector<1x128x8xbf16>
      "tpu.trace_start"() <{level = 10 : i32, message = "bqd,bkd->bqk"}> : () -> ()
      %cst_46 = arith.constant dense<0.000000e+00> : vector<1x128x128xf32>
      %111 = tpu.matmul %106, %108, %cst_46 {dimension_numbers = #tpu.dot_dimension_numbers<[2], [2], [1], [1], [0, 0, 0, 1, 1, 1], [0], [0]>} : vector<1x128x8xbf16>, vector<1x128x8xbf16>, vector<1x128x128xf32> -> vector<1x128x128xf32>
      "tpu.trace_stop"() : () -> ()
      %c0_47 = arith.constant 0 : index
      %c0_48 = arith.constant 0 : index
      %112 = vector.load %arg11[%c0_47, %c0_48] : memref<128x128xf32, #tpu.memory_space<vmem>>, vector<128x128xf32>
      %113 = vector.shape_cast %112 : vector<128x128xf32> to vector<1x128x128xf32>
      %114 = arith.addf %111, %113 : vector<1x128x128xf32>
      %cst_49 = arith.constant dense<0xFF800000> : vector<1x128xf32>
      %115 = vector.multi_reduction <maximumf>, %114, %cst_49 [2] : vector<1x128x128xf32> to vector<1x128xf32>
      %116 = vector.shape_cast %115 : vector<1x128xf32> to vector<1x128x1xf32>
      %117 = vector.broadcast %116 : vector<1x128x1xf32> to vector<1x128x128xf32>
      %118 = arith.subf %114, %117 : vector<1x128x128xf32>
      %119 = math.exp %118 : vector<1x128x128xf32>
      %cst_50 = arith.constant dense<0.000000e+00> : vector<1x128xf32>
      %120 = vector.multi_reduction <add>, %119, %cst_50 [2] : vector<1x128x128xf32> to vector<1x128xf32>
      %121 = vector.shape_cast %120 : vector<1x128xf32> to vector<1x128x1xf32>
      %122 = arith.truncf %119 : vector<1x128x128xf32> to vector<1x128x128xbf16>
      "tpu.trace_start"() <{level = 10 : i32, message = "bqk,bkd->bqd"}> : () -> ()
      %cst_51 = arith.constant dense<0.000000e+00> : vector<1x128x8xf32>
      %123 = tpu.matmul %122, %110, %cst_51 {dimension_numbers = #tpu.dot_dimension_numbers<[2], [1], [1], [2], [0, 0, 0, 1, 1, 2], [0], [0]>} : vector<1x128x128xbf16>, vector<1x128x8xbf16>, vector<1x128x8xf32> -> vector<1x128x8xf32>
      "tpu.trace_stop"() : () -> ()
      %124 = tpu.reciprocal %121 {approx = true} : vector<1x128x1xf32> -> vector<1x128x1xf32>
      %125 = vector.broadcast %124 : vector<1x128x1xf32> to vector<1x128x8xf32>
      %126 = arith.mulf %123, %125 : vector<1x128x8xf32>
      %127 = vector.shape_cast %126 : vector<1x128x8xf32> to vector<128x8xf32>
      %128 = arith.truncf %127 : vector<128x8xf32> to vector<128x8xbf16>
      %129 = vector.extract_strided_slice %56 {offsets = [0, 24], sizes = [128, 8], strides = [1, 1]} : vector<128x96xbf16> to vector<128x8xbf16>
      %130 = vector.shape_cast %129 : vector<128x8xbf16> to vector<1x128x8xbf16>
      %131 = vector.extract_strided_slice %56 {offsets = [0, 56], sizes = [128, 8], strides = [1, 1]} : vector<128x96xbf16> to vector<128x8xbf16>
      %132 = vector.shape_cast %131 : vector<128x8xbf16> to vector<1x128x8xbf16>
      %133 = vector.extract_strided_slice %56 {offsets = [0, 88], sizes = [128, 8], strides = [1, 1]} : vector<128x96xbf16> to vector<128x8xbf16>
      %134 = vector.shape_cast %133 : vector<128x8xbf16> to vector<1x128x8xbf16>
      "tpu.trace_start"() <{level = 10 : i32, message = "bqd,bkd->bqk"}> : () -> ()
      %cst_52 = arith.constant dense<0.000000e+00> : vector<1x128x128xf32>
      %135 = tpu.matmul %130, %132, %cst_52 {dimension_numbers = #tpu.dot_dimension_numbers<[2], [2], [1], [1], [0, 0, 0, 1, 1, 1], [0], [0]>} : vector<1x128x8xbf16>, vector<1x128x8xbf16>, vector<1x128x128xf32> -> vector<1x128x128xf32>
      "tpu.trace_stop"() : () -> ()
      %c0_53 = arith.constant 0 : index
      %c0_54 = arith.constant 0 : index
      %136 = vector.load %arg11[%c0_53, %c0_54] : memref<128x128xf32, #tpu.memory_space<vmem>>, vector<128x128xf32>
      %137 = vector.shape_cast %136 : vector<128x128xf32> to vector<1x128x128xf32>
      %138 = arith.addf %135, %137 : vector<1x128x128xf32>
      %cst_55 = arith.constant dense<0xFF800000> : vector<1x128xf32>
      %139 = vector.multi_reduction <maximumf>, %138, %cst_55 [2] : vector<1x128x128xf32> to vector<1x128xf32>
      %140 = vector.shape_cast %139 : vector<1x128xf32> to vector<1x128x1xf32>
      %141 = vector.broadcast %140 : vector<1x128x1xf32> to vector<1x128x128xf32>
      %142 = arith.subf %138, %141 : vector<1x128x128xf32>
      %143 = math.exp %142 : vector<1x128x128xf32>
      %cst_56 = arith.constant dense<0.000000e+00> : vector<1x128xf32>
      %144 = vector.multi_reduction <add>, %143, %cst_56 [2] : vector<1x128x128xf32> to vector<1x128xf32>
      %145 = vector.shape_cast %144 : vector<1x128xf32> to vector<1x128x1xf32>
      %146 = arith.truncf %143 : vector<1x128x128xf32> to vector<1x128x128xbf16>
      "tpu.trace_start"() <{level = 10 : i32, message = "bqk,bkd->bqd"}> : () -> ()
      %cst_57 = arith.constant dense<0.000000e+00> : vector<1x128x8xf32>
      %147 = tpu.matmul %146, %134, %cst_57 {dimension_numbers = #tpu.dot_dimension_numbers<[2], [1], [1], [2], [0, 0, 0, 1, 1, 2], [0], [0]>} : vector<1x128x128xbf16>, vector<1x128x8xbf16>, vector<1x128x8xf32> -> vector<1x128x8xf32>
      "tpu.trace_stop"() : () -> ()
      %148 = tpu.reciprocal %145 {approx = true} : vector<1x128x1xf32> -> vector<1x128x1xf32>
      %149 = vector.broadcast %148 : vector<1x128x1xf32> to vector<1x128x8xf32>
      %150 = arith.mulf %147, %149 : vector<1x128x8xf32>
      %151 = vector.shape_cast %150 : vector<1x128x8xf32> to vector<128x8xf32>
      %152 = arith.truncf %151 : vector<128x8xf32> to vector<128x8xbf16>
      %153 = tpu.concatenate %80, %104, %128, %152 in 1 : vector<128x8xbf16>, vector<128x8xbf16>, vector<128x8xbf16>, vector<128x8xbf16> -> vector<128x32xbf16>
      %c0_58 = arith.constant 0 : index
      %c0_59 = arith.constant 0 : index
      %154 = vector.load %arg5[%c0_58, %c0_59] : memref<32x32xbf16, #tpu.memory_space<vmem>>, vector<32x32xbf16>
      %cst_60 = arith.constant dense<0.000000e+00> : vector<128x32xf32>
      %155 = tpu.matmul %153, %154, %cst_60 {dimension_numbers = #tpu.dot_dimension_numbers<[1], [0], [0], [1], [0, 0, 1, 1], [], []>} : vector<128x32xbf16>, vector<32x32xbf16>, vector<128x32xf32> -> vector<128x32xf32>
      %c0_61 = arith.constant 0 : index
      %c0_62 = arith.constant 0 : index
      %156 = vector.load %arg6[%c0_61, %c0_62] : memref<1x32xf32, #tpu.memory_space<vmem>>, vector<1x32xf32>
      %157 = vector.broadcast %156 : vector<1x32xf32> to vector<128x32xf32>
      %158 = arith.addf %155, %157 : vector<128x32xf32>
      %159 = arith.addf %25, %158 : vector<128x32xf32>
      %c0_63 = arith.constant 0 : index
      %c0_64 = arith.constant 0 : index
      %160 = vector.load %arg15[%c0_63, %c0_64] : memref<1x32xf32, #tpu.memory_space<vmem>>, vector<1x32xf32>
      %161 = vector.broadcast %160 : vector<1x32xf32> to vector<128x32xf32>
      %162 = arith.addf %159, %161 : vector<128x32xf32>
      %163 = vector.shape_cast %162 : vector<128x32xf32> to vector<1x128x32xf32>
      %c0_65 = arith.constant 0 : index
      %c0_66 = arith.constant 0 : index
      %c0_67 = arith.constant 0 : index
      %164 = vector.load %arg16[%c0_65, %c0_66, %c0_67] : memref<1x128x32xf32, #tpu.memory_space<vmem>>, vector<1x128x32xf32>
      tpu.vector_store %arg16[%c0_65, %c0_66, %c0_67], %163 {strides = array<i32>} : memref<1x128x32xf32, #tpu.memory_space<vmem>>, vector<1x128x32xf32>,
      %c0_68 = arith.constant 0 : index
      %c0_69 = arith.constant 0 : index
      %165 = vector.load %arg9[%c0_68, %c0_69] : memref<1x32xf32, #tpu.memory_space<vmem>>, vector<1x32xf32>
      %c0_70 = arith.constant 0 : index
      %c0_71 = arith.constant 0 : index
      %166 = vector.load %arg10[%c0_70, %c0_71] : memref<1x32xf32, #tpu.memory_space<vmem>>, vector<1x32xf32>
      %cst_72 = arith.constant dense<0.000000e+00> : vector<128xf32>
      %167 = vector.multi_reduction <add>, %159, %cst_72 [1] : vector<128x32xf32> to vector<128xf32>
      %168 = vector.shape_cast %167 : vector<128xf32> to vector<128x1xf32>
      %cst_73 = arith.constant 3.200000e+01 : f32
      %169 = vector.broadcast %cst_73 : f32 to vector<128x1xf32>
      %170 = arith.divf %168, %169 : vector<128x1xf32>
      %171 = vector.broadcast %170 : vector<128x1xf32> to vector<128x32xf32>
      %172 = arith.subf %159, %171 : vector<128x32xf32>
      %173 = arith.mulf %172, %172 : vector<128x32xf32>
      %cst_74 = arith.constant dense<0.000000e+00> : vector<128xf32>
      %174 = vector.multi_reduction <add>, %173, %cst_74 [1] : vector<128x32xf32> to vector<128xf32>
      %175 = vector.shape_cast %174 : vector<128xf32> to vector<128x1xf32>
      %cst_75 = arith.constant 3.200000e+01 : f32
      %176 = vector.broadcast %cst_75 : f32 to vector<128x1xf32>
      %177 = arith.divf %175, %176 : vector<128x1xf32>
      %178 = vector.broadcast %170 : vector<128x1xf32> to vector<128x32xf32>
      %179 = arith.subf %159, %178 : vector<128x32xf32>
      %cst_76 = arith.constant 9.99999996E-13 : f32
      %180 = vector.broadcast %cst_76 : f32 to vector<128x1xf32>
      %181 = arith.addf %177, %180 : vector<128x1xf32>
      %182 = math.rsqrt %181 : vector<128x1xf32>
      %183 = vector.broadcast %182 : vector<128x1xf32> to vector<128x32xf32>
      %184 = arith.mulf %179, %183 : vector<128x32xf32>
      %185 = vector.broadcast %165 : vector<1x32xf32> to vector<128x32xf32>
      %186 = arith.mulf %185, %184 : vector<128x32xf32>
      %187 = vector.broadcast %166 : vector<1x32xf32> to vector<128x32xf32>
      %188 = arith.addf %186, %187 : vector<128x32xf32>
      %189 = arith.truncf %188 : vector<128x32xf32> to vector<128x32xbf16>
      %c0_77 = arith.constant 0 : index
      %c0_78 = arith.constant 0 : index
      %190 = vector.load %arg17[%c0_77, %c0_78] : memref<128x32xbf16, #tpu.memory_space<vmem>>, vector<128x32xbf16>
      tpu.vector_store %arg17[%c0_77, %c0_78], %189 {strides = array<i32>} : memref<128x32xbf16, #tpu.memory_space<vmem>>, vector<128x32xbf16>,
    } else {
    }
    %c0 = arith.constant 0 : index
    %c0_1 = arith.constant 0 : index
    %3 = vector.load %arg17[%c0, %c0_1] : memref<128x32xbf16, #tpu.memory_space<vmem>>, vector<128x32xbf16>
    %c0_2 = arith.constant 0 : index
    %c0_3 = arith.constant 0 : index
    %4 = vector.load %arg12[%c0_2, %c0_3] : memref<32x128xbf16, #tpu.memory_space<vmem>>, vector<32x128xbf16>
    %cst = arith.constant dense<0.000000e+00> : vector<128x128xf32>
    %5 = tpu.matmul %3, %4, %cst {dimension_numbers = #tpu.dot_dimension_numbers<[1], [0], [0], [1], [0, 0, 1, 1], [], []>} : vector<128x32xbf16>, vector<32x128xbf16>, vector<128x128xf32> -> vector<128x128xf32>
    %c0_4 = arith.constant 0 : index
    %c0_5 = arith.constant 0 : index
    %6 = vector.load %arg13[%c0_4, %c0_5] : memref<1x128xf32, #tpu.memory_space<vmem>>, vector<1x128xf32>
    %7 = vector.broadcast %6 : vector<1x128xf32> to vector<128x128xf32>
    %8 = arith.addf %5, %7 : vector<128x128xf32>
    %cst_6 = arith.constant 1.702000e+00 : f32
    %9 = vector.broadcast %cst_6 : f32 to vector<128x128xf32>
    %10 = arith.mulf %9, %8 : vector<128x128xf32>
    %11 = arith.negf %10 : vector<128x128xf32>
    %12 = math.exp %11 : vector<128x128xf32>
    %cst_7 = arith.constant 1.000000e+00 : f32
    %13 = vector.broadcast %cst_7 : f32 to vector<128x128xf32>
    %14 = arith.addf %13, %12 : vector<128x128xf32>
    %15 = arith.divf %13, %14 : vector<128x128xf32>
    %16 = arith.mulf %8, %15 : vector<128x128xf32>
    %17 = arith.truncf %16 : vector<128x128xf32> to vector<128x128xbf16>
    %c0_8 = arith.constant 0 : index
    %c0_9 = arith.constant 0 : index
    %c0_10 = arith.constant 0 : index
    %18 = vector.load %arg16[%c0_8, %c0_9, %c0_10] : memref<1x128x32xf32, #tpu.memory_space<vmem>>, vector<1x128x32xf32>
    %c0_11 = arith.constant 0 : index
    %c0_12 = arith.constant 0 : index
    %19 = vector.load %arg14[%c0_11, %c0_12] : memref<128x32xbf16, #tpu.memory_space<vmem>>, vector<128x32xbf16>
    %cst_13 = arith.constant dense<0.000000e+00> : vector<128x32xf32>
    %20 = tpu.matmul %17, %19, %cst_13 {dimension_numbers = #tpu.dot_dimension_numbers<[1], [0], [0], [1], [0, 0, 1, 1], [], []>} : vector<128x128xbf16>, vector<128x32xbf16>, vector<128x32xf32> -> vector<128x32xf32>
    %21 = vector.shape_cast %20 : vector<128x32xf32> to vector<1x128x32xf32>
    %22 = arith.addf %18, %21 : vector<1x128x32xf32>
    %c0_14 = arith.constant 0 : index
    %c0_15 = arith.constant 0 : index
    %c0_16 = arith.constant 0 : index
    %23 = vector.load %arg16[%c0_14, %c0_15, %c0_16] : memref<1x128x32xf32, #tpu.memory_space<vmem>>, vector<1x128x32xf32>
    tpu.vector_store %arg16[%c0_14, %c0_15, %c0_16], %22 {strides = array<i32>} : memref<1x128x32xf32, #tpu.memory_space<vmem>>, vector<1x128x32xf32>,
    return
  }
  func.func @transform_0(%arg0: i32, %arg1: i32) -> (i32, i32, i32) {
    %c0_i32 = arith.constant 0 : i32
    %c0_i32_0 = arith.constant 0 : i32
    %c0_i32_1 = arith.constant 0 : i32
    return %arg0, %c0_i32, %c0_i32_0 : i32, i32, i32
  }
  func.func @transform_1(%arg0: i32, %arg1: i32) -> (i32, i32) {
    %c0_i32 = arith.constant 0 : i32
    %c0_i32_0 = arith.constant 0 : i32
    %c0_i32_1 = arith.constant 0 : i32
    return %c0_i32, %c0_i32_0 : i32, i32
  }
  func.func @transform_2(%arg0: i32, %arg1: i32) -> (i32, i32) {
    %c0_i32 = arith.constant 0 : i32
    %c0_i32_0 = arith.constant 0 : i32
    %c0_i32_1 = arith.constant 0 : i32
    return %c0_i32, %c0_i32_0 : i32, i32
  }
  func.func @transform_3(%arg0: i32, %arg1: i32) -> (i32, i32) {
    %c0_i32 = arith.constant 0 : i32
    %c0_i32_0 = arith.constant 0 : i32
    %c0_i32_1 = arith.constant 0 : i32
    return %c0_i32, %c0_i32_0 : i32, i32
  }
  func.func @transform_4(%arg0: i32, %arg1: i32) -> (i32, i32) {
    %c0_i32 = arith.constant 0 : i32
    %c0_i32_0 = arith.constant 0 : i32
    %c0_i32_1 = arith.constant 0 : i32
    return %c0_i32, %c0_i32_0 : i32, i32
  }
  func.func @transform_5(%arg0: i32, %arg1: i32) -> (i32, i32) {
    %c0_i32 = arith.constant 0 : i32
    %c0_i32_0 = arith.constant 0 : i32
    %c0_i32_1 = arith.constant 0 : i32
    return %c0_i32, %c0_i32_0 : i32, i32
  }
  func.func @transform_6(%arg0: i32, %arg1: i32) -> (i32, i32) {
    %c0_i32 = arith.constant 0 : i32
    %c0_i32_0 = arith.constant 0 : i32
    %c0_i32_1 = arith.constant 0 : i32
    return %c0_i32, %c0_i32_0 : i32, i32
  }
  func.func @transform_7(%arg0: i32, %arg1: i32) -> (i32, i32) {
    %c0_i32 = arith.constant 0 : i32
    %c0_i32_0 = arith.constant 0 : i32
    %c0_i32_1 = arith.constant 0 : i32
    return %c0_i32, %c0_i32_0 : i32, i32
  }
  func.func @transform_8(%arg0: i32, %arg1: i32) -> (i32, i32) {
    %c0_i32 = arith.constant 0 : i32
    %c0_i32_0 = arith.constant 0 : i32
    %c0_i32_1 = arith.constant 0 : i32
    return %c0_i32, %c0_i32_0 : i32, i32
  }
  func.func @transform_9(%arg0: i32, %arg1: i32) -> (i32, i32) {
    %c0_i32 = arith.constant 0 : i32
    %c0_i32_0 = arith.constant 0 : i32
    %c0_i32_1 = arith.constant 0 : i32
    return %c0_i32, %c0_i32_0 : i32, i32
  }
  func.func @transform_10(%arg0: i32, %arg1: i32) -> (i32, i32) {
    %c0_i32 = arith.constant 0 : i32
    %c0_i32_0 = arith.constant 0 : i32
    return %c0_i32, %arg1 : i32, i32
  }
  func.func @transform_11(%arg0: i32, %arg1: i32) -> (i32, i32) {
    %c0_i32 = arith.constant 0 : i32
    %c0_i32_0 = arith.constant 0 : i32
    return %c0_i32, %arg1 : i32, i32
  }
  func.func @transform_12(%arg0: i32, %arg1: i32) -> (i32, i32) {
    %c0_i32 = arith.constant 0 : i32
    %c0_i32_0 = arith.constant 0 : i32
    return %arg1, %c0_i32 : i32, i32
  }
  func.func @transform_13(%arg0: i32, %arg1: i32) -> (i32, i32) {
    %c0_i32 = arith.constant 0 : i32
    %c0_i32_0 = arith.constant 0 : i32
    %c0_i32_1 = arith.constant 0 : i32
    return %c0_i32, %c0_i32_0 : i32, i32
  }
  func.func @transform_14(%arg0: i32, %arg1: i32) -> (i32, i32, i32) {
    %c0_i32 = arith.constant 0 : i32
    %c0_i32_0 = arith.constant 0 : i32
    %c0_i32_1 = arith.constant 0 : i32
    return %arg0, %c0_i32, %c0_i32_0 : i32, i32, i32
  }
}

</mosaic_0001>

<bundles_post_ra>
// kernel: tpu_custom_call.1
= control target key start
LH: loop header
LB: loop body
LE: loop exit
PB: predicated region body
PF: predicated region fallthrough
CT: control target
= control target key end

     0   :  { %6 = vsyncpa [#allocation3], 0  ;;  %s481_s0 = inlined_call_operand.hbm [shape: f32[8,128], index: 0, kind: input, shape index: {}]   ;;  %s482_s1 = inlined_call_operand.hbm [shape: f32[16,128], index: 1, kind: output, shape index: {}]  }
   0x1   :  { %7 = vsyncpa [#allocation4], 0 }
   0x2   :  { %9 = vsyncpa [#allocation4 + $0x1], 0  ;;  %s351_s6 = smov 0   ;;  %s353_s7 = smov 0  }
   0x3   :  { %s355_s8 = smov 0   ;;  %s357_s9 = smov 0  }
   0x4 LB: > { %s372_s10 = sadd.s32 4294967295, %s337_s9   ;;  %s183_s11 = sadd.s32 4294967294, %s337_s9   ;;  %s337_s9 = sphi %s357_s9, %s498_s9   ;;  %s333_s8 = sphi %s355_s8, %s497_s8   ;;  %s329_s7 = sphi %s353_s7, %s496_s7   ;;  %s325_s6 = sphi %s351_s6, %s495_s6  }
   0x5   : > { %s376_s12 = sadd.s32 1, %s337_s9   ;;  %s43_s13 = sadd.s32 1, %s333_s8 }
   0x6   : > { %s40_s14 = ssub.s32 %s337_s9, %s376_s12  ;;  %p53_p0 = scmp.ne.s32.totalorder %s333_s8, %s329_s7 }
   0x7   : > { %p41_p1 = scmp.eq.s32.totalorder %s40_s14, 0  ;;  %p54_p2 = scmp.eq.s32.totalorder %s372_s10, 1 }
   0x8   : > { %p59_p3 = scmp.ne.s32.totalorder %s329_s7, %s325_s6  ;;  %p60_p4 = scmp.eq.s32.totalorder %s183_s11, 1 }
   0x9   : > { %s387_s15 = scalar_select %p41_p1, %s333_s8, %s43_s13  }
   0xa   : > { %p389_p5 = por %p54_p2, %p53_p0  ;;  %p393_p6 = por %p60_p4, %p59_p3 }
   0xb   : > { %p184_p7 = scmp.ge.s32.totalorder %s337_s9, 1  ;;  %p67_p8 = scmp.lt.s32.totalorder %s337_s9, 3 }
   0xc   : > { %s486_s16 = scalar_select %p389_p5, 1, 0 }
   0xd   : > { %s487_s17 = scalar_select %p393_p6, 1, 0 }
   0xe   : > { %p483_p9 = scmp.eq.s32.totalorder %s372_s10, 0  ;;  %p400_p10 = pnand %p184_p7, %p67_p8 }
   0xf   : > { %s339_s19 = smov [#allocation2]   ;;  %s243_s24 = scalar_lea.hbm %s481_s0, 128 }
  0x10   : > { %s488_s18 = scalar_select %p400_p10, 1, 0 }
  0x11   : > { %s80_s20 = sshll.u32 %s339_s19, 4  ;;  %p199_p11 = pneg %p400_p10  ;;  %s81_s20 = int_to_ptr.vmem [resolvable:$true] %s80_s20 }
  0x12   : > { %p244_p13 = scmp.ne.s32.totalorder %s481_s0, %s243_s24  ;;  %p250_p3 = scmp.lt.u32.totalorder %s243_s24, %s481_s0 }
  0x13   : > { %p408_p12 = pnand %p483_p9, %p199_p11 }
  0x15   : > { %p245_p0 = pneg %p408_p12 }
  0x17   : > { %p246_p1 = pnand %p245_p0, %p244_p13 }
  0x19   : > { %p247_p2 = pneg %p246_p1 }
  0x1b   : > { %p252_p4 = pnand %p250_p3, %p247_p2 }
  0x1d   : > { %255 = shalt.err (!%p252_p4)
}
  0x1e   : > { %s256_s29 = scalar_lea.vmem %s81_s20, 128  ;;  %p264_p9 = scmp.lt.s32.totalorder %s81_s20, %s81_s20 }
  0x1f   : > { %p257_p7 = scmp.ne.s32.totalorder %s81_s20, %s256_s29  ;;  %p265_p6 = scmp.lt.s32.totalorder %s256_s29, %s256_s29 }
  0x21   : > { %p259_p8 = pnand %p257_p7, %p245_p0  ;;  %p266_p5 = por %p265_p6, %p264_p9 }
  0x23   : > { %p260_p11 = pneg %p259_p8 }
  0x25   : > { %p267_p10 = pnand %p266_p5, %p260_p11 }
  0x27   : > { %270 = shalt.err (!%p267_p10)
}
  0x28   : > { %202 = dma.hbm_to_vmem [thread:$0]  (!%p408_p12), %s481_s0, 128, %s81_s20, [#allocation3]  }
  0x29   : > { %p490_p13 = scmp.ne.s32.totalorder %s488_s18, 0 }
  0x2a   : > { %p491_p1 = scmp.eq.s32.totalorder (!%p490_p13), %s372_s10, 0 }
  0x2b   : > { %93 = sbr.rel (%p490_p13) target bundleno = 77 (0x4d), region = 24 }
  0x32   : > { %316 = dma.done.wait (%p491_p1), [#allocation3], 128   ;;  %p492_p0 = pmov %p491_p1 }
  0x33   : > { %s105_s3 = sand.u32 1, %s329_s7   ;;  %s190_s13 = sshll.u32 %s372_s10, 7  ;;  %v108_v0 = vld [vmem:[#allocation2] sm:$0xff] }
  0x34   : > { %318 = vsyncadd (%p492_p0), [#allocation3], 4294967168  ;;  %s188_s4 = sshll.u32 %s105_s3, 3  ;;  %s441_s18 = scalar_lea.hbm %s482_s1, %s190_s13 }
  0x35   : > { %s107_s5 = scalar_lea.vmem [#allocation5], %s188_s4  ;;  %s111_s20 = scalar_lea.sflag [#allocation4], %s105_s3 }
  0x36   : > { %s124_s11 = sshll.u32 %s107_s5, 4  ;;  %109 = vst [vmem:[%s107_s5] sm:$0xff] %v108_v0  ;;  %p493_p6 = scmp.ne.s32.totalorder %s486_s16, 0  ;;  %s436_s11 = int_to_ptr.vmem [resolvable:$true] %s124_s11 }
  0x37   : > { %s271_s21 = scalar_lea.vmem %s436_s11, 128  ;;  %s340_s22 = smov [#allocation5]  }
  0x38   : > { %p272_p5 = scmp.ne.s32.totalorder %s436_s11, %s271_s21  ;;  %s275_s10 = sshll.u32 %s340_s22, 4  ;;  %s276_s10 = int_to_ptr.vmem [resolvable:$false] %s275_s10 }
  0x39   : > { %s277_s23 = scalar_lea.vmem %s276_s10, 256  ;;  %p278_p12 = scmp.lt.s32.totalorder %s436_s11, %s276_s10 }
  0x3a   : > { %p273_p9 = pnand %p272_p5, %p493_p6  ;;  %p279_p2 = scmp.lt.s32.totalorder %s277_s23, %s271_s21 }
  0x3c   : > { %p274_p10 = pneg %p273_p9  ;;  %p280_p3 = por %p279_p2, %p278_p12 }
  0x3e   : > { %p281_p4 = pnand %p280_p3, %p274_p10 }
  0x40   : > { %284 = shalt.err (!%p281_p4)
}
  0x41   : > { %s285_s24 = scalar_lea.hbm %s441_s18, 128  ;;  %s289_s27 = scalar_lea.hbm %s482_s1, 256 }
  0x42   : > { %p286_p7 = scmp.ne.s32.totalorder %s441_s18, %s285_s24  ;;  %p290_p13 = scmp.lt.u32.totalorder %s441_s18, %s482_s1 }
  0x43   : > { %p291_p1 = scmp.lt.u32.totalorder %s289_s27, %s285_s24  ;;  %p293_p5 = scmp.lt.u32.totalorder %s285_s24, %s441_s18 }
  0x44   : > { %p287_p8 = pnand %p286_p7, %p493_p6 }
  0x45   : > { %p292_p0 = por %p291_p1, %p290_p13 }
  0x46   : > { %p288_p11 = pneg %p287_p8 }
  0x47   : > { %p294_p9 = por %p293_p5, %p292_p0 }
  0x49   : > { %p295_p10 = pnand %p294_p9, %p288_p11 }
  0x4b   : > { %298 = shalt.err (!%p295_p10)
}
  0x4c   : > { %197 = dma.vmem_to_hbm [thread:$0]  (%p493_p6), %s436_s11, 128, %s441_s18, %s111_s20  }
  0x4d PF: > { %p209_p12 = scmp.ge.s32.totalorder %s337_s9, 2  ;;  %s136_s30 = sand.u32 1, %s325_s6  }
  0x4e   : > { %p494_p2 = scmp.ne.s32.totalorder %s487_s17, 0  ;;  %s137_s2 = scalar_lea.sflag [#allocation4], %s136_s30 }
  0x50   : > { %p204_p3 = pnand %p209_p12, %p494_p2 }
  0x52   : > { %320 = dma.done.wait (!%p204_p3), %s137_s2, 128  }
  0x53   : > { %322 = vsyncadd (!%p204_p3), %s137_s2, 4294967168  ;;  %p12_p4 = scmp.ge.s32.totalorder %s376_s12, 4   ;;  %s495_s6 = smov %s329_s7 }
  0x54   : > { %s496_s7 = smov %s333_s8  ;;  %s497_s8 = smov %s387_s15 }
  0x55   : > { %s498_s9 = smov %s376_s12  ;;  %14 = sbr.rel (!%p12_p4) target bundleno = 4 (0x4), region = 61 }
  0x5c   :  { %142 = vsyncpa [#allocation3], 1 }
  0x5d   :  { %144 = vsyncpa [#allocation3 + $0x1], 1 }
  0x5e   :  { %145 = vsyncpa [#allocation4], 1 }
  0x5f   :  { %147 = vsyncpa [#allocation4 + $0x1], 1 }

// kernel: tpu_custom_call.1
= control target key start
LH: loop header
LB: loop body
LE: loop exit
PB: predicated region body
PF: predicated region fallthrough
CT: control target
= control target key end

     0   :  { %s5299_s29 = smov 0   ;;  %s5301_s30 = smov 0   ;;  %s7401_s0 = inlined_call_operand.vmem [shape: f32[2,128,32], index: 0, kind: input, shape index: {}]   ;;  %s7402_s1 = inlined_call_operand.vmem [shape: bf16[32,96], index: 1, kind: input, shape index: {}]   ;;  %s7403_s2 = inlined_call_operand.vmem [shape: f32[1,96], index: 2, kind: input, shape index: {}]   ;;  %s7404_s3 = inlined_call_operand.vmem [shape: bf16[32,32], index: 3, kind: input, shape index: {}]   ;;  %s7405_s4 = inlined_call_operand.vmem [shape: f32[1,32], index: 4, kind: input, shape index: {}]   ;;  %s7406_s5 = inlined_call_operand.vmem [shape: f32[1,32], index: 5, kind: input, shape index: {}]   ;;  %s7407_s6 = inlined_call_operand.vmem [shape: f32[1,32], index: 6, kind: input, shape index: {}]   ;;  %s7408_s7 = inlined_call_operand.vmem [shape: f32[1,32], index: 7, kind: input, shape index: {}]   ;;  %s7409_s8 = inlined_call_operand.vmem [shape: f32[1,32], index: 8, kind: input, shape index: {}]   ;;  %s7410_s9 = inlined_call_operand.vmem [shape: f32[128,128], index: 9, kind: input, shape index: {}]   ;;  %s7411_s10 = inlined_call_operand.vmem [shape: bf16[32,128], index: 10, kind: input, shape index: {}]   ;;  %s7412_s11 = inlined_call_operand.vmem [shape: f32[1,128], index: 11, kind: input, shape index: {}]   ;;  %s7413_s12 = inlined_call_operand.vmem [shape: bf16[128,32], index: 12, kind: input, shape index: {}]   ;;  %s7414_s13 = inlined_call_operand.vmem [shape: f32[1,32], index: 13, kind: input, shape index: {}]   ;;  %s7415_s14 = inlined_call_operand.vmem [shape: f32[2,128,32], index: 14, kind: output, shape index: {}]  }
   0x1   :  { %s5303_s15 = smov 0  }
   0x2 LB: > { %s36_s16 = sadd.s32 1, %s5204_s30  ;;  %p4061_p0 = scmp.ge.s32.totalorder %s5208_s15, 1  ;;  %s5208_s15 = sphi %s5303_s15, %s24_s15   ;;  %s5204_s30 = sphi %s5301_s30, %s7566_s30   ;;  %s5200_s29 = sphi %s5299_s29, %s7565_s29  }
   0x3   : > { %p38_p1 = scmp.ge.s32.totalorder %s36_s16, 2  ;;  %p452_p2 = scmp.lt.s32.totalorder %s5208_s15, 3 }
   0x5   : > { %s7568_s16 = smov (%p38_p1, %s36_s16), 0  ;;  %p453_p3 = pnand %p4061_p0, %p452_p2 }
   0x7   : > { %456 = sbr.rel (%p453_p3) target bundleno = 3929 (0xf59), region = 76 }
   0xe   : > { %p510_p4 = scmp.lt.s32.totalorder %s5200_s29, 1  ;;  %vm556_vm0 = vcmask 261120   ;;  %vm1010_vm1 = vcmask 64512   ;;  %s5210_s21 = smov 96   ;;  %vm2972_vm2 = vcmask 195584   ;;  %vm2955_vm3 = vcmask 130048  }
   0xf   : > { %s5211_s22 = smov 64   ;;  %s5212_s23 = smov 88  }
  0x10   : > { %s7570_s29 = smov (!%p510_p4, %s5200_s29), 1  ;;  %s5213_s27 = smov 120  }
  0x11   : > { %s4162_s17 = sshll.u32 %s7570_s29, 7  ;;  %s5214_s19 = smov 56  }
  0x12   : > { %s5325_s20 = scalar_lea.vmem %s7401_s0, %s4162_s17  ;;  %s5218_s24 = smov 72  }
  0x13   : > { %v538_v0 = vld [vmem:[%s5325_s20] sm:$0xff]  ;;  %v540_v1 = vld [vmem:[%s5325_s20 + $0x10] sm:$0xff]  ;;  %v539_v2 = vld [vmem:[%s5325_s20 + $0x8] sm:$0xff]  ;;  %s5219_s28 = smov 104   ;;  %s6919_s25 = scalar_lea.vmem %s7415_s14, %s4162_s17 }
  0x14   : > { %v557_v3 = vsel %vm556_vm0, %v538_v0, 0.0  ;;  %v563_v4 = vsel %vm556_vm0, %v540_v1, 0.0  ;;  %v541_v5 = vld [vmem:[%s5325_s20 + $0x18] sm:$0xff]  ;;  %v5334_v6 = vld [vmem:[%s5325_s20 + $0x20] sm:$0xff]  ;;  %v560_v7 = vsel %vm556_vm0, %v539_v2, 0.0  ;;  %v543_v9 = vld [vmem:[%s5325_s20 + $0x28] sm:$0xff] }
  0x15   : > { %558 = vadd.xlane.f32.xlu0 %v557_v3  ;;  %564 = vadd.xlane.f32.xlu1 %v563_v4  ;;  %v566_v8 = vsel %vm556_vm0, %v541_v5, 0.0  ;;  %v569_v10 = vsel %vm556_vm0, %v5334_v6, 0.0  ;;  %v572_v11 = vsel %vm556_vm0, %v543_v9, 0.0  ;;  %v5343_v12 = vld [vmem:[%s5325_s20 + $0x30] sm:$0xff]  ;;  %v5346_v13 = vld [vmem:[%s5325_s20 + $0x38] sm:$0xff]  ;;  %v5353_v16 = vld [vmem:[%s5325_s20 + $0x40] sm:$0xff] }
  0x16   : > { %v575_v14 = vsel %vm556_vm0, %v5343_v12, 0.0  ;;  %v578_v15 = vsel %vm556_vm0, %v5346_v13, 0.0  ;;  %v5356_v17 = vld [vmem:[%s5325_s20 + $0x48] sm:$0xff]  ;;  %v581_v18 = vsel %vm556_vm0, %v5353_v16, 0.0  ;;  %v5363_v20 = vld [vmem:[%s5325_s20 + $0x50] sm:$0xff]  ;;  %v5366_v21 = vld [vmem:[%s5325_s20 + $0x58] sm:$0xff] }
  0x17   : > { %v584_v19 = vsel %vm556_vm0, %v5356_v17, 0.0  ;;  %v587_v22 = vsel %vm556_vm0, %v5363_v20, 0.0  ;;  %v590_v23 = vsel %vm556_vm0, %v5366_v21, 0.0  ;;  %v5373_v24 = vld [vmem:[%s5325_s20 + $0x60] sm:$0xff]  ;;  %v5376_v25 = vld [vmem:[%s5325_s20 + $0x68] sm:$0xff]  ;;  %v5383_v28 = vld [vmem:[%s5325_s20 + $0x70] sm:$0xff] }
  0x18   : > { %v593_v26 = vsel %vm556_vm0, %v5373_v24, 0.0  ;;  %v596_v27 = vsel %vm556_vm0, %v5376_v25, 0.0  ;;  %v5386_v29 = vld [vmem:[%s5325_s20 + $0x78] sm:$0xff]  ;;  %v599_v30 = vsel %vm556_vm0, %v5383_v28, 0.0 }
  0x19   : > { %561 = vadd.xlane.f32.xlu0 %v560_v7  ;;  %567 = vadd.xlane.f32.xlu1 %v566_v8  ;;  %v602_v31 = vsel %vm556_vm0, %v5386_v29, 0.0 }
  0x1d   : > { %570 = vadd.xlane.f32.xlu0 %v569_v10  ;;  %573 = vadd.xlane.f32.xlu1 %v572_v11 }
  0x21   : > { %576 = vadd.xlane.f32.xlu0 %v575_v14  ;;  %579 = vadd.xlane.f32.xlu1 %v578_v15 }
  0x25   : > { %582 = vadd.xlane.f32.xlu0 %v581_v18  ;;  %585 = vadd.xlane.f32.xlu1 %v584_v19 }
  0x29   : > { %588 = vadd.xlane.f32.xlu0 %v587_v22  ;;  %591 = vadd.xlane.f32.xlu1 %v590_v23 }
  0x2d   : > { %594 = vadd.xlane.f32.xlu0 %v593_v26  ;;  %597 = vadd.xlane.f32.xlu1 %v596_v27 }
  0x31   : > { %600 = vadd.xlane.f32.xlu0 %v599_v30  ;;  %603 = vadd.xlane.f32.xlu1 %v602_v31 }
  0xa2   : > { %v559_v32 = vpop.xlane.xlu0 %558  ;;  %v565_v33 = vpop.xlane.xlu1 %564 }
  0xa3   : > { %v606_v34 = vmul.f32 0.03125, %v559_v32  ;;  %v608_v35 = vmul.f32 0.03125, %v565_v33 }
  0xa5   : > { %v5392_v36 = vsub.f32 %v538_v0, %v606_v34  ;;  %v5394_v37 = vsub.f32 %v540_v1, %v608_v35 }
  0xa6   : > { %v562_v38 = vpop.xlane.xlu0 %561  ;;  %v568_v39 = vpop.xlane.xlu1 %567 }
  0xa7   : > { %v607_v40 = vmul.f32 0.03125, %v562_v38  ;;  %v609_v41 = vmul.f32 0.03125, %v568_v39  ;;  %v638_v42 = vmul.f32 %v5392_v36, %v5392_v36  ;;  %v640_v43 = vmul.f32 %v5394_v37, %v5394_v37 }
  0xa9   : > { %v5400_v44 = vsub.f32 %v539_v2, %v607_v40  ;;  %v5402_v45 = vsub.f32 %v541_v5, %v609_v41  ;;  %v654_v46 = vsel %vm556_vm0, %v638_v42, 0.0  ;;  %v660_v49 = vsel %vm556_vm0, %v640_v43, 0.0 }
  0xaa   : > { %655 = vadd.xlane.f32.xlu0 %v654_v46  ;;  %v571_v47 = vpop.xlane.xlu0 %570  ;;  %v574_v48 = vpop.xlane.xlu1 %573 }
  0xab   : > { %v610_v50 = vmul.f32 0.03125, %v571_v47  ;;  %v611_v51 = vmul.f32 0.03125, %v574_v48  ;;  %v639_v52 = vmul.f32 %v5400_v44, %v5400_v44  ;;  %v641_v53 = vmul.f32 %v5402_v45, %v5402_v45 }
  0xad   : > { %v5411_v54 = vsub.f32 %v5334_v6, %v610_v50  ;;  %v5413_v55 = vsub.f32 %v543_v9, %v611_v51  ;;  %v657_v56 = vsel %vm556_vm0, %v639_v52, 0.0  ;;  %v663_v59 = vsel %vm556_vm0, %v641_v53, 0.0  ;;  %v4773_v53 = vld [vmem:[%s7402_s1 + $0x8] sm:$0xff]  }
  0xae   : > { %661 = vadd.xlane.f32.xlu0 %v660_v49  ;;  %658 = vadd.xlane.f32.xlu1 %v657_v56  ;;  %v577_v57 = vpop.xlane.xlu0 %576  ;;  %v580_v58 = vpop.xlane.xlu1 %579 }
  0xaf   : > { %v612_v60 = vmul.f32 0.03125, %v577_v57  ;;  %v613_v61 = vmul.f32 0.03125, %v580_v58  ;;  %v642_v62 = vmul.f32 %v5411_v54, %v5411_v54  ;;  %v643_v63 = vmul.f32 %v5413_v55, %v5413_v55 }
  0xb1   : > { %v5422_v0 = vsub.f32 %v5343_v12, %v612_v60  ;;  %v5425_v1 = vsub.f32 %v5346_v13, %v613_v61  ;;  %v666_v2 = vsel %vm556_vm0, %v642_v62, 0.0  ;;  %v669_v5 = vsel %vm556_vm0, %v643_v63, 0.0 }
  0xb2   : > { %664 = vadd.xlane.f32.xlu1 %v663_v59  ;;  %667 = vadd.xlane.f32.xlu0 %v666_v2  ;;  %v583_v3 = vpop.xlane.xlu0 %582  ;;  %v586_v4 = vpop.xlane.xlu1 %585 }
  0xb3   : > { %v614_v6 = vmul.f32 0.03125, %v583_v3  ;;  %v615_v7 = vmul.f32 0.03125, %v586_v4  ;;  %v644_v8 = vmul.f32 %v5422_v0, %v5422_v0  ;;  %v645_v9 = vmul.f32 %v5425_v1, %v5425_v1 }
  0xb5   : > { %v5434_v10 = vsub.f32 %v5353_v16, %v614_v6  ;;  %v5437_v11 = vsub.f32 %v5356_v17, %v615_v7  ;;  %v672_v12 = vsel %vm556_vm0, %v644_v8, 0.0  ;;  %v675_v15 = vsel %vm556_vm0, %v645_v9, 0.0 }
  0xb6   : > { %670 = vadd.xlane.f32.xlu1 %v669_v5  ;;  %673 = vadd.xlane.f32.xlu0 %v672_v12  ;;  %v589_v13 = vpop.xlane.xlu0 %588  ;;  %v592_v14 = vpop.xlane.xlu1 %591 }
  0xb7   : > { %v616_v18 = vmul.f32 0.03125, %v589_v13  ;;  %v617_v19 = vmul.f32 0.03125, %v592_v14  ;;  %v646_v22 = vmul.f32 %v5434_v10, %v5434_v10  ;;  %v647_v16 = vmul.f32 %v5437_v11, %v5437_v11 }
  0xb9   : > { %v5446_v23 = vsub.f32 %v5363_v20, %v616_v18  ;;  %v5449_v17 = vsub.f32 %v5366_v21, %v617_v19  ;;  %v678_v26 = vsel %vm556_vm0, %v646_v22, 0.0  ;;  %v681_v31 = vsel %vm556_vm0, %v647_v16, 0.0 }
  0xba   : > { %676 = vadd.xlane.f32.xlu1 %v675_v15  ;;  %679 = vadd.xlane.f32.xlu0 %v678_v26  ;;  %v595_v27 = vpop.xlane.xlu0 %594  ;;  %v598_v30 = vpop.xlane.xlu1 %597 }
  0xbb   : > { %v618_v32 = vmul.f32 0.03125, %v595_v27  ;;  %v619_v33 = vmul.f32 0.03125, %v598_v30  ;;  %v648_v34 = vmul.f32 %v5446_v23, %v5446_v23  ;;  %v649_v20 = vmul.f32 %v5449_v17, %v5449_v17 }
  0xbd   : > { %v5458_v35 = vsub.f32 %v5373_v24, %v618_v32  ;;  %v5461_v21 = vsub.f32 %v5376_v25, %v619_v33  ;;  %v684_v38 = vsel %vm556_vm0, %v648_v34, 0.0  ;;  %v687_v41 = vsel %vm556_vm0, %v649_v20, 0.0 }
  0xbe   : > { %682 = vadd.xlane.f32.xlu1 %v681_v31  ;;  %685 = vadd.xlane.f32.xlu0 %v684_v38  ;;  %v601_v39 = vpop.xlane.xlu0 %600  ;;  %v604_v40 = vpop.xlane.xlu1 %603  ;;  %v5493_v31 = vld [vmem:[%s7406_s5] ss:$0 sm:$0xff] }
  0xbf   : > { %v620_v42 = vmul.f32 0.03125, %v601_v39  ;;  %v621_v43 = vmul.f32 0.03125, %v604_v40  ;;  %v650_v46 = vmul.f32 %v5458_v35, %v5458_v35  ;;  %v651_v24 = vmul.f32 %v5461_v21, %v5461_v21 }
  0xc1   : > { %v5470_v47 = vsub.f32 %v5383_v28, %v620_v42  ;;  %v5473_v25 = vsub.f32 %v5386_v29, %v621_v43  ;;  %v690_v48 = vsel %vm556_vm0, %v650_v46, 0.0  ;;  %v693_v49 = vsel %vm556_vm0, %v651_v24, 0.0  ;;  %v4772_v29 = vld [vmem:[%s7402_s1] sm:$0xff]  }
  0xc2   : > { %688 = vadd.xlane.f32.xlu1 %v687_v41  ;;  %691 = vadd.xlane.f32.xlu0 %v690_v48  ;;  %v5500_v43 = vld [vmem:[%s7407_s6] ss:$0 sm:$0xff] }
  0xc3   : > { %v652_v50 = vmul.f32 %v5470_v47, %v5470_v47  ;;  %v653_v51 = vmul.f32 %v5473_v25, %v5473_v25  ;;  %4338 = vmatprep.subr.bf16.mxu0 %v4772_v29 }
  0xc4   : > { %4339 = vmatpush3.bf16.msra.mxu0 %v4772_v29 }
  0xc5   : > { %v696_v52 = vsel %vm556_vm0, %v652_v50, 0.0  ;;  %v699_v28 = vsel %vm556_vm0, %v653_v51, 0.0  ;;  %4340 = vmatprep.subr.bf16.mxu0 %v4773_v53 }
  0xc6   : > { %694 = vadd.xlane.f32.xlu1 %v693_v49  ;;  %697 = vadd.xlane.f32.xlu0 %v696_v52 }
  0xc8   : > { %4341 = vmatpush3.bf16.msra.mxu0 %v4773_v53 }
  0xca   : > { %700 = vadd.xlane.f32.xlu1 %v699_v28 }
 0x137   : > { %v656_v56 = vpop.xlane.xlu0 %655 }
 0x138   : > { %v702_v57 = vmul.f32 0.03125, %v656_v56 }
 0x13a   : > { %v718_v58 = vadd.f32 1e-12, %v702_v57 }
 0x13b   : > { %v659_v59 = vpop.xlane.xlu1 %658  ;;  %v662_v60 = vpop.xlane.xlu0 %661 }
 0x13c   : > { %4786 = vrsqrt.f32 %v718_v58  ;;  %v703_v61 = vmul.f32 0.03125, %v659_v59  ;;  %v704_v62 = vmul.f32 0.03125, %v662_v60 }
 0x13e   : > { %v719_v63 = vadd.f32 1e-12, %v703_v61  ;;  %v720_v2 = vadd.f32 1e-12, %v704_v62 }
 0x13f   : > { %v665_v3 = vpop.xlane.xlu1 %664  ;;  %v668_v4 = vpop.xlane.xlu0 %667 }
 0x140   : > { %4788 = vrsqrt.f32 %v719_v63  ;;  %v705_v5 = vmul.f32 0.03125, %v665_v3  ;;  %v706_v6 = vmul.f32 0.03125, %v668_v4 }
 0x141   : > { %4790 = vrsqrt.f32 %v720_v2 }
 0x142   : > { %v721_v7 = vadd.f32 1e-12, %v705_v5  ;;  %v722_v8 = vadd.f32 1e-12, %v706_v6 }
 0x143   : > { %v671_v9 = vpop.xlane.xlu1 %670  ;;  %v674_v12 = vpop.xlane.xlu0 %673 }
 0x144   : > { %4792 = vrsqrt.f32 %v721_v7  ;;  %v707_v13 = vmul.f32 0.03125, %v671_v9  ;;  %v708_v14 = vmul.f32 0.03125, %v674_v12 }
 0x145   : > { %4794 = vrsqrt.f32 %v722_v8 }
 0x146   : > { %v4787_v15 = vpop.eup %4786  ;;  %v723_v18 = vadd.f32 1e-12, %v707_v13  ;;  %v724_v19 = vadd.f32 1e-12, %v708_v14 }
 0x147   : > { %v677_v22 = vpop.xlane.xlu1 %676  ;;  %v680_v16 = vpop.xlane.xlu0 %679  ;;  %v750_v26 = vmul.f32 %v4787_v15, %v5392_v36 }
 0x148   : > { %4796 = vrsqrt.f32 %v723_v18  ;;  %v709_v27 = vmul.f32 0.03125, %v677_v22  ;;  %v710_v30 = vmul.f32 0.03125, %v680_v16 }
 0x149   : > { %4798 = vrsqrt.f32 %v724_v19  ;;  %v772_v41 = vmul.f32 %v5493_v31, %v750_v26 }
 0x14a   : > { %v4789_v32 = vpop.eup %4788  ;;  %v725_v33 = vadd.f32 1e-12, %v709_v27  ;;  %v726_v34 = vadd.f32 1e-12, %v710_v30 }
 0x14b   : > { %v4791_v20 = vpop.eup %4790  ;;  %v683_v38 = vpop.xlane.xlu1 %682  ;;  %v751_v40 = vmul.f32 %v4789_v32, %v5400_v44  ;;  %v794_v28 = vadd.f32 %v5500_v43, %v772_v41 }
 0x14c   : > { %v686_v39 = vpop.xlane.xlu0 %685  ;;  %4800 = vrsqrt.f32 %v725_v33  ;;  %v711_v36 = vmul.f32 0.03125, %v683_v38  ;;  %v752_v46 = vmul.f32 %v4791_v20, %v5394_v37 }
 0x14d   : > { %v712_v42 = vmul.f32 0.03125, %v686_v39  ;;  %4802 = vrsqrt.f32 %v726_v34  ;;  %v773_v24 = vmul.f32 %v5493_v31, %v751_v40 }
 0x14e   : > { %v4793_v48 = vpop.eup %4792  ;;  %v727_v49 = vadd.f32 1e-12, %v711_v36  ;;  %v774_v56 = vmul.f32 %v5493_v31, %v752_v46 }
 0x14f   : > { %v728_v50 = vadd.f32 1e-12, %v712_v42  ;;  %v4795_v51 = vpop.eup %4794  ;;  %v689_v44 = vpop.xlane.xlu1 %688  ;;  %v795_v29 = vadd.f32 %v5500_v43, %v773_v24  ;;  %v753_v53 = vmul.f32 %v4793_v48, %v5402_v45 }
 0x150   : > { %v692_v52 = vpop.xlane.xlu0 %691  ;;  %4804 = vrsqrt.f32 %v727_v49  ;;  %v713_v57 = vmul.f32 0.03125, %v689_v44  ;;  %v754_v60 = vmul.f32 %v4795_v51, %v5411_v54  ;;  %v796_v45 = vadd.f32 %v5500_v43, %v774_v56 }
 0x151   : > { %v714_v37 = vmul.f32 0.03125, %v692_v52  ;;  %4806 = vrsqrt.f32 %v728_v50  ;;  %v810_v58 = vpack.c.bf16 %v795_v29, %v794_v28  ;;  %v775_v59 = vmul.f32 %v5493_v31, %v753_v53 }
 0x152   : > { %v4797_v61 = vpop.eup %4796  ;;  %v729_v62 = vadd.f32 1e-12, %v713_v57  ;;  %v776_v7 = vmul.f32 %v5493_v31, %v754_v60 }
 0x153   : > { %v730_v63 = vadd.f32 1e-12, %v714_v37  ;;  %v4799_v2 = vpop.eup %4798  ;;  %v695_v3 = vpop.xlane.xlu1 %694  ;;  %4342 = vmatprep.mubr.msk.bf16.mxu0 %vm556_vm0, %v810_v58  ;;  %v797_v5 = vadd.f32 %v5500_v43, %v775_v59  ;;  %v755_v6 = vmul.f32 %v4797_v61, %v5413_v55 }
 0x154   : > { %v698_v4 = vpop.xlane.xlu0 %697  ;;  %4808 = vrsqrt.f32 %v729_v62  ;;  %v715_v8 = vmul.f32 0.03125, %v695_v3  ;;  %v756_v54 = vmul.f32 %v4799_v2, %v5422_v0  ;;  %v798_v55 = vadd.f32 %v5500_v43, %v776_v7 }
 0x155   : > { %v716_v9 = vmul.f32 0.03125, %v698_v4  ;;  %4810 = vrsqrt.f32 %v730_v63  ;;  %v811_v12 = vpack.c.bf16 %v797_v5, %v796_v45  ;;  %v777_v13 = vmul.f32 %v5493_v31, %v755_v6  ;;  %v4068_v45 = vld [vmem:[%s7403_s2] ss:$0 sm:$0xff] }
 0x156   : > { %v4801_v14 = vpop.eup %4800  ;;  %v731_v15 = vadd.f32 1e-12, %v715_v8  ;;  %v778_v27 = vmul.f32 %v5493_v31, %v756_v54 }
 0x157   : > { %v732_v18 = vadd.f32 1e-12, %v716_v9  ;;  %v4803_v19 = vpop.eup %4802  ;;  %v701_v22 = vpop.xlane.xlu1 %700  ;;  %4343 = vmatmul.mubr.msk.bf16.vlgmr.msra.gmra.mrb[0].mxu0 %vm556_vm0, %v811_v12  ;;  %v799_v16 = vadd.f32 %v5500_v43, %v777_v13  ;;  %v757_v26 = vmul.f32 %v4801_v14, %v5425_v1 }
 0x158   : > { %4812 = vrsqrt.f32 %v731_v15  ;;  %v717_v0 = vmul.f32 0.03125, %v701_v22  ;;  %v758_v30 = vmul.f32 %v4803_v19, %v5434_v10  ;;  %v800_v39 = vadd.f32 %v5500_v43, %v778_v27 }
 0x159   : > { %4814 = vrsqrt.f32 %v732_v18  ;;  %v812_v32 = vpack.c.bf16 %v799_v16, %v798_v55  ;;  %v779_v33 = vmul.f32 %v5493_v31, %v757_v26 }
 0x15a   : > { %v4805_v34 = vpop.eup %4804  ;;  %v733_v20 = vadd.f32 1e-12, %v717_v0  ;;  %v780_v41 = vmul.f32 %v5493_v31, %v758_v30 }
 0x15b   : > { %v4807_v38 = vpop.eup %4806  ;;  %4346 = vmatprep.mubr.msk.bf16.mxu0 %vm556_vm0, %v812_v32  ;;  %v801_v40 = vadd.f32 %v5500_v43, %v779_v33  ;;  %v759_v1 = vmul.f32 %v4805_v34, %v5437_v11 }
 0x15c   : > { %4816 = vrsqrt.f32 %v733_v20  ;;  %v760_v10 = vmul.f32 %v4807_v38, %v5446_v23  ;;  %v802_v48 = vadd.f32 %v5500_v43, %v780_v41 }
 0x15d   : > { %v813_v36 = vpack.c.bf16 %v801_v40, %v800_v39  ;;  %v781_v42 = vmul.f32 %v5493_v31, %v759_v1 }
 0x15e   : > { %v4809_v46 = vpop.eup %4808  ;;  %v782_v11 = vmul.f32 %v5493_v31, %v760_v10 }
 0x15f   : > { %v4811_v24 = vpop.eup %4810  ;;  %4347 = vmatmul.mubr.msk.bf16.gmra.mrb[4].mxu0 %vm556_vm0, %v813_v36  ;;  %v803_v49 = vadd.f32 %v5500_v43, %v781_v42  ;;  %v761_v50 = vmul.f32 %v4809_v46, %v5449_v17 }
 0x160   : > { %v762_v51 = vmul.f32 %v4811_v24, %v5458_v35  ;;  %v804_v29 = vadd.f32 %v5500_v43, %v782_v11 }
 0x161   : > { %v814_v44 = vpack.c.bf16 %v803_v49, %v802_v48  ;;  %v783_v23 = vmul.f32 %v5493_v31, %v761_v50 }
 0x162   : > { %v4813_v52 = vpop.eup %4812  ;;  %v784_v57 = vmul.f32 %v5493_v31, %v762_v51 }
 0x163   : > { %v4815_v28 = vpop.eup %4814  ;;  %4350 = vmatprep.mubr.msk.bf16.mxu0 %vm556_vm0, %v814_v44  ;;  %v805_v53 = vadd.f32 %v5500_v43, %v783_v23  ;;  %v763_v56 = vmul.f32 %v4813_v52, %v5461_v21 }
 0x164   : > { %v764_v17 = vmul.f32 %v4815_v28, %v5470_v47  ;;  %v806_v59 = vadd.f32 %v5500_v43, %v784_v57 }
 0x165   : > { %v815_v37 = vpack.c.bf16 %v805_v53, %v804_v29  ;;  %v785_v35 = vmul.f32 %v5493_v31, %v763_v56 }
 0x166   : > { %v4817_v58 = vpop.eup %4816  ;;  %v786_v62 = vmul.f32 %v5493_v31, %v764_v17 }
 0x167   : > { %4351 = vmatmul.mubr.msk.bf16.gmra.mrb[8].mxu0 %vm556_vm0, %v815_v37  ;;  %v807_v60 = vadd.f32 %v5500_v43, %v785_v35  ;;  %v765_v61 = vmul.f32 %v4817_v58, %v5473_v25 }
 0x168   : > { %v808_v47 = vadd.f32 %v5500_v43, %v786_v62 }
 0x169   : > { %v816_v63 = vpack.c.bf16 %v807_v60, %v806_v59  ;;  %v787_v21 = vmul.f32 %v5493_v31, %v765_v61 }
 0x16b   : > { %4354 = vmatprep.mubr.msk.bf16.mxu0 %vm556_vm0, %v816_v63  ;;  %v809_v2 = vadd.f32 %v5500_v43, %v787_v21 }
 0x16d   : > { %v817_v3 = vpack.c.bf16 %v809_v2, %v808_v47 }
 0x16f   : > { %4355 = vmatmul.mubr.msk.bf16.gmra.mrb[12].mxu0 %vm556_vm0, %v817_v3 }
 0x22a   : > { %v4344_v4 = vpop.f32.mrb[0].mxu0 }
 0x22b   : > { %v899_v25 = vpop.f32.mrb[1].mxu0  ;;  %v908_v6 = vadd.f32 %v4344_v4, %v4068_v45 }
 0x22c   : > { %v4345_v5 = vpop.f32.mrb[2].mxu0  ;;  %v900_v31 = vadd.f32 %v4068_v45, %v899_v25 }
 0x22d   : > { %v911_v7 = vadd.f32 %v4345_v5, %v4068_v45  ;;  %v902_v8 = vpop.f32.mrb[3].mxu0 }
 0x22e   : > { %v903_v9 = vadd.f32 %v4068_v45, %v902_v8 }
 0x22f   : > { %v5558_v54 = vpack.c.bf16 %v911_v7, %v908_v6  ;;  %v5649_v6 = vld [vmem:[%s7410_s9 + $0x10] sm:$0xff] }
 0x230   : > { %v5560_v12 = vpack.c.bf16 %v903_v9, %v900_v31  ;;  %v5657_v9 = vld [vmem:[%s7410_s9 + $0x8] sm:$0xff] }
 0x231   : > { %996 = vrot.lane.b32.xlu1 %v5558_v54, %s5210_s21 }
 0x232   : > { %994 = vrot.lane.b32.xlu0 %v5560_v12, %s5210_s21  ;;  %v4348_v43 = vpop.f32.mrb[4].mxu0  ;;  %4374 = vmatprep.mubr.msk.bf16.mxu1 %vm1010_vm1, %v5560_v12 }
 0x233   : > { %v915_v13 = vpop.f32.mrb[5].mxu0  ;;  %v924_v15 = vadd.f32 %v4348_v43, %v4068_v45  ;;  %v5662_v43 = vld [vmem:[%s7410_s9] sm:$0xff] }
 0x234   : > { %v4349_v14 = vpop.f32.mrb[6].mxu0  ;;  %v916_v22 = vadd.f32 %v4068_v45, %v915_v13 }
 0x235   : > { %v927_v18 = vadd.f32 %v4349_v14, %v4068_v45  ;;  %v918_v19 = vpop.f32.mrb[7].mxu0 }
 0x236   : > { %v919_v55 = vadd.f32 %v4068_v45, %v918_v19  ;;  %v5674_v19 = vld [vmem:[%s7410_s9 + $0x18] sm:$0xff] }
 0x237   : > { %v5568_v16 = vpack.c.bf16 %v927_v18, %v924_v15 }
 0x238   : > { %v5570_v26 = vpack.c.bf16 %v919_v55, %v916_v22  ;;  %v5680_v22 = vld [vmem:[%s7410_s9 + $0x30] sm:$0xff] }
 0x23a   : > { %998 = vrot.lane.b32.xlu1 %v5570_v26, %s5210_s21  ;;  %v4352_v27 = vpop.f32.mrb[8].mxu0 }
 0x23b   : > { %v931_v0 = vpop.f32.mrb[9].mxu0  ;;  %v940_v32 = vadd.f32 %v4352_v27, %v4068_v45 }
 0x23c   : > { %v4353_v30 = vpop.f32.mrb[10].mxu0  ;;  %v932_v20 = vadd.f32 %v4068_v45, %v931_v0 }
 0x23d   : > { %v943_v33 = vadd.f32 %v4353_v30, %v4068_v45  ;;  %v934_v34 = vpop.f32.mrb[11].mxu0 }
 0x23e   : > { %v935_v38 = vadd.f32 %v4068_v45, %v934_v34  ;;  %1000 = vrot.lane.b32.xlu1 %v5568_v16, %s5210_s21 }
 0x23f   : > { %v5576_v39 = vpack.c.bf16 %v943_v33, %v940_v32  ;;  %v5692_v32 = vld [vmem:[%s7410_s9 + $0x28] sm:$0xff]  ;;  %v5697_v33 = vld [vmem:[%s7410_s9 + $0x20] sm:$0xff] }
 0x240   : > { %v5578_v40 = vpack.c.bf16 %v935_v38, %v932_v20 }
 0x242   : > { %1004 = vrot.lane.b32.xlu1 %v5576_v39, %s5210_s21  ;;  %1002 = vrot.lane.b32.xlu0 %v5578_v40, %s5210_s21  ;;  %v4356_v1 = vpop.f32.mrb[12].mxu0 }
 0x243   : > { %v947_v41 = vpop.f32.mrb[13].mxu0  ;;  %v956_v36 = vadd.f32 %v4356_v1, %v4068_v45 }
 0x244   : > { %v4357_v10 = vpop.f32.mrb[14].mxu0  ;;  %v948_v24 = vadd.f32 %v4068_v45, %v947_v41  ;;  %v5710_v41 = vld [vmem:[%s7410_s9 + $0x38] sm:$0xff] }
 0x245   : > { %v959_v42 = vadd.f32 %v4357_v10, %v4068_v45  ;;  %v950_v46 = vpop.f32.mrb[15].mxu0  ;;  %v5715_v10 = vld [vmem:[%s7410_s9 + $0x50] sm:$0xff] }
 0x246   : > { %v951_v48 = vadd.f32 %v4068_v45, %v950_v46 }
 0x247   : > { %v5584_v49 = vpack.c.bf16 %v959_v42, %v956_v36 }
 0x248   : > { %v5586_v50 = vpack.c.bf16 %v951_v48, %v948_v24  ;;  %v5728_v48 = vld [vmem:[%s7410_s9 + $0x40] sm:$0xff] }
 0x249   : > { %1008 = vrot.lane.b32.xlu1 %v5584_v49, %s5210_s21 }
 0x24a   : > { %1006 = vrot.lane.b32.xlu0 %v5586_v50, %s5210_s21  ;;  %s5215_s21 = smov 80  }
 0x24d   : > { %1278 = vrot.lane.b32.xlu1 %v5558_v54, %s5211_s22 }
 0x24e   : > { %1276 = vrot.lane.b32.xlu0 %v5560_v12, %s5211_s22 }
 0x251   : > { %1282 = vrot.lane.b32.xlu1 %v5568_v16, %s5211_s22 }
 0x252   : > { %1280 = vrot.lane.b32.xlu0 %v5570_v26, %s5211_s22 }
 0x255   : > { %1284 = vrot.lane.b32.xlu1 %v5578_v40, %s5211_s22 }
 0x256   : > { %1469 = vrot.lane.b32.xlu0 %v5560_v12, %s5212_s23 }
 0x259   : > { %1286 = vrot.lane.b32.xlu1 %v5576_v39, %s5211_s22 }
 0x25a   : > { %1471 = vrot.lane.b32.xlu0 %v5558_v54, %s5212_s23 }
 0x25d   : > { %1290 = vrot.lane.b32.xlu1 %v5584_v49, %s5211_s22 }
 0x25e   : > { %1475 = vrot.lane.b32.xlu0 %v5568_v16, %s5212_s23 }
 0x261   : > { %1473 = vrot.lane.b32.xlu1 %v5570_v26, %s5212_s23 }
 0x262   : > { %1288 = vrot.lane.b32.xlu0 %v5586_v50, %s5211_s22  ;;  %s5217_s22 = smov 48  }
 0x2a3   : > { %v997_v44 = vpop.permute.xlu1 %996 }
 0x2a4   : > { %v995_v11 = vpop.permute.xlu0 %994  ;;  %v1039_v52 = vsel %vm1010_vm1, %v997_v44, 0 }
 0x2a5   : > { %4702 = vmatprep.subr.msk.bf16.mxu1 %vm1010_vm1, %v995_v11  ;;  %v1036_v51 = vsel %vm1010_vm1, %v995_v11, 0 }
 0x2a6   : > { %4359 = vmatpush3.bf16.xpose.msra.mxu1 %v1036_v51 }
 0x2a7   : > { %4703 = vmatprep.subr.msk.bf16.mxu1 %vm1010_vm1, %v997_v44 }
 0x2ac   : > { %v999_v23 = vpop.permute.xlu1 %998 }
 0x2ad   : > { %v1042_v29 = vsel %vm1010_vm1, %v999_v23, 0 }
 0x2ae   : > { %4361 = vmatpush3.bf16.xpose.msra.mxu1 %v1039_v52  ;;  %v5744_v52 = vld [vmem:[%s7410_s9 + $0x60] sm:$0xff] }
 0x2af   : > { %4704 = vmatprep.subr.msk.bf16.mxu1 %vm1010_vm1, %v999_v23  ;;  %v5738_v23 = vld [vmem:[%s7410_s9 + $0x58] sm:$0xff] }
 0x2b0   : > { %v1001_v28 = vpop.permute.xlu1 %1000 }
 0x2b1   : > { %v1045_v37 = vsel %vm1010_vm1, %v1001_v28, 0 }
 0x2b4   : > { %v1005_v53 = vpop.permute.xlu1 %1004  ;;  %v1003_v56 = vpop.permute.xlu0 %1002 }
 0x2b5   : > { %v1048_v60 = vsel %vm1010_vm1, %v1003_v56, 0  ;;  %v1051_v47 = vsel %vm1010_vm1, %v1005_v53, 0 }
 0x2b6   : > { %4363 = vmatpush3.bf16.xpose.msra.mxu1 %v1042_v29 }
 0x2b7   : > { %4705 = vmatprep.subr.msk.bf16.mxu1 %vm1010_vm1, %v1001_v28 }
 0x2bb   : > { %v1009_v57 = vpop.permute.xlu1 %1008 }
 0x2bc   : > { %v1007_v17 = vpop.permute.xlu0 %1006  ;;  %v1057_v5 = vsel %vm1010_vm1, %v1009_v57, 0 }
 0x2bd   : > { %v1054_v4 = vsel %vm1010_vm1, %v1007_v17, 0 }
 0x2be   : > { %4365 = vmatpush3.bf16.xpose.msra.mxu1 %v1045_v37 }
 0x2bf   : > { %4706 = vmatprep.subr.msk.bf16.mxu1 %vm1010_vm1, %v1003_v56  ;;  %v1279_v35 = vpop.permute.xlu1 %1278  ;;  %v5752_v56 = vld [vmem:[%s7410_s9 + $0x48] sm:$0xff] }
 0x2c0   : > { %v1277_v58 = vpop.permute.xlu0 %1276 }
 0x2c1   : > { %4390 = vmatprep.subr.bf16.mxu0 %v1277_v58 }
 0x2c2   : > { %4391 = vmatpush3.bf16.msra.mxu0 %v1277_v58  ;;  %v5765_v58 = vld [vmem:[%s7410_s9 + $0x70] sm:$0xff] }
 0x2c3   : > { %4392 = vmatprep.subr.bf16.mxu0 %v1279_v35  ;;  %v1283_v61 = vpop.permute.xlu1 %1282 }
 0x2c4   : > { %v1281_v59 = vpop.permute.xlu0 %1280 }
 0x2c6   : > { %4367 = vmatpush3.bf16.xpose.msra.mxu1 %v1048_v60  ;;  %4393 = vmatpush3.bf16.msra.mxu0 %v1279_v35  ;;  %v5774_v60 = vld [vmem:[%s7410_s9 + $0x78] sm:$0xff] }
 0x2c7   : > { %4707 = vmatprep.subr.msk.bf16.mxu1 %vm1010_vm1, %v1005_v53  ;;  %4394 = vmatprep.subr.bf16.mxu0 %v1281_v59  ;;  %v1285_v63 = vpop.permute.xlu1 %1284 }
 0x2c8   : > { %v5619_v62 = vpop.permute.xlu0 %1469 }
 0x2ca   : > { %4395 = vmatpush3.bf16.msra.mxu0 %v1281_v59 }
 0x2cb   : > { %4396 = vmatprep.subr.bf16.mxu0 %v1283_v61  ;;  %v1287_v3 = vpop.permute.xlu1 %1286 }
 0x2cc   : > { %v5621_v21 = vpop.permute.xlu0 %1471 }
 0x2ce   : > { %4369 = vmatpush3.bf16.xpose.msra.mxu1 %v1051_v47  ;;  %4397 = vmatpush3.bf16.msra.mxu0 %v1283_v61 }
 0x2cf   : > { %4708 = vmatprep.subr.msk.bf16.mxu1 %vm1010_vm1, %v1007_v17  ;;  %4398 = vmatprep.subr.bf16.mxu0 %v1285_v63  ;;  %v1291_v25 = vpop.permute.xlu1 %1290 }
 0x2d0   : > { %v5625_v2 = vpop.permute.xlu0 %1475 }
 0x2d2   : > { %4399 = vmatpush3.bf16.msra.mxu0 %v1285_v63  ;;  %v5792_v63 = vld [vmem:[%s7410_s9 + $0x68] sm:$0xff] }
 0x2d3   : > { %4400 = vmatprep.subr.bf16.mxu0 %v1287_v3 }
 0x2d4   : > { %v1289_v45 = vpop.permute.xlu0 %1288 }
 0x2d6   : > { %4371 = vmatpush3.bf16.xpose.msra.mxu1 %v1054_v4  ;;  %4401 = vmatpush3.bf16.msra.mxu0 %v1287_v3  ;;  %v5818_v3 = vpop.permute.xlu1 %1473 }
 0x2d7   : > { %4709 = vmatprep.subr.msk.bf16.mxu1 %vm1010_vm1, %v1009_v57  ;;  %4402 = vmatprep.subr.bf16.mxu0 %v1289_v45 }
 0x2da   : > { %4403 = vmatpush3.bf16.msra.mxu0 %v1289_v45 }
 0x2db   : > { %4404 = vmatprep.subr.bf16.mxu0 %v1291_v25 }
 0x2de   : > { %4373 = vmatpush3.bf16.xpose.msra.mxu1 %v1057_v5  ;;  %4405 = vmatpush3.bf16.msra.mxu0 %v1291_v25 }
 0x2df   : > { %4710 = vmatprep.subr.msk.bf16.mxu0 %vm1010_vm1, %v5619_v62 }
 0x2e5   : > { %4375 = vmatmul.mubr.msk.bf16.vlgmr.msra.gmra.mrb[0].mxu1 %vm1010_vm1, %v5558_v54 }
 0x2e6   : > { %4378 = vmatprep.mubr.msk.bf16.mxu1 %vm1010_vm1, %v5570_v26 }
 0x2ed   : > { %4379 = vmatmul.mubr.msk.bf16.gmra.mrb[4].mxu1 %vm1010_vm1, %v5568_v16 }
 0x2ee   : > { %4382 = vmatprep.mubr.msk.bf16.mxu1 %vm1010_vm1, %v5578_v40 }
 0x2f5   : > { %4383 = vmatmul.mubr.msk.bf16.gmra.mrb[8].mxu1 %vm1010_vm1, %v5576_v39 }
 0x2f6   : > { %4386 = vmatprep.mubr.msk.bf16.mxu1 %vm1010_vm1, %v5586_v50 }
 0x2fd   : > { %4387 = vmatmul.mubr.msk.bf16.gmra.mrb[12].mxu1 %vm1010_vm1, %v5584_v49 }
 0x3b8   : > { %v4376_v7 = vpop.f32.mrb[0].mxu1 }
 0x3b9   : > { %v5652_v8 = vadd.f32 %v4376_v7, %v5649_v6  ;;  %v1093_v31 = vpop.f32.mrb[1].mxu1 }
 0x3ba   : > { %v4377_v13 = vpop.f32.mrb[2].mxu1  ;;  %v5669_v18 = vadd.f32 %v1093_v31, %v5662_v43 }
 0x3bb   : > { %1160 = vmax.xlane.f32.xlu0 %v5652_v8  ;;  %v1096_v14 = vpop.f32.mrb[3].mxu1  ;;  %v5684_v27 = vadd.f32 %v4377_v13, %v5674_v19 }
 0x3bc   : > { %v5666_v15 = vadd.f32 %v1096_v14, %v5657_v9 }
 0x3be   : > { %1158 = vmax.xlane.f32.xlu1 %v5666_v15 }
 0x3bf   : > { %1156 = vmax.xlane.f32.xlu0 %v5669_v18 }
 0x3c0   : > { %v4380_v55 = vpop.f32.mrb[4].mxu1 }
 0x3c1   : > { %v5687_v0 = vadd.f32 %v4380_v55, %v5680_v22  ;;  %v1109_v30 = vpop.f32.mrb[5].mxu1 }
 0x3c2   : > { %v4381_v34 = vpop.f32.mrb[6].mxu1  ;;  %v5705_v1 = vadd.f32 %v1109_v30, %v5697_v33 }
 0x3c3   : > { %v1112_v20 = vpop.f32.mrb[7].mxu1  ;;  %1168 = vmax.xlane.f32.xlu1 %v5687_v0  ;;  %1162 = vmax.xlane.f32.xlu0 %v5684_v27  ;;  %v5720_v42 = vadd.f32 %v4381_v34, %v5710_v41 }
 0x3c4   : > { %v5702_v38 = vadd.f32 %v1112_v20, %v5692_v32 }
 0x3c7   : > { %1164 = vmax.xlane.f32.xlu1 %v5705_v1  ;;  %1166 = vmax.xlane.f32.xlu0 %v5702_v38 }
 0x3c8   : > { %v4384_v36 = vpop.f32.mrb[8].mxu1 }
 0x3c9   : > { %v5723_v46 = vadd.f32 %v4384_v36, %v5715_v10  ;;  %v1125_v24 = vpop.f32.mrb[9].mxu1 }
 0x3ca   : > { %v4385_v11 = vpop.f32.mrb[10].mxu1  ;;  %v5733_v44 = vadd.f32 %v1125_v24, %v5728_v48 }
 0x3cb   : > { %v1128_v51 = vpop.f32.mrb[11].mxu1  ;;  %1170 = vmax.xlane.f32.xlu1 %v5720_v42  ;;  %1176 = vmax.xlane.f32.xlu0 %v5723_v46  ;;  %v5747_v29 = vadd.f32 %v4385_v11, %v5738_v23 }
 0x3cc   : > { %v5760_v35 = vadd.f32 %v1128_v51, %v5752_v56 }
 0x3cf   : > { %1172 = vmax.xlane.f32.xlu1 %v5733_v44 }
 0x3d0   : > { %v4388_v28 = vpop.f32.mrb[12].mxu1 }
 0x3d1   : > { %v1141_v53 = vpop.f32.mrb[13].mxu1  ;;  %v5769_v59 = vadd.f32 %v4388_v28, %v5765_v58 }
 0x3d2   : > { %v5755_v57 = vadd.f32 %v1141_v53, %v5744_v52  ;;  %v4389_v17 = vpop.f32.mrb[14].mxu1 }
 0x3d3   : > { %v1144_v37 = vpop.f32.mrb[15].mxu1  ;;  %1178 = vmax.xlane.f32.xlu1 %v5747_v29  ;;  %v5778_v61 = vadd.f32 %v4389_v17, %v5774_v60 }
 0x3d4   : > { %1180 = vmax.xlane.f32.xlu0 %v5755_v57  ;;  %v5796_v47 = vadd.f32 %v1144_v37, %v5792_v63 }
 0x3d7   : > { %1174 = vmax.xlane.f32.xlu1 %v5760_v35 }
 0x3db   : > { %1184 = vmax.xlane.f32.xlu1 %v5769_v59 }
 0x3df   : > { %1186 = vmax.xlane.f32.xlu1 %v5778_v61 }
 0x3ea   : > { %1479 = vrot.lane.b32.xlu0 %v5576_v39, %s5212_s23 }
 0x3f0   : > { %1477 = vrot.lane.b32.xlu1 %v5578_v40, %s5212_s23 }
 0x3f4   : > { %1455 = vrot.lane.b32.xlu1 %v5558_v54, %s5213_s27 }
 0x3f8   : > { %1459 = vrot.lane.b32.xlu1 %v5568_v16, %s5213_s27 }
 0x3fc   : > { %1463 = vrot.lane.b32.xlu1 %v5576_v39, %s5213_s27 }
 0x400   : > { %1467 = vrot.lane.b32.xlu1 %v5584_v49, %s5213_s27 }
 0x404   : > { %1752 = vrot.lane.b32.xlu1 %v5558_v54, %s5214_s19 }
 0x408   : > { %1756 = vrot.lane.b32.xlu1 %v5568_v16, %s5214_s19 }
 0x409   : > { %1182 = vmax.xlane.f32.xlu0 %v5796_v47 }
 0x40c   : > { %1758 = vrot.lane.b32.xlu1 %v5578_v40, %s5214_s19 }
 0x410   : > { %1760 = vrot.lane.b32.xlu1 %v5576_v39, %s5214_s19 }
 0x414   : > { %1764 = vrot.lane.b32.xlu1 %v5584_v49, %s5214_s19 }
 0x418   : > { %1947 = vrot.lane.b32.xlu1 %v5570_v26, %s5215_s21 }
 0x41f   : > { %1481 = vrot.lane.b32.xlu0 %v5586_v50, %s5212_s23 }
 0x423   : > { %1483 = vrot.lane.b32.xlu0 %v5584_v49, %s5212_s23  ;;  %s5216_s23 = smov 112  }
 0x427   : > { %1453 = vrot.lane.b32.xlu0 %v5560_v12, %s5213_s27 }
 0x42b   : > { %1457 = vrot.lane.b32.xlu0 %v5570_v26, %s5213_s27 }
 0x42f   : > { %1461 = vrot.lane.b32.xlu0 %v5578_v40, %s5213_s27 }
 0x433   : > { %1465 = vrot.lane.b32.xlu0 %v5586_v50, %s5213_s27 }
 0x437   : > { %1750 = vrot.lane.b32.xlu0 %v5560_v12, %s5214_s19 }
 0x43b   : > { %1754 = vrot.lane.b32.xlu0 %v5570_v26, %s5214_s19 }
 0x43f   : > { %1762 = vrot.lane.b32.xlu0 %v5586_v50, %s5214_s19 }
 0x443   : > { %1943 = vrot.lane.b32.xlu0 %v5560_v12, %s5215_s21 }
 0x447   : > { %1945 = vrot.lane.b32.xlu0 %v5558_v54, %s5215_s21 }
 0x448   : > { %v1161_v4 = vpop.xlane.xlu0 %1160 }
 0x449   : > { %v1190_v7 = vsub.f32 %v5652_v8, %v1161_v4 }
 0x44b   : > { %v1159_v45 = vpop.xlane.xlu1 %1158  ;;  %1949 = vrot.lane.b32.xlu0 %v5568_v16, %s5215_s21  ;;  %v1208_v34 = vmul.f32 1.442695, %v1190_v7 }
 0x44c   : > { %v1189_v25 = vsub.f32 %v5666_v15, %v1159_v45  ;;  %v1157_v5 = vpop.xlane.xlu0 %1156 }
 0x44d   : > { %v1188_v31 = vsub.f32 %v5669_v18, %v1157_v5 }
 0x44e   : > { %v1206_v13 = vmul.f32 1.442695, %v1189_v25 }
 0x44f   : > { %v1204_v14 = vmul.f32 1.442695, %v1188_v31 }
 0x450   : > { %4818 = vpow2.f32 %v1206_v13  ;;  %v1169_v55 = vpop.xlane.xlu1 %1168  ;;  %v1163_v30 = vpop.xlane.xlu0 %1162 }
 0x451   : > { %4820 = vpow2.f32 %v1204_v14  ;;  %v1191_v20 = vsub.f32 %v5684_v27, %v1163_v30  ;;  %v1194_v24 = vsub.f32 %v5687_v0, %v1169_v55 }
 0x452   : > { %4822 = vpow2.f32 %v1208_v34  ;;  %v1510_v34 = vsel %vm1010_vm1, %v5619_v62, 0 }
 0x453   : > { %v1210_v36 = vmul.f32 1.442695, %v1191_v20  ;;  %v1216_v53 = vmul.f32 1.442695, %v1194_v24 }
 0x454   : > { %v1165_v11 = vpop.xlane.xlu1 %1164  ;;  %v1167_v51 = vpop.xlane.xlu0 %1166 }
 0x455   : > { %v1192_v15 = vsub.f32 %v5705_v1, %v1165_v11  ;;  %v1193_v8 = vsub.f32 %v5702_v38, %v1167_v51  ;;  %4824 = vpow2.f32 %v1210_v36 }
 0x457   : > { %v1212_v18 = vmul.f32 1.442695, %v1192_v15  ;;  %v1214_v28 = vmul.f32 1.442695, %v1193_v8 }
 0x458   : > { %v1171_v17 = vpop.xlane.xlu1 %1170  ;;  %v1177_v25 = vpop.xlane.xlu0 %1176 }
 0x459   : > { %4826 = vpow2.f32 %v1212_v18  ;;  %v1195_v37 = vsub.f32 %v5720_v42, %v1171_v17  ;;  %v1198_v14 = vsub.f32 %v5723_v46, %v1177_v25  ;;  %v1516_v17 = vsel %vm1010_vm1, %v5818_v3, 0 }
 0x45a   : > { %v5832_v4 = vpop.eup %4818  ;;  %4828 = vpow2.f32 %v1214_v28 }
 0x45b   : > { %7438 = vst [vmem:[#allocation3_spill] sm:$0xff] %v5832_v4  ;;  %v5834_v27 = vpop.eup %4820  ;;  %v1218_v0 = vmul.f32 1.442695, %v1195_v37  ;;  %4830 = vpow2.f32 %v1216_v53  ;;  %v1224_v11 = vmul.f32 1.442695, %v1198_v14 }
 0x45c   : > { %7439 = vst [vmem:[#allocation4_spill] sm:$0xff] %v5834_v27  ;;  %v1173_v45 = vpop.xlane.xlu1 %1172  ;;  %v1268_v1 = vpack.c.bf16 %v5832_v4, %v5834_v27  ;;  %v5838_v38 = vpop.eup %4822 }
 0x45d   : > { %4832 = vpow2.f32 %v1218_v0  ;;  %7440 = vst [vmem:[#allocation5_spill] sm:$0xff] %v5838_v38  ;;  %v1196_v5 = vsub.f32 %v5733_v44, %v1173_v45 }
 0x45e   : > { %4406 = vmatprep.mubr.bf16.mxu0 %v1268_v1  ;;  %v1519_v1 = vsel %vm1010_vm1, %v5625_v2, 0 }
 0x45f   : > { %v5841_v7 = vpop.eup %4824  ;;  %v1220_v30 = vmul.f32 1.442695, %v1196_v5 }
 0x460   : > { %7441 = vst [vmem:[#allocation6_spill] sm:$0xff] %v5841_v7  ;;  %v1179_v42 = vpop.xlane.xlu1 %1178  ;;  %v1269_v13 = vpack.c.bf16 %v5841_v7, %v5838_v38 }
 0x461   : > { %v1199_v31 = vsub.f32 %v5747_v29, %v1179_v42  ;;  %4834 = vpow2.f32 %v1220_v30 }
 0x462   : > { %4407 = vmatmul.mubr.bf16.vlgmr.msra.gmra.mrb[16].mxu0 %v1269_v13 }
 0x463   : > { %v5847_v55 = vpop.eup %4826  ;;  %v1226_v44 = vmul.f32 1.442695, %v1199_v31  ;;  %4423 = vmatpush3.bf16.xpose.msra.mxu0 %v1510_v34 }
 0x464   : > { %7442 = vst [vmem:[#allocation7_spill] sm:$0xff] %v5847_v55  ;;  %v5851_v20 = vpop.eup %4828  ;;  %v1175_v36 = vpop.xlane.xlu1 %1174  ;;  %4711 = vmatprep.subr.msk.bf16.mxu0 %vm1010_vm1, %v5621_v21 }
 0x465   : > { %7443 = vst [vmem:[#allocation8_spill] sm:$0xff] %v5851_v20  ;;  %v1197_v29 = vsub.f32 %v5760_v35, %v1175_v36  ;;  %v1270_v46 = vpack.c.bf16 %v5851_v20, %v5847_v55  ;;  %v5858_v24 = vpop.eup %4830  ;;  %4836 = vpow2.f32 %v1226_v44  ;;  %v1513_v35 = vsel %vm1010_vm1, %v5621_v21, 0 }
 0x466   : > { %7444 = vst [vmem:[#allocation9_spill] sm:$0xff] %v5858_v24 }
 0x467   : > { %v5860_v51 = vpop.eup %4832  ;;  %v1222_v62 = vmul.f32 1.442695, %v1197_v29  ;;  %4410 = vmatprep.mubr.bf16.mxu0 %v1270_v46 }
 0x468   : > { %7445 = vst [vmem:[#allocation10_spill] sm:$0xff] %v5860_v51  ;;  %v1271_v15 = vpack.c.bf16 %v5860_v51, %v5858_v24  ;;  %v1185_v8 = vpop.xlane.xlu1 %1184 }
 0x469   : > { %4838 = vpow2.f32 %v1222_v62 }
 0x46a   : > { %4840 = vpow2.f32 %v1224_v11  ;;  %4411 = vmatmul.mubr.bf16.gmra.mrb[20].mxu0 %v1271_v15 }
 0x46b   : > { %4425 = vmatpush3.bf16.xpose.msra.mxu0 %v1513_v35  ;;  %v5868_v18 = vpop.eup %4834 }
 0x46c   : > { %4712 = vmatprep.subr.msk.bf16.mxu0 %vm1010_vm1, %v5818_v3  ;;  %7446 = vst [vmem:[#allocation11_spill] sm:$0xff] %v5868_v18  ;;  %v1187_v45 = vpop.xlane.xlu1 %1186  ;;  %v1181_v3 = vpop.xlane.xlu0 %1180 }
 0x46d   : > { %v1200_v13 = vsub.f32 %v5755_v57, %v1181_v3  ;;  %v1203_v14 = vsub.f32 %v5778_v61, %v1187_v45 }
 0x46f   : > { %v5870_v28 = vpop.eup %4836  ;;  %v1228_v30 = vmul.f32 1.442695, %v1200_v13  ;;  %v1234_v34 = vmul.f32 1.442695, %v1203_v14 }
 0x470   : > { %7447 = vst [vmem:[#allocation12_spill] sm:$0xff] %v5870_v28  ;;  %v1478_v25 = vpop.permute.xlu1 %1477  ;;  %v1480_v42 = vpop.permute.xlu0 %1479 }
 0x471   : > { %v1522_v5 = vsel %vm1010_vm1, %v1478_v25, 0  ;;  %v1525_v31 = vsel %vm1010_vm1, %v1480_v42, 0  ;;  %4842 = vpow2.f32 %v1228_v30 }
 0x472   : > { %4844 = vpow2.f32 %v1234_v34 }
 0x473   : > { %v5872_v53 = vpop.eup %4838  ;;  %4427 = vmatpush3.bf16.xpose.msra.mxu0 %v1516_v17 }
 0x474   : > { %7448 = vst [vmem:[#allocation13_spill] sm:$0xff] %v5872_v53  ;;  %v5876_v37 = vpop.eup %4840  ;;  %v1272_v21 = vpack.c.bf16 %v5872_v53, %v5868_v18  ;;  %4713 = vmatprep.subr.msk.bf16.mxu0 %vm1010_vm1, %v5625_v2  ;;  %v1202_v2 = vsub.f32 %v5769_v59, %v1185_v8  ;;  %v1456_v11 = vpop.permute.xlu1 %1455 }
 0x475   : > { %7449 = vst [vmem:[#allocation14_spill] sm:$0xff] %v5876_v37  ;;  %v1273_v0 = vpack.c.bf16 %v5870_v28, %v5876_v37  ;;  %v6268_v37 = vld [vmem:[%s7410_s9 + $0x40] sm:$0xff] }
 0x476   : > { %4414 = vmatprep.mubr.bf16.mxu0 %v1272_v21  ;;  %v1232_v29 = vmul.f32 1.442695, %v1202_v2 }
 0x477   : > { %4415 = vmatmul.mubr.bf16.gmra.mrb[24].mxu0 %v1273_v0 }
 0x478   : > { %v1460_v59 = vpop.permute.xlu1 %1459 }
 0x47b   : > { %4429 = vmatpush3.bf16.xpose.msra.mxu0 %v1519_v1  ;;  %v5897_v35 = vpop.eup %4842 }
 0x47c   : > { %4714 = vmatprep.subr.msk.bf16.mxu0 %vm1010_vm1, %v1478_v25  ;;  %7450 = vst [vmem:[#allocation15_spill] sm:$0xff] %v5897_v35  ;;  %v5900_v8 = vpop.eup %4844  ;;  %v1464_v0 = vpop.permute.xlu1 %1463 }
 0x47d   : > { %7451 = vst [vmem:[#allocation16_spill] sm:$0xff] %v5900_v8 }
 0x483   : > { %4431 = vmatpush3.bf16.xpose.msra.mxu0 %v1522_v5  ;;  %v1468_v5 = vpop.permute.xlu1 %1467 }
 0x484   : > { %4715 = vmatprep.subr.msk.bf16.mxu0 %vm1010_vm1, %v1480_v42 }
 0x48b   : > { %4433 = vmatpush3.bf16.xpose.msra.mxu0 %v1525_v31  ;;  %v1753_v31 = vpop.permute.xlu1 %1752 }
 0x48f   : > { %v1757_v14 = vpop.permute.xlu1 %1756 }
 0x493   : > { %v1759_v30 = vpop.permute.xlu1 %1758 }
 0x496   : > { %v1183_v44 = vpop.xlane.xlu0 %1182 }
 0x497   : > { %v1201_v36 = vsub.f32 %v5796_v47, %v1183_v44  ;;  %v1761_v34 = vpop.permute.xlu1 %1760 }
 0x499   : > { %v1230_v46 = vmul.f32 1.442695, %v1201_v36 }
 0x49a   : > { %v1482_v62 = vpop.permute.xlu0 %1481 }
 0x49b   : > { %4846 = vpow2.f32 %v1230_v46  ;;  %4716 = vmatprep.subr.msk.bf16.mxu0 %vm1010_vm1, %v1482_v62  ;;  %v1528_v57 = vsel %vm1010_vm1, %v1482_v62, 0  ;;  %v1765_v36 = vpop.permute.xlu1 %1764 }
 0x49c   : > { %4848 = vpow2.f32 %v1232_v29  ;;  %4435 = vmatpush3.bf16.xpose.msra.mxu0 %v1528_v57 }
 0x49e   : > { %v1484_v61 = vpop.permute.xlu0 %1483 }
 0x49f   : > { %4717 = vmatprep.subr.msk.bf16.mxu0 %vm1010_vm1, %v1484_v61  ;;  %v1531_v47 = vsel %vm1010_vm1, %v1484_v61, 0 }
 0x4a2   : > { %v1454_v15 = vpop.permute.xlu0 %1453 }
 0x4a4   : > { %4437 = vmatpush3.bf16.xpose.msra.mxu0 %v1531_v47 }
 0x4a5   : > { %v5902_v17 = vpop.eup %4846 }
 0x4a6   : > { %7452 = vst [vmem:[#allocation17_spill] sm:$0xff] %v5902_v17  ;;  %v5904_v21 = vpop.eup %4848  ;;  %v1458_v45 = vpop.permute.xlu0 %1457  ;;  %v1274_v1 = vpack.c.bf16 %v5902_v17, %v5897_v35 }
 0x4a7   : > { %7453 = vst [vmem:[#allocation18_spill] sm:$0xff] %v5904_v21  ;;  %v1275_v25 = vpack.c.bf16 %v5900_v8, %v5904_v21 }
 0x4a8   : > { %4418 = vmatprep.mubr.bf16.mxu0 %v1274_v1 }
 0x4a9   : > { %4419 = vmatmul.mubr.bf16.gmra.mrb[28].mxu0 %v1275_v25 }
 0x4aa   : > { %4438 = vmatprep.mubr.msk.bf16.mxu0 %vm1010_vm1, %v1454_v15  ;;  %v1462_v3 = vpop.permute.xlu0 %1461 }
 0x4ae   : > { %v1466_v42 = vpop.permute.xlu0 %1465 }
 0x4b1   : > { %4439 = vmatmul.mubr.msk.bf16.vlgmr.msra.gmra.mrb[32].mxu0 %vm1010_vm1, %v1456_v11 }
 0x4b2   : > { %4442 = vmatprep.mubr.msk.bf16.mxu0 %vm1010_vm1, %v1458_v45  ;;  %v1751_v13 = vpop.permute.xlu0 %1750 }
 0x4b3   : > { %4454 = vmatprep.subr.bf16.mxu1 %v1751_v13 }
 0x4b4   : > { %4455 = vmatpush3.bf16.msra.mxu1 %v1751_v13 }
 0x4b5   : > { %4456 = vmatprep.subr.bf16.mxu1 %v1753_v31 }
 0x4b6   : > { %v1755_v2 = vpop.permute.xlu0 %1754 }
 0x4b8   : > { %4457 = vmatpush3.bf16.msra.mxu1 %v1753_v31 }
 0x4b9   : > { %4443 = vmatmul.mubr.msk.bf16.gmra.mrb[36].mxu0 %vm1010_vm1, %v1460_v59  ;;  %4458 = vmatprep.subr.bf16.mxu1 %v1755_v2 }
 0x4ba   : > { %4446 = vmatprep.mubr.msk.bf16.mxu0 %vm1010_vm1, %v1462_v3  ;;  %v1763_v44 = vpop.permute.xlu0 %1762 }
 0x4bc   : > { %4459 = vmatpush3.bf16.msra.mxu1 %v1755_v2 }
 0x4bd   : > { %4460 = vmatprep.subr.bf16.mxu1 %v1757_v14 }
 0x4be   : > { %v5918_v29 = vpop.permute.xlu0 %1943 }
 0x4c0   : > { %4461 = vmatpush3.bf16.msra.mxu1 %v1757_v14 }
 0x4c1   : > { %4447 = vmatmul.mubr.msk.bf16.gmra.mrb[40].mxu0 %vm1010_vm1, %v1464_v0  ;;  %4462 = vmatprep.subr.bf16.mxu1 %v1759_v30 }
 0x4c2   : > { %4450 = vmatprep.mubr.msk.bf16.mxu0 %vm1010_vm1, %v1466_v42 }
 0x4c4   : > { %4463 = vmatpush3.bf16.msra.mxu1 %v1759_v30 }
 0x4c5   : > { %4464 = vmatprep.subr.bf16.mxu1 %v1761_v34 }
 0x4c8   : > { %4465 = vmatpush3.bf16.msra.mxu1 %v1761_v34 }
 0x4c9   : > { %4451 = vmatmul.mubr.msk.bf16.gmra.mrb[44].mxu0 %vm1010_vm1, %v1468_v5  ;;  %4466 = vmatprep.subr.bf16.mxu1 %v1763_v44 }
 0x4cc   : > { %4467 = vmatpush3.bf16.msra.mxu1 %v1763_v44 }
 0x4cd   : > { %4468 = vmatprep.subr.bf16.mxu1 %v1765_v36 }
 0x4d0   : > { %4469 = vmatpush3.bf16.msra.mxu1 %v1765_v36 }
 0x4d1   : > { %4718 = vmatprep.subr.msk.bf16.mxu1 %vm1010_vm1, %v5918_v29 }
 0x535   : > { %v5922_v46 = vpop.f32.mrb[16].mxu0 }
 0x536   : > { %7454 = vst [vmem:[#allocation19_spill] sm:$0xff] %v5922_v46  ;;  %v5924_v11 = vpop.f32.mrb[17].mxu0  ;;  %v6214_v46 = vld [vmem:[%s7410_s9 + $0x18] sm:$0xff] }
 0x537   : > { %7455 = vst [vmem:[#allocation20_spill] sm:$0xff] %v5924_v11  ;;  %v5926_v62 = vpop.f32.mrb[18].mxu0 }
 0x538   : > { %7456 = vst [vmem:[#allocation21_spill] sm:$0xff] %v5926_v62  ;;  %v5928_v57 = vpop.f32.mrb[19].mxu0 }
 0x539   : > { %7457 = vst [vmem:[#allocation22_spill] sm:$0xff] %v5928_v57 }
 0x53d   : > { %v5930_v61 = vpop.f32.mrb[20].mxu0 }
 0x53e   : > { %7458 = vst [vmem:[#allocation23_spill] sm:$0xff] %v5930_v61  ;;  %v5932_v59 = vpop.f32.mrb[21].mxu0 }
 0x53f   : > { %7459 = vst [vmem:[#allocation24_spill] sm:$0xff] %v5932_v59  ;;  %v5934_v15 = vpop.f32.mrb[22].mxu0 }
 0x540   : > { %7460 = vst [vmem:[#allocation25_spill] sm:$0xff] %v5934_v15  ;;  %v5936_v47 = vpop.f32.mrb[23].mxu0 }
 0x541   : > { %7461 = vst [vmem:[#allocation26_spill] sm:$0xff] %v5936_v47 }
 0x54a   : > { %v5938_v0 = vpop.f32.mrb[24].mxu0 }
 0x54b   : > { %7462 = vst [vmem:[#allocation27_spill] sm:$0xff] %v5938_v0  ;;  %v5940_v45 = vpop.f32.mrb[25].mxu0 }
 0x54c   : > { %7463 = vst [vmem:[#allocation28_spill] sm:$0xff] %v5940_v45  ;;  %v5942_v1 = vpop.f32.mrb[26].mxu0 }
 0x54d   : > { %7464 = vst [vmem:[#allocation29_spill] sm:$0xff] %v5942_v1  ;;  %v5944_v25 = vpop.f32.mrb[27].mxu0 }
 0x54e   : > { %7465 = vst [vmem:[#allocation30_spill] sm:$0xff] %v5944_v25 }
 0x57c   : > { %v5946_v3 = vpop.f32.mrb[28].mxu0 }
 0x57d   : > { %7466 = vst [vmem:[#allocation31_spill] sm:$0xff] %v5946_v3  ;;  %v5948_v5 = vpop.f32.mrb[29].mxu0 }
 0x57e   : > { %7467 = vst [vmem:[#allocation32_spill] sm:$0xff] %v5948_v5  ;;  %v5950_v42 = vpop.f32.mrb[30].mxu0 }
 0x57f   : > { %7468 = vst [vmem:[#allocation33_spill] sm:$0xff] %v5950_v42  ;;  %v5952_v31 = vpop.f32.mrb[31].mxu0 }
 0x580   : > { %7469 = vst [vmem:[#allocation34_spill] sm:$0xff] %v5952_v31 }
 0x584   : > { %v4440_v13 = vpop.f32.mrb[32].mxu0 }
 0x585   : > { %v5955_v14 = vadd.f32 %v4440_v13, %v5649_v6  ;;  %v1567_v2 = vpop.f32.mrb[33].mxu0 }
 0x586   : > { %v4441_v30 = vpop.f32.mrb[34].mxu0  ;;  %v5962_v36 = vadd.f32 %v1567_v2, %v5662_v43 }
 0x587   : > { %1634 = vmax.xlane.f32.xlu0 %v5955_v14  ;;  %v1570_v34 = vpop.f32.mrb[35].mxu0  ;;  %v5967_v5 = vadd.f32 %v4441_v30, %v5674_v19 }
 0x588   : > { %v5959_v44 = vadd.f32 %v1570_v34, %v5657_v9 }
 0x58a   : > { %1632 = vmax.xlane.f32.xlu1 %v5959_v44 }
 0x58b   : > { %1630 = vmax.xlane.f32.xlu0 %v5962_v36 }
 0x58c   : > { %v4444_v3 = vpop.f32.mrb[36].mxu0 }
 0x58d   : > { %v5970_v6 = vadd.f32 %v4444_v3, %v5680_v22  ;;  %v1583_v13 = vpop.f32.mrb[37].mxu0 }
 0x58e   : > { %v4445_v0 = vpop.f32.mrb[38].mxu0  ;;  %v5978_v2 = vadd.f32 %v1583_v13, %v5697_v33 }
 0x58f   : > { %1636 = vmax.xlane.f32.xlu0 %v5967_v5  ;;  %1642 = vmax.xlane.f32.xlu1 %v5970_v6  ;;  %v1586_v9 = vpop.f32.mrb[39].mxu0  ;;  %v5983_v22 = vadd.f32 %v4445_v0, %v5710_v41 }
 0x590   : > { %v5975_v43 = vadd.f32 %v1586_v9, %v5692_v32 }
 0x593   : > { %1640 = vmax.xlane.f32.xlu0 %v5975_v43  ;;  %1638 = vmax.xlane.f32.xlu1 %v5978_v2 }
 0x594   : > { %v4448_v19 = vpop.f32.mrb[40].mxu0 }
 0x595   : > { %v5986_v3 = vadd.f32 %v4448_v19, %v5715_v10  ;;  %v1599_v30 = vpop.f32.mrb[41].mxu0 }
 0x596   : > { %v4449_v34 = vpop.f32.mrb[42].mxu0  ;;  %v5991_v33 = vadd.f32 %v1599_v30, %v5728_v48 }
 0x597   : > { %1644 = vmax.xlane.f32.xlu1 %v5983_v22  ;;  %1650 = vmax.xlane.f32.xlu0 %v5986_v3  ;;  %v1602_v32 = vpop.f32.mrb[43].mxu0  ;;  %v5995_v9 = vadd.f32 %v4449_v34, %v5738_v23 }
 0x598   : > { %v6003_v45 = vadd.f32 %v1602_v32, %v5752_v56  ;;  %v6043_v56 = vpop.permute.xlu0 %1945 }
 0x59b   : > { %1646 = vmax.xlane.f32.xlu1 %v5991_v33 }
 0x59c   : > { %v4452_v13 = vpop.f32.mrb[44].mxu0 }
 0x59d   : > { %v1615_v41 = vpop.f32.mrb[45].mxu0  ;;  %v6007_v48 = vadd.f32 %v4452_v13, %v5765_v58  ;;  %v6048_v58 = vpop.permute.xlu0 %1949 }
 0x59e   : > { %v5998_v10 = vadd.f32 %v1615_v41, %v5744_v52  ;;  %v4453_v0 = vpop.f32.mrb[46].mxu0 }
 0x59f   : > { %1652 = vmax.xlane.f32.xlu1 %v5995_v9  ;;  %v1618_v19 = vpop.f32.mrb[47].mxu0  ;;  %v6011_v23 = vadd.f32 %v4453_v0, %v5774_v60  ;;  %v6050_v60 = vpop.permute.xlu1 %1947 }
 0x5a0   : > { %1654 = vmax.xlane.f32.xlu0 %v5998_v10  ;;  %v6024_v52 = vadd.f32 %v1618_v19, %v5792_v63 }
 0x5a3   : > { %1648 = vmax.xlane.f32.xlu1 %v6003_v45 }
 0x5a7   : > { %1658 = vmax.xlane.f32.xlu1 %v6007_v48 }
 0x5ab   : > { %1660 = vmax.xlane.f32.xlu1 %v6011_v23 }
 0x5b6   : > { %1953 = vrot.lane.b32.xlu0 %v5576_v39, %s5215_s21 }
 0x5bc   : > { %1951 = vrot.lane.b32.xlu1 %v5578_v40, %s5215_s21 }
 0x5c0   : > { %1929 = vrot.lane.b32.xlu1 %v5558_v54, %s5216_s23 }
 0x5c4   : > { %1933 = vrot.lane.b32.xlu1 %v5568_v16, %s5216_s23 }
 0x5c8   : > { %1937 = vrot.lane.b32.xlu1 %v5576_v39, %s5216_s23 }
 0x5cc   : > { %1941 = vrot.lane.b32.xlu1 %v5584_v49, %s5216_s23 }
 0x5d0   : > { %2226 = vrot.lane.b32.xlu1 %v5558_v54, %s5217_s22 }
 0x5d4   : > { %2230 = vrot.lane.b32.xlu1 %v5568_v16, %s5217_s22 }
 0x5d5   : > { %1656 = vmax.xlane.f32.xlu0 %v6024_v52 }
 0x5d8   : > { %2232 = vrot.lane.b32.xlu1 %v5578_v40, %s5217_s22 }
 0x5dc   : > { %2234 = vrot.lane.b32.xlu1 %v5576_v39, %s5217_s22 }
 0x5e0   : > { %2238 = vrot.lane.b32.xlu1 %v5584_v49, %s5217_s22 }
 0x5e4   : > { %2421 = vrot.lane.b32.xlu1 %v5570_v26, %s5218_s24 }
 0x5eb   : > { %1955 = vrot.lane.b32.xlu0 %v5586_v50, %s5215_s21 }
 0x5ef   : > { %1957 = vrot.lane.b32.xlu0 %v5584_v49, %s5215_s21  ;;  %s5220_s21 = smov 40  }
 0x5f3   : > { %1927 = vrot.lane.b32.xlu0 %v5560_v12, %s5216_s23 }
 0x5f7   : > { %1931 = vrot.lane.b32.xlu0 %v5570_v26, %s5216_s23 }
 0x5fb   : > { %1935 = vrot.lane.b32.xlu0 %v5578_v40, %s5216_s23 }
 0x5ff   : > { %1939 = vrot.lane.b32.xlu0 %v5586_v50, %s5216_s23  ;;  %s5222_s23 = smov 16  }
 0x603   : > { %2224 = vrot.lane.b32.xlu0 %v5560_v12, %s5217_s22 }
 0x607   : > { %2228 = vrot.lane.b32.xlu0 %v5570_v26, %s5217_s22 }
 0x60b   : > { %2236 = vrot.lane.b32.xlu0 %v5586_v50, %s5217_s22 }
 0x60f   : > { %2417 = vrot.lane.b32.xlu0 %v5560_v12, %s5218_s24 }
 0x613   : > { %2419 = vrot.lane.b32.xlu0 %v5558_v54, %s5218_s24 }
 0x614   : > { %v1635_v63 = vpop.xlane.xlu0 %1634 }
 0x615   : > { %v1664_v13 = vsub.f32 %v5955_v14, %v1635_v63 }
 0x617   : > { %v1633_v30 = vpop.xlane.xlu1 %1632  ;;  %2423 = vrot.lane.b32.xlu0 %v5568_v16, %s5218_s24  ;;  %v1682_v1 = vmul.f32 1.442695, %v1664_v13 }
 0x618   : > { %v1663_v34 = vsub.f32 %v5959_v44, %v1633_v30  ;;  %v1631_v32 = vpop.xlane.xlu0 %1630 }
 0x619   : > { %v1662_v41 = vsub.f32 %v5962_v36, %v1631_v32 }
 0x61a   : > { %v1680_v0 = vmul.f32 1.442695, %v1663_v34 }
 0x61b   : > { %v1678_v19 = vmul.f32 1.442695, %v1662_v41 }
 0x61c   : > { %4850 = vpow2.f32 %v1680_v0  ;;  %v1643_v42 = vpop.xlane.xlu1 %1642  ;;  %v1637_v31 = vpop.xlane.xlu0 %1636  ;;  %v1984_v0 = vsel %vm1010_vm1, %v5918_v29, 0 }
 0x61d   : > { %4852 = vpow2.f32 %v1678_v19  ;;  %v1665_v25 = vsub.f32 %v5967_v5, %v1637_v31  ;;  %v1668_v47 = vsub.f32 %v5970_v6, %v1643_v42 }
 0x61e   : > { %4854 = vpow2.f32 %v1682_v1 }
 0x61f   : > { %v1684_v15 = vmul.f32 1.442695, %v1665_v25  ;;  %v1690_v30 = vmul.f32 1.442695, %v1668_v47 }
 0x620   : > { %v1639_v62 = vpop.xlane.xlu1 %1638  ;;  %v1641_v57 = vpop.xlane.xlu0 %1640 }
 0x621   : > { %v1666_v44 = vsub.f32 %v5978_v2, %v1639_v62  ;;  %v1667_v14 = vsub.f32 %v5975_v43, %v1641_v57  ;;  %4856 = vpow2.f32 %v1684_v15 }
 0x623   : > { %v1686_v36 = vmul.f32 1.442695, %v1666_v44  ;;  %v1688_v63 = vmul.f32 1.442695, %v1667_v14 }
 0x624   : > { %v1645_v34 = vpop.xlane.xlu1 %1644  ;;  %v1651_v15 = vpop.xlane.xlu0 %1650 }
 0x625   : > { %4858 = vpow2.f32 %v1686_v36  ;;  %v1669_v32 = vsub.f32 %v5983_v22, %v1645_v34  ;;  %v1672_v2 = vsub.f32 %v5986_v3, %v1651_v15 }
 0x626   : > { %v6064_v13 = vpop.eup %4850  ;;  %4860 = vpow2.f32 %v1688_v63 }
 0x627   : > { %v6066_v25 = vpop.eup %4852  ;;  %v1692_v5 = vmul.f32 1.442695, %v1669_v32  ;;  %4862 = vpow2.f32 %v1690_v30  ;;  %v1698_v36 = vmul.f32 1.442695, %v1672_v2 }
 0x628   : > { %v1647_v1 = vpop.xlane.xlu1 %1646  ;;  %v1742_v62 = vpack.c.bf16 %v6064_v13, %v6066_v25  ;;  %v6070_v57 = vpop.eup %4854 }
 0x629   : > { %4864 = vpow2.f32 %v1692_v5  ;;  %v1670_v47 = vsub.f32 %v5991_v33, %v1647_v1 }
 0x62a   : > { %4470 = vmatprep.mubr.bf16.mxu1 %v1742_v62  ;;  %v1990_v62 = vsel %vm1010_vm1, %v6050_v60, 0 }
 0x62b   : > { %v6073_v42 = vpop.eup %4856  ;;  %v1694_v41 = vmul.f32 1.442695, %v1670_v47 }
 0x62c   : > { %v1653_v31 = vpop.xlane.xlu1 %1652  ;;  %v1743_v43 = vpack.c.bf16 %v6073_v42, %v6070_v57 }
 0x62d   : > { %v1673_v6 = vsub.f32 %v5995_v9, %v1653_v31  ;;  %4866 = vpow2.f32 %v1694_v41 }
 0x62e   : > { %4471 = vmatmul.mubr.bf16.vlgmr.msra.gmra.mrb[16].mxu1 %v1743_v43 }
 0x62f   : > { %v6079_v22 = vpop.eup %4858  ;;  %v1700_v33 = vmul.f32 1.442695, %v1673_v6  ;;  %4487 = vmatpush3.bf16.xpose.msra.mxu1 %v1984_v0  ;;  %v1993_v6 = vsel %vm1010_vm1, %v6048_v58, 0 }
 0x630   : > { %v6083_v19 = vpop.eup %4860  ;;  %v1649_v44 = vpop.xlane.xlu1 %1648  ;;  %4719 = vmatprep.subr.msk.bf16.mxu1 %vm1010_vm1, %v6043_v56 }
 0x631   : > { %v1671_v9 = vsub.f32 %v6003_v45, %v1649_v44  ;;  %v1744_v3 = vpack.c.bf16 %v6083_v19, %v6079_v22  ;;  %v6090_v14 = vpop.eup %4862  ;;  %4868 = vpow2.f32 %v1700_v33  ;;  %v1987_v45 = vsel %vm1010_vm1, %v6043_v56, 0 }
 0x633   : > { %v6092_v63 = vpop.eup %4864  ;;  %v1696_v29 = vmul.f32 1.442695, %v1671_v9  ;;  %4474 = vmatprep.mubr.bf16.mxu1 %v1744_v3 }
 0x634   : > { %7470 = vst [vmem:[#allocation35_spill] sm:$0xff] %v6092_v63  ;;  %v1745_v30 = vpack.c.bf16 %v6092_v63, %v6090_v14  ;;  %v1659_v34 = vpop.xlane.xlu1 %1658 }
 0x635   : > { %4870 = vpow2.f32 %v1696_v29 }
 0x636   : > { %4872 = vpow2.f32 %v1698_v36  ;;  %4475 = vmatmul.mubr.bf16.gmra.mrb[20].mxu1 %v1745_v30 }
 0x637   : > { %4489 = vmatpush3.bf16.xpose.msra.mxu1 %v1987_v45  ;;  %v6100_v32 = vpop.eup %4866 }
 0x638   : > { %4720 = vmatprep.subr.msk.bf16.mxu1 %vm1010_vm1, %v6050_v60  ;;  %v1661_v31 = vpop.xlane.xlu1 %1660  ;;  %v1655_v60 = vpop.xlane.xlu0 %1654 }
 0x639   : > { %v1674_v33 = vsub.f32 %v5998_v10, %v1655_v60  ;;  %v1677_v44 = vsub.f32 %v6011_v23, %v1661_v31 }
 0x63b   : > { %v6102_v5 = vpop.eup %4868  ;;  %v1702_v9 = vmul.f32 1.442695, %v1674_v33  ;;  %v1708_v3 = vmul.f32 1.442695, %v1677_v44 }
 0x63c   : > { %7471 = vst [vmem:[#allocation36_spill] sm:$0xff] %v6102_v5  ;;  %v1952_v43 = vpop.permute.xlu1 %1951  ;;  %v1954_v41 = vpop.permute.xlu0 %1953 }
 0x63d   : > { %v1996_v2 = vsel %vm1010_vm1, %v1952_v43, 0  ;;  %v1999_v0 = vsel %vm1010_vm1, %v1954_v41, 0  ;;  %4874 = vpow2.f32 %v1702_v9 }
 0x63e   : > { %4876 = vpow2.f32 %v1708_v3 }
 0x63f   : > { %v6104_v1 = vpop.eup %4870  ;;  %4491 = vmatpush3.bf16.xpose.msra.mxu1 %v1990_v62 }
 0x640   : > { %7472 = vst [vmem:[#allocation37_spill] sm:$0xff] %v6104_v1  ;;  %v6108_v15 = vpop.eup %4872  ;;  %v1746_v56 = vpack.c.bf16 %v6104_v1, %v6100_v32  ;;  %4721 = vmatprep.subr.msk.bf16.mxu1 %vm1010_vm1, %v6048_v58  ;;  %v1676_v58 = vsub.f32 %v6007_v48, %v1659_v34  ;;  %v1930_v62 = vpop.permute.xlu1 %1929 }
 0x641   : > { %v1747_v47 = vpack.c.bf16 %v6102_v5, %v6108_v15 }
 0x642   : > { %4478 = vmatprep.mubr.bf16.mxu1 %v1746_v56  ;;  %v1706_v30 = vmul.f32 1.442695, %v1676_v58 }
 0x643   : > { %4479 = vmatmul.mubr.bf16.gmra.mrb[24].mxu1 %v1747_v47 }
 0x644   : > { %v1934_v48 = vpop.permute.xlu1 %1933 }
 0x647   : > { %4493 = vmatpush3.bf16.xpose.msra.mxu1 %v1993_v6  ;;  %v6129_v47 = vpop.eup %4874 }
 0x648   : > { %4722 = vmatprep.subr.msk.bf16.mxu1 %vm1010_vm1, %v1952_v43  ;;  %v6132_v31 = vpop.eup %4876  ;;  %v1938_v60 = vpop.permute.xlu1 %1937 }
 0x649   : > { %7473 = vst [vmem:[#allocation38_spill] sm:$0xff] %v6132_v31 }
 0x64c   : > { %v1942_v44 = vpop.permute.xlu1 %1941 }
 0x64f   : > { %4495 = vmatpush3.bf16.xpose.msra.mxu1 %v1996_v2 }
 0x650   : > { %4723 = vmatprep.subr.msk.bf16.mxu1 %vm1010_vm1, %v1954_v41  ;;  %v2227_v9 = vpop.permute.xlu1 %2226 }
 0x657   : > { %4497 = vmatpush3.bf16.xpose.msra.mxu1 %v1999_v0 }
 0x662   : > { %v1657_v36 = vpop.xlane.xlu0 %1656 }
 0x663   : > { %v1675_v29 = vsub.f32 %v6024_v52, %v1657_v36  ;;  %v2231_v36 = vpop.permute.xlu1 %2230 }
 0x665   : > { %v1704_v45 = vmul.f32 1.442695, %v1675_v29 }
 0x666   : > { %v1956_v56 = vpop.permute.xlu0 %1955 }
 0x667   : > { %4878 = vpow2.f32 %v1704_v45  ;;  %4724 = vmatprep.subr.msk.bf16.mxu1 %vm1010_vm1, %v1956_v56  ;;  %v2002_v10 = vsel %vm1010_vm1, %v1956_v56, 0 }
 0x668   : > { %4880 = vpow2.f32 %v1706_v30  ;;  %4499 = vmatpush3.bf16.xpose.msra.mxu1 %v2002_v10  ;;  %v2233_v30 = vpop.permute.xlu1 %2232 }
 0x66a   : > { %v1958_v23 = vpop.permute.xlu0 %1957 }
 0x66b   : > { %4725 = vmatprep.subr.msk.bf16.mxu1 %vm1010_vm1, %v1958_v23  ;;  %v2005_v52 = vsel %vm1010_vm1, %v1958_v23, 0 }
 0x66c   : > { %v2235_v45 = vpop.permute.xlu1 %2234 }
 0x66e   : > { %v1928_v34 = vpop.permute.xlu0 %1927 }
 0x670   : > { %4501 = vmatpush3.bf16.xpose.msra.mxu1 %v2005_v52  ;;  %v2239_v56 = vpop.permute.xlu1 %2238 }
 0x671   : > { %v6134_v6 = vpop.eup %4878 }
 0x672   : > { %7474 = vst [vmem:[#allocation39_spill] sm:$0xff] %v6134_v6  ;;  %v6136_v43 = vpop.eup %4880  ;;  %v1932_v2 = vpop.permute.xlu0 %1931  ;;  %v1748_v41 = vpack.c.bf16 %v6134_v6, %v6129_v47 }
 0x673   : > { %7475 = vst [vmem:[#allocation40_spill] sm:$0xff] %v6136_v43  ;;  %v1749_v0 = vpack.c.bf16 %v6132_v31, %v6136_v43 }
 0x674   : > { %4482 = vmatprep.mubr.bf16.mxu1 %v1748_v41  ;;  %v6362_v7 = vpop.permute.xlu1 %2421 }
 0x675   : > { %4483 = vmatmul.mubr.bf16.gmra.mrb[28].mxu1 %v1749_v0 }
 0x676   : > { %4502 = vmatprep.mubr.msk.bf16.mxu1 %vm1010_vm1, %v1928_v34  ;;  %v1936_v33 = vpop.permute.xlu0 %1935 }
 0x67a   : > { %v1940_v58 = vpop.permute.xlu0 %1939 }
 0x67d   : > { %4503 = vmatmul.mubr.msk.bf16.vlgmr.msra.gmra.mrb[32].mxu1 %vm1010_vm1, %v1930_v62 }
 0x67e   : > { %4506 = vmatprep.mubr.msk.bf16.mxu1 %vm1010_vm1, %v1932_v2  ;;  %v2225_v3 = vpop.permute.xlu0 %2224 }
 0x67f   : > { %4518 = vmatprep.subr.bf16.mxu0 %v2225_v3 }
 0x680   : > { %4519 = vmatpush3.bf16.msra.mxu0 %v2225_v3 }
 0x681   : > { %4520 = vmatprep.subr.bf16.mxu0 %v2227_v9 }
 0x682   : > { %v2229_v29 = vpop.permute.xlu0 %2228 }
 0x684   : > { %4521 = vmatpush3.bf16.msra.mxu0 %v2227_v9 }
 0x685   : > { %4507 = vmatmul.mubr.msk.bf16.gmra.mrb[36].mxu1 %vm1010_vm1, %v1934_v48  ;;  %4522 = vmatprep.subr.bf16.mxu0 %v2229_v29 }
 0x686   : > { %4510 = vmatprep.mubr.msk.bf16.mxu1 %vm1010_vm1, %v1936_v33  ;;  %v2237_v62 = vpop.permute.xlu0 %2236 }
 0x688   : > { %4523 = vmatpush3.bf16.msra.mxu0 %v2229_v29 }
 0x689   : > { %4524 = vmatprep.subr.bf16.mxu0 %v2231_v36 }
 0x68a   : > { %v6150_v10 = vpop.permute.xlu0 %2417 }
 0x68c   : > { %4525 = vmatpush3.bf16.msra.mxu0 %v2231_v36 }
 0x68d   : > { %4511 = vmatmul.mubr.msk.bf16.gmra.mrb[40].mxu1 %vm1010_vm1, %v1938_v60  ;;  %4526 = vmatprep.subr.bf16.mxu0 %v2233_v30 }
 0x68e   : > { %4514 = vmatprep.mubr.msk.bf16.mxu1 %vm1010_vm1, %v1940_v58 }
 0x690   : > { %4527 = vmatpush3.bf16.msra.mxu0 %v2233_v30 }
 0x691   : > { %4528 = vmatprep.subr.bf16.mxu0 %v2235_v45 }
 0x694   : > { %4529 = vmatpush3.bf16.msra.mxu0 %v2235_v45  ;;  %v6189_v45 = vld [vmem:[%s7410_s9 + $0x10] sm:$0xff] }
 0x695   : > { %4515 = vmatmul.mubr.msk.bf16.gmra.mrb[44].mxu1 %vm1010_vm1, %v1942_v44  ;;  %4530 = vmatprep.subr.bf16.mxu0 %v2237_v62 }
 0x698   : > { %4531 = vmatpush3.bf16.msra.mxu0 %v2237_v62 }
 0x699   : > { %4532 = vmatprep.subr.bf16.mxu0 %v2239_v56 }
 0x69c   : > { %4533 = vmatpush3.bf16.msra.mxu0 %v2239_v56 }
 0x69d   : > { %4726 = vmatprep.subr.msk.bf16.mxu0 %vm1010_vm1, %v6150_v10 }
 0x701   : > { %v6154_v23 = vpop.f32.mrb[16].mxu1 }
 0x702   : > { %7476 = vst [vmem:[#allocation41_spill] sm:$0xff] %v6154_v23  ;;  %v6156_v48 = vpop.f32.mrb[17].mxu1 }
 0x703   : > { %7477 = vst [vmem:[#allocation42_spill] sm:$0xff] %v6156_v48  ;;  %v6158_v34 = vpop.f32.mrb[18].mxu1 }
 0x704   : > { %7478 = vst [vmem:[#allocation43_spill] sm:$0xff] %v6158_v34  ;;  %v6160_v52 = vpop.f32.mrb[19].mxu1 }
 0x705   : > { %7479 = vst [vmem:[#allocation44_spill] sm:$0xff] %v6160_v52 }
 0x709   : > { %v6162_v60 = vpop.f32.mrb[20].mxu1 }
 0x70a   : > { %7480 = vst [vmem:[#allocation45_spill] sm:$0xff] %v6162_v60  ;;  %v6164_v2 = vpop.f32.mrb[21].mxu1 }
 0x70b   : > { %7481 = vst [vmem:[#allocation46_spill] sm:$0xff] %v6164_v2  ;;  %v6166_v41 = vpop.f32.mrb[22].mxu1  ;;  %v6255_v2 = vld [vmem:[%s7410_s9 + $0x50] sm:$0xff] }
 0x70c   : > { %7482 = vst [vmem:[#allocation47_spill] sm:$0xff] %v6166_v41  ;;  %v6168_v0 = vpop.f32.mrb[23].mxu1 }
 0x70d   : > { %7483 = vst [vmem:[#allocation48_spill] sm:$0xff] %v6168_v0  ;;  %v6250_v0 = vld [vmem:[%s7410_s9 + $0x38] sm:$0xff] }
 0x716   : > { %v6170_v33 = vpop.f32.mrb[24].mxu1 }
 0x717   : > { %7484 = vst [vmem:[#allocation49_spill] sm:$0xff] %v6170_v33  ;;  %v6172_v44 = vpop.f32.mrb[25].mxu1 }
 0x718   : > { %7485 = vst [vmem:[#allocation50_spill] sm:$0xff] %v6172_v44  ;;  %v6174_v58 = vpop.f32.mrb[26].mxu1  ;;  %v6237_v44 = vld [vmem:[%s7410_s9 + $0x20] sm:$0xff] }
 0x719   : > { %7486 = vst [vmem:[#allocation51_spill] sm:$0xff] %v6174_v58  ;;  %v6176_v9 = vpop.f32.mrb[27].mxu1  ;;  %v6220_v58 = vld [vmem:[%s7410_s9 + $0x30] sm:$0xff] }
 0x71a   : > { %7487 = vst [vmem:[#allocation52_spill] sm:$0xff] %v6176_v9  ;;  %v6232_v9 = vld [vmem:[%s7410_s9 + $0x28] sm:$0xff] }
 0x748   : > { %v6178_v3 = vpop.f32.mrb[28].mxu1 }
 0x749   : > { %7488 = vst [vmem:[#allocation53_spill] sm:$0xff] %v6178_v3  ;;  %v6180_v36 = vpop.f32.mrb[29].mxu1  ;;  %v6197_v3 = vld [vmem:[%s7410_s9 + $0x8] sm:$0xff] }
 0x74a   : > { %7489 = vst [vmem:[#allocation54_spill] sm:$0xff] %v6180_v36  ;;  %v6182_v29 = vpop.f32.mrb[30].mxu1 }
 0x74b   : > { %7490 = vst [vmem:[#allocation55_spill] sm:$0xff] %v6182_v29  ;;  %v6184_v30 = vpop.f32.mrb[31].mxu1  ;;  %v6202_v29 = vld [vmem:[%s7410_s9] sm:$0xff] }
 0x74c   : > { %7491 = vst [vmem:[#allocation56_spill] sm:$0xff] %v6184_v30 }
 0x750   : > { %v4504_v62 = vpop.f32.mrb[32].mxu1 }
 0x751   : > { %v6192_v56 = vadd.f32 %v4504_v62, %v6189_v45  ;;  %v2041_v61 = vpop.f32.mrb[33].mxu1 }
 0x752   : > { %v4505_v30 = vpop.f32.mrb[34].mxu1  ;;  %v6209_v62 = vadd.f32 %v2041_v61, %v6202_v29 }
 0x753   : > { %2108 = vmax.xlane.f32.xlu0 %v6192_v56  ;;  %v2044_v36 = vpop.f32.mrb[35].mxu1 }
 0x754   : > { %v6206_v59 = vadd.f32 %v2044_v36, %v6197_v3  ;;  %v6224_v36 = vadd.f32 %v4505_v30, %v6214_v46 }
 0x756   : > { %2106 = vmax.xlane.f32.xlu1 %v6206_v59 }
 0x757   : > { %2104 = vmax.xlane.f32.xlu0 %v6209_v62 }
 0x758   : > { %v4508_v33 = vpop.f32.mrb[36].mxu1 }
 0x759   : > { %v6227_v61 = vadd.f32 %v4508_v33, %v6220_v58  ;;  %v2057_v11 = vpop.f32.mrb[37].mxu1 }
 0x75a   : > { %v4509_v41 = vpop.f32.mrb[38].mxu1  ;;  %v6245_v60 = vadd.f32 %v2057_v11, %v6237_v44 }
 0x75b   : > { %2110 = vmax.xlane.f32.xlu0 %v6224_v36  ;;  %2116 = vmax.xlane.f32.xlu1 %v6227_v61  ;;  %v2060_v30 = vpop.f32.mrb[39].mxu1 }
 0x75c   : > { %v6242_v33 = vadd.f32 %v2060_v30, %v6232_v9  ;;  %v6260_v30 = vadd.f32 %v4509_v41, %v6250_v0  ;;  %v6284_v41 = vld [vmem:[%s7410_s9 + $0x60] sm:$0xff] }
 0x75f   : > { %2114 = vmax.xlane.f32.xlu0 %v6242_v33  ;;  %2112 = vmax.xlane.f32.xlu1 %v6245_v60 }
 0x760   : > { %v4512_v21 = vpop.f32.mrb[40].mxu1 }
 0x761   : > { %v6263_v11 = vadd.f32 %v4512_v21, %v6255_v2  ;;  %v2073_v35 = vpop.f32.mrb[41].mxu1  ;;  %v6278_v21 = vld [vmem:[%s7410_s9 + $0x58] sm:$0xff] }
 0x762   : > { %v4513_v34 = vpop.f32.mrb[42].mxu1  ;;  %v6273_v18 = vadd.f32 %v2073_v35, %v6268_v37  ;;  %v6292_v35 = vld [vmem:[%s7410_s9 + $0x48] sm:$0xff] }
 0x763   : > { %2118 = vmax.xlane.f32.xlu1 %v6260_v30  ;;  %2124 = vmax.xlane.f32.xlu0 %v6263_v11  ;;  %v2076_v23 = vpop.f32.mrb[43].mxu1  ;;  %v6287_v48 = vadd.f32 %v4513_v34, %v6278_v21  ;;  %v6305_v34 = vld [vmem:[%s7410_s9 + $0x70] sm:$0xff] }
 0x764   : > { %v6300_v51 = vadd.f32 %v2076_v23, %v6292_v35 }
 0x767   : > { %2120 = vmax.xlane.f32.xlu1 %v6273_v18 }
 0x768   : > { %v4516_v52 = vpop.f32.mrb[44].mxu1 }
 0x769   : > { %v2089_v8 = vpop.f32.mrb[45].mxu1  ;;  %v6309_v20 = vadd.f32 %v4516_v52, %v6305_v34 }
 0x76a   : > { %v6295_v17 = vadd.f32 %v2089_v8, %v6284_v41  ;;  %v4517_v28 = vpop.f32.mrb[46].mxu1  ;;  %v6314_v8 = vld [vmem:[%s7410_s9 + $0x78] sm:$0xff] }
 0x76b   : > { %2126 = vmax.xlane.f32.xlu1 %v6287_v48  ;;  %v2092_v53 = vpop.f32.mrb[47].mxu1  ;;  %v6318_v23 = vadd.f32 %v4517_v28, %v6314_v8  ;;  %v6332_v28 = vld [vmem:[%s7410_s9 + $0x68] sm:$0xff] }
 0x76c   : > { %2128 = vmax.xlane.f32.xlu0 %v6295_v17  ;;  %v6337_v52 = vadd.f32 %v2092_v53, %v6332_v28 }
 0x76f   : > { %2122 = vmax.xlane.f32.xlu1 %v6300_v51 }
 0x773   : > { %2132 = vmax.xlane.f32.xlu1 %v6309_v20 }
 0x777   : > { %2134 = vmax.xlane.f32.xlu1 %v6318_v23 }
 0x782   : > { %2427 = vrot.lane.b32.xlu0 %v5576_v39, %s5218_s24 }
 0x788   : > { %2425 = vrot.lane.b32.xlu1 %v5578_v40, %s5218_s24 }
 0x78c   : > { %2403 = vrot.lane.b32.xlu1 %v5558_v54, %s5219_s28 }
 0x790   : > { %2407 = vrot.lane.b32.xlu1 %v5568_v16, %s5219_s28 }
 0x794   : > { %2411 = vrot.lane.b32.xlu1 %v5576_v39, %s5219_s28 }
 0x798   : > { %2415 = vrot.lane.b32.xlu1 %v5584_v49, %s5219_s28 }
 0x79c   : > { %2700 = vrot.lane.b32.xlu1 %v5558_v54, %s5220_s21  ;;  %v6354_v54 = vpop.permute.xlu0 %2419 }
 0x7a0   : > { %2706 = vrot.lane.b32.xlu1 %v5578_v40, %s5220_s21  ;;  %v6360_v53 = vpop.permute.xlu0 %2423 }
 0x7a1   : > { %2130 = vmax.xlane.f32.xlu0 %v6337_v52 }
 0x7b7   : > { %2429 = vrot.lane.b32.xlu0 %v5586_v50, %s5218_s24 }
 0x7bb   : > { %2431 = vrot.lane.b32.xlu0 %v5584_v49, %s5218_s24  ;;  %s5221_s24 = smov 8  }
 0x7bf   : > { %2401 = vrot.lane.b32.xlu0 %v5560_v12, %s5219_s28 }
 0x7c3   : > { %2405 = vrot.lane.b32.xlu0 %v5570_v26, %s5219_s28 }
 0x7c7   : > { %2409 = vrot.lane.b32.xlu0 %v5578_v40, %s5219_s28 }
 0x7cb   : > { %2413 = vrot.lane.b32.xlu0 %v5586_v50, %s5219_s28  ;;  %s5223_s28 = smov 24  }
 0x7cf   : > { %2698 = vrot.lane.b32.xlu0 %v5560_v12, %s5220_s21 }
 0x7d3   : > { %2702 = vrot.lane.b32.xlu0 %v5570_v26, %s5220_s21 }
 0x7d7   : > { %2704 = vrot.lane.b32.xlu0 %v5568_v16, %s5220_s21 }
 0x7db   : > { %2708 = vrot.lane.b32.xlu0 %v5576_v39, %s5220_s21 }
 0x7e0   : > { %v2109_v40 = vpop.xlane.xlu0 %2108 }
 0x7e1   : > { %v2138_v6 = vsub.f32 %v6192_v56, %v2109_v40 }
 0x7e3   : > { %v2107_v4 = vpop.xlane.xlu1 %2106  ;;  %v2156_v5 = vmul.f32 1.442695, %v2138_v6 }
 0x7e4   : > { %v2137_v31 = vsub.f32 %v6206_v59, %v2107_v4  ;;  %v2105_v12 = vpop.xlane.xlu0 %2104 }
 0x7e5   : > { %v2136_v26 = vsub.f32 %v6209_v62, %v2105_v12 }
 0x7e6   : > { %v2154_v24 = vmul.f32 1.442695, %v2137_v31 }
 0x7e7   : > { %v2152_v55 = vmul.f32 1.442695, %v2136_v26 }
 0x7e8   : > { %4882 = vpow2.f32 %v2154_v24  ;;  %v2117_v16 = vpop.xlane.xlu1 %2116  ;;  %v2111_v38 = vpop.xlane.xlu0 %2110 }
 0x7e9   : > { %4884 = vpow2.f32 %v2152_v55  ;;  %v2139_v39 = vsub.f32 %v6224_v36, %v2111_v38  ;;  %v2142_v1 = vsub.f32 %v6227_v61, %v2117_v16  ;;  %v2458_v16 = vsel %vm1010_vm1, %v6150_v10, 0 }
 0x7ea   : > { %4886 = vpow2.f32 %v2156_v5 }
 0x7eb   : > { %v2158_v27 = vmul.f32 1.442695, %v2139_v39  ;;  %v2164_v24 = vmul.f32 1.442695, %v2142_v1 }
 0x7ec   : > { %v2113_v43 = vpop.xlane.xlu1 %2112  ;;  %v2115_v63 = vpop.xlane.xlu0 %2114 }
 0x7ed   : > { %v2140_v4 = vsub.f32 %v6245_v60, %v2113_v43  ;;  %v2141_v59 = vsub.f32 %v6242_v33, %v2115_v63  ;;  %4888 = vpow2.f32 %v2158_v27 }
 0x7ef   : > { %v2160_v31 = vmul.f32 1.442695, %v2140_v4  ;;  %v2162_v56 = vmul.f32 1.442695, %v2141_v59 }
 0x7f0   : > { %v2119_v62 = vpop.xlane.xlu1 %2118  ;;  %v2125_v63 = vpop.xlane.xlu0 %2124 }
 0x7f1   : > { %4890 = vpow2.f32 %v2160_v31  ;;  %v2143_v55 = vsub.f32 %v6260_v30, %v2119_v62  ;;  %v2146_v40 = vsub.f32 %v6263_v11, %v2125_v63 }
 0x7f2   : > { %v6372_v6 = vpop.eup %4882  ;;  %4892 = vpow2.f32 %v2162_v56 }
 0x7f3   : > { %v6374_v38 = vpop.eup %4884  ;;  %v2166_v36 = vmul.f32 1.442695, %v2143_v55  ;;  %4894 = vpow2.f32 %v2164_v24  ;;  %v2172_v31 = vmul.f32 1.442695, %v2146_v40 }
 0x7f4   : > { %v2121_v5 = vpop.xlane.xlu1 %2120  ;;  %v2216_v43 = vpack.c.bf16 %v6372_v6, %v6374_v38  ;;  %v6378_v27 = vpop.eup %4886 }
 0x7f5   : > { %4896 = vpow2.f32 %v2166_v36  ;;  %v2144_v1 = vsub.f32 %v6273_v18, %v2121_v5 }
 0x7f6   : > { %4534 = vmatprep.mubr.bf16.mxu0 %v2216_v43  ;;  %v2464_v43 = vsel %vm1010_vm1, %v6362_v7, 0 }
 0x7f7   : > { %v6381_v60 = vpop.eup %4888  ;;  %v2168_v26 = vmul.f32 1.442695, %v2144_v1 }
 0x7f8   : > { %v2127_v61 = vpop.xlane.xlu1 %2126  ;;  %v2217_v30 = vpack.c.bf16 %v6381_v60, %v6378_v27 }
 0x7f9   : > { %v2147_v33 = vsub.f32 %v6287_v48, %v2127_v61  ;;  %4898 = vpow2.f32 %v2168_v26 }
 0x7fa   : > { %4535 = vmatmul.mubr.bf16.vlgmr.msra.gmra.mrb[48].mxu0 %v2217_v30 }
 0x7fb   : > { %v6387_v12 = vpop.eup %4890  ;;  %v2174_v18 = vmul.f32 1.442695, %v2147_v33  ;;  %4551 = vmatpush3.bf16.xpose.msra.mxu0 %v2458_v16  ;;  %v2467_v33 = vsel %vm1010_vm1, %v6360_v53, 0 }
 0x7fc   : > { %v6391_v39 = vpop.eup %4892  ;;  %v2123_v4 = vpop.xlane.xlu1 %2122  ;;  %4727 = vmatprep.subr.msk.bf16.mxu0 %vm1010_vm1, %v6354_v54 }
 0x7fd   : > { %v2145_v48 = vsub.f32 %v6300_v51, %v2123_v4  ;;  %v2218_v11 = vpack.c.bf16 %v6391_v39, %v6387_v12  ;;  %v6398_v59 = vpop.eup %4894  ;;  %4900 = vpow2.f32 %v2174_v18  ;;  %v2461_v51 = vsel %vm1010_vm1, %v6354_v54, 0 }
 0x7ff   : > { %v6400_v56 = vpop.eup %4896  ;;  %v2170_v10 = vmul.f32 1.442695, %v2145_v48  ;;  %4538 = vmatprep.mubr.bf16.mxu0 %v2218_v11 }
 0x800   : > { %v2219_v24 = vpack.c.bf16 %v6400_v56, %v6398_v59  ;;  %v2133_v62 = vpop.xlane.xlu1 %2132 }
 0x801   : > { %4902 = vpow2.f32 %v2170_v10 }
 0x802   : > { %4904 = vpow2.f32 %v2172_v31  ;;  %4539 = vmatmul.mubr.bf16.gmra.mrb[52].mxu0 %v2219_v24 }
 0x803   : > { %4553 = vmatpush3.bf16.xpose.msra.mxu0 %v2461_v51  ;;  %v6408_v55 = vpop.eup %4898 }
 0x804   : > { %4728 = vmatprep.subr.msk.bf16.mxu0 %vm1010_vm1, %v6362_v7  ;;  %v2135_v61 = vpop.xlane.xlu1 %2134  ;;  %v2129_v7 = vpop.xlane.xlu0 %2128 }
 0x805   : > { %v2148_v18 = vsub.f32 %v6295_v17, %v2129_v7  ;;  %v2151_v4 = vsub.f32 %v6318_v23, %v2135_v61 }
 0x807   : > { %v6410_v36 = vpop.eup %4900  ;;  %v2176_v48 = vmul.f32 1.442695, %v2148_v18  ;;  %v2182_v11 = vmul.f32 1.442695, %v2151_v4 }
 0x808   : > { %v2426_v30 = vpop.permute.xlu1 %2425  ;;  %v2428_v26 = vpop.permute.xlu0 %2427 }
 0x809   : > { %v2470_v40 = vsel %vm1010_vm1, %v2426_v30, 0  ;;  %v2473_v16 = vsel %vm1010_vm1, %v2428_v26, 0  ;;  %4906 = vpow2.f32 %v2176_v48 }
 0x80a   : > { %4908 = vpow2.f32 %v2182_v11 }
 0x80b   : > { %v6412_v5 = vpop.eup %4902  ;;  %4555 = vmatpush3.bf16.xpose.msra.mxu0 %v2464_v43 }
 0x80c   : > { %v6416_v63 = vpop.eup %4904  ;;  %v2220_v54 = vpack.c.bf16 %v6412_v5, %v6408_v55  ;;  %4729 = vmatprep.subr.msk.bf16.mxu0 %vm1010_vm1, %v6360_v53  ;;  %v2150_v53 = vsub.f32 %v6309_v20, %v2133_v62  ;;  %v2404_v17 = vpop.permute.xlu1 %2403 }
 0x80d   : > { %v2221_v1 = vpack.c.bf16 %v6410_v36, %v6416_v63 }
 0x80e   : > { %4542 = vmatprep.mubr.bf16.mxu0 %v2220_v54  ;;  %v2180_v24 = vmul.f32 1.442695, %v2150_v53 }
 0x80f   : > { %4543 = vmatmul.mubr.bf16.gmra.mrb[56].mxu0 %v2221_v1 }
 0x810   : > { %v2408_v20 = vpop.permute.xlu1 %2407 }
 0x813   : > { %4557 = vmatpush3.bf16.xpose.msra.mxu0 %v2467_v33  ;;  %v6437_v1 = vpop.eup %4906 }
 0x814   : > { %4730 = vmatprep.subr.msk.bf16.mxu0 %vm1010_vm1, %v2426_v30  ;;  %v6440_v61 = vpop.eup %4908 }
 0x81b   : > { %4559 = vmatpush3.bf16.xpose.msra.mxu0 %v2470_v40 }
 0x81c   : > { %4731 = vmatprep.subr.msk.bf16.mxu0 %vm1010_vm1, %v2428_v26 }
 0x823   : > { %4561 = vmatpush3.bf16.xpose.msra.mxu0 %v2473_v16  ;;  %v2412_v16 = vpop.permute.xlu1 %2411 }
 0x827   : > { %v2416_v4 = vpop.permute.xlu1 %2415 }
 0x82b   : > { %v2701_v11 = vpop.permute.xlu1 %2700 }
 0x82e   : > { %v2131_v31 = vpop.xlane.xlu0 %2130 }
 0x82f   : > { %v2149_v10 = vsub.f32 %v6337_v52, %v2131_v31 }
 0x831   : > { %v2178_v51 = vmul.f32 1.442695, %v2149_v10 }
 0x832   : > { %v2430_v43 = vpop.permute.xlu0 %2429 }
 0x833   : > { %4910 = vpow2.f32 %v2178_v51  ;;  %4732 = vmatprep.subr.msk.bf16.mxu0 %vm1010_vm1, %v2430_v43  ;;  %v2476_v54 = vsel %vm1010_vm1, %v2430_v43, 0 }
 0x834   : > { %4912 = vpow2.f32 %v2180_v24  ;;  %4563 = vmatpush3.bf16.xpose.msra.mxu0 %v2476_v54  ;;  %v2707_v24 = vpop.permute.xlu1 %2706 }
 0x836   : > { %v2432_v23 = vpop.permute.xlu0 %2431 }
 0x837   : > { %4733 = vmatprep.subr.msk.bf16.mxu0 %vm1010_vm1, %v2432_v23  ;;  %v2479_v52 = vsel %vm1010_vm1, %v2432_v23, 0 }
 0x83a   : > { %v2402_v62 = vpop.permute.xlu0 %2401 }
 0x83c   : > { %4565 = vmatpush3.bf16.xpose.msra.mxu0 %v2479_v52 }
 0x83d   : > { %v6442_v33 = vpop.eup %4910 }
 0x83e   : > { %v6444_v30 = vpop.eup %4912  ;;  %v2406_v7 = vpop.permute.xlu0 %2405  ;;  %v2222_v40 = vpack.c.bf16 %v6442_v33, %v6437_v1 }
 0x83f   : > { %v2223_v26 = vpack.c.bf16 %v6440_v61, %v6444_v30 }
 0x840   : > { %4546 = vmatprep.mubr.bf16.mxu0 %v2222_v40 }
 0x841   : > { %4547 = vmatmul.mubr.bf16.gmra.mrb[60].mxu0 %v2223_v26 }
 0x842   : > { %4566 = vmatprep.mubr.msk.bf16.mxu0 %vm1010_vm1, %v2402_v62  ;;  %v2410_v18 = vpop.permute.xlu0 %2409 }
 0x846   : > { %v2414_v53 = vpop.permute.xlu0 %2413 }
 0x849   : > { %4567 = vmatmul.mubr.msk.bf16.vlgmr.msra.gmra.mrb[64].mxu0 %vm1010_vm1, %v2404_v17 }
 0x84a   : > { %4570 = vmatprep.mubr.msk.bf16.mxu0 %vm1010_vm1, %v2406_v7  ;;  %v2699_v48 = vpop.permute.xlu0 %2698 }
 0x84b   : > { %4582 = vmatprep.subr.bf16.mxu0 %v2699_v48  ;;  %4686 = vmatprep.subr.bf16.mxu1 %v2699_v48 }
 0x84c   : > { %4583 = vmatpush3.bf16.msra.mxu0 %v2699_v48  ;;  %4694 = vmatpush3.bf16.msra.mxu1 %v2699_v48 }
 0x84d   : > { %4584 = vmatprep.subr.bf16.mxu0 %v2701_v11  ;;  %4687 = vmatprep.subr.bf16.mxu1 %v2701_v11 }
 0x84e   : > { %v2703_v31 = vpop.permute.xlu0 %2702 }
 0x850   : > { %4585 = vmatpush3.bf16.msra.mxu0 %v2701_v11  ;;  %4695 = vmatpush3.bf16.msra.mxu1 %v2701_v11 }
 0x851   : > { %4571 = vmatmul.mubr.msk.bf16.gmra.mrb[68].mxu0 %vm1010_vm1, %v2408_v20  ;;  %4586 = vmatprep.subr.bf16.mxu0 %v2703_v31 }
 0x852   : > { %4688 = vmatprep.subr.bf16.mxu1 %v2703_v31  ;;  %4574 = vmatprep.mubr.msk.bf16.mxu0 %vm1010_vm1, %v2410_v18  ;;  %v2705_v10 = vpop.permute.xlu0 %2704 }
 0x854   : > { %4587 = vmatpush3.bf16.msra.mxu0 %v2703_v31  ;;  %4696 = vmatpush3.bf16.msra.mxu1 %v2703_v31 }
 0x855   : > { %4588 = vmatprep.subr.bf16.mxu0 %v2705_v10  ;;  %4689 = vmatprep.subr.bf16.mxu1 %v2705_v10 }
 0x856   : > { %v2709_v51 = vpop.permute.xlu0 %2708 }
 0x858   : > { %4589 = vmatpush3.bf16.msra.mxu0 %v2705_v10  ;;  %4697 = vmatpush3.bf16.msra.mxu1 %v2705_v10 }
 0x859   : > { %4575 = vmatmul.mubr.msk.bf16.gmra.mrb[72].mxu0 %vm1010_vm1, %v2412_v16  ;;  %4590 = vmatprep.subr.bf16.mxu0 %v2707_v24 }
 0x85a   : > { %4690 = vmatprep.subr.bf16.mxu1 %v2707_v24  ;;  %4578 = vmatprep.mubr.msk.bf16.mxu0 %vm1010_vm1, %v2414_v53 }
 0x85c   : > { %4591 = vmatpush3.bf16.msra.mxu0 %v2707_v24  ;;  %4698 = vmatpush3.bf16.msra.mxu1 %v2707_v24 }
 0x85d   : > { %4592 = vmatprep.subr.bf16.mxu0 %v2709_v51  ;;  %4691 = vmatprep.subr.bf16.mxu1 %v2709_v51 }
 0x860   : > { %4593 = vmatpush3.bf16.msra.mxu0 %v2709_v51  ;;  %4699 = vmatpush3.bf16.msra.mxu1 %v2709_v51 }
 0x861   : > { %4579 = vmatmul.mubr.msk.bf16.gmra.mrb[76].mxu0 %vm1010_vm1, %v2416_v4 }
 0x8cd   : > { %v6458_v43 = vpop.f32.mrb[48].mxu0 }
 0x8ce   : > { %v6460_v54 = vpop.f32.mrb[49].mxu0 }
 0x8cf   : > { %v6462_v17 = vpop.f32.mrb[50].mxu0 }
 0x8d0   : > { %v6464_v23 = vpop.f32.mrb[51].mxu0 }
 0x8d5   : > { %v6466_v20 = vpop.f32.mrb[52].mxu0 }
 0x8d6   : > { %v6468_v62 = vpop.f32.mrb[53].mxu0 }
 0x8d7   : > { %v6470_v52 = vpop.f32.mrb[54].mxu0 }
 0x8d8   : > { %v6472_v7 = vpop.f32.mrb[55].mxu0 }
 0x8e2   : > { %v6474_v40 = vpop.f32.mrb[56].mxu0 }
 0x8e3   : > { %7492 = vst [vmem:[#allocation57_spill] sm:$0xff] %v6474_v40  ;;  %v6476_v26 = vpop.f32.mrb[57].mxu0 }
 0x8e4   : > { %v6478_v16 = vpop.f32.mrb[58].mxu0 }
 0x8e5   : > { %7493 = vst [vmem:[#allocation58_spill] sm:$0xff] %v6478_v16  ;;  %v6480_v18 = vpop.f32.mrb[59].mxu0 }
 0x8e6   : > { %7494 = vst [vmem:[#allocation59_spill] sm:$0xff] %v6480_v18 }
 0x914   : > { %v6482_v4 = vpop.f32.mrb[60].mxu0 }
 0x915   : > { %7495 = vst [vmem:[#allocation60_spill] sm:$0xff] %v6482_v4  ;;  %v6484_v53 = vpop.f32.mrb[61].mxu0 }
 0x916   : > { %7496 = vst [vmem:[#allocation61_spill] sm:$0xff] %v6484_v53  ;;  %v6486_v48 = vpop.f32.mrb[62].mxu0 }
 0x917   : > { %7497 = vst [vmem:[#allocation62_spill] sm:$0xff] %v6486_v48  ;;  %v6488_v11 = vpop.f32.mrb[63].mxu0 }
 0x918   : > { %7498 = vst [vmem:[#allocation63_spill] sm:$0xff] %v6488_v11 }
 0x91c   : > { %v4568_v31 = vpop.f32.mrb[64].mxu0 }
 0x91d   : > { %v6491_v10 = vadd.f32 %v4568_v31, %v6189_v45  ;;  %v2515_v24 = vpop.f32.mrb[65].mxu0 }
 0x91e   : > { %v6494_v51 = vadd.f32 %v2515_v24, %v6202_v29  ;;  %v4569_v40 = vpop.f32.mrb[66].mxu0 }
 0x91f   : > { %2582 = vmax.xlane.f32.xlu1 %v6491_v10  ;;  %v2518_v16 = vpop.f32.mrb[67].mxu0  ;;  %v6499_v4 = vadd.f32 %v4569_v40, %v6214_v46 }
 0x920   : > { %2578 = vmax.xlane.f32.xlu0 %v6494_v51  ;;  %v6503_v11 = vadd.f32 %v2518_v16, %v6197_v3 }
 0x923   : > { %2584 = vmax.xlane.f32.xlu1 %v6499_v4 }
 0x924   : > { %v4572_v48 = vpop.f32.mrb[68].mxu0 }
 0x925   : > { %v2531_v45 = vpop.f32.mrb[69].mxu0  ;;  %v6511_v53 = vadd.f32 %v4572_v48, %v6220_v58 }
 0x926   : > { %v6506_v31 = vadd.f32 %v2531_v45, %v6237_v44  ;;  %v4573_v29 = vpop.f32.mrb[70].mxu0 }
 0x927   : > { %2580 = vmax.xlane.f32.xlu1 %v6503_v11  ;;  %v2534_v24 = vpop.f32.mrb[71].mxu0  ;;  %v6515_v40 = vadd.f32 %v4573_v29, %v6250_v0 }
 0x928   : > { %2586 = vmax.xlane.f32.xlu0 %v6506_v31  ;;  %v6522_v18 = vadd.f32 %v2534_v24, %v6232_v9 }
 0x92b   : > { %2590 = vmax.xlane.f32.xlu1 %v6511_v53 }
 0x92c   : > { %v4576_v46 = vpop.f32.mrb[72].mxu0 }
 0x92d   : > { %v2547_v3 = vpop.f32.mrb[73].mxu0  ;;  %v6530_v48 = vadd.f32 %v4576_v46, %v6255_v2 }
 0x92e   : > { %v4577_v16 = vpop.f32.mrb[74].mxu0  ;;  %v6538_v24 = vadd.f32 %v2547_v3, %v6268_v37 }
 0x92f   : > { %v6518_v44 = vadd.f32 %v4577_v16, %v6278_v21  ;;  %2592 = vmax.xlane.f32.xlu1 %v6515_v40  ;;  %v2550_v45 = vpop.f32.mrb[75].mxu0 }
 0x930   : > { %v6526_v58 = vadd.f32 %v2550_v45, %v6292_v35 }
 0x931   : > { %2600 = vmax.xlane.f32.xlu0 %v6518_v44 }
 0x933   : > { %2588 = vmax.xlane.f32.xlu1 %v6522_v18 }
 0x934   : > { %v4580_v0 = vpop.f32.mrb[76].mxu0 }
 0x935   : > { %2596 = vmax.xlane.f32.xlu0 %v6526_v58  ;;  %v2563_v21 = vpop.f32.mrb[77].mxu0  ;;  %v6555_v37 = vadd.f32 %v4580_v0, %v6305_v34  ;;  %v7506_v34 = vld [vmem:[#allocation9_spill] sm:$0xff] }
 0x936   : > { %v4581_v29 = vpop.f32.mrb[78].mxu0  ;;  %v6551_v2 = vadd.f32 %v2563_v21, %v6284_v41  ;;  %v7509_v21 = vld [vmem:[#allocation3_spill] sm:$0xff] }
 0x937   : > { %v6534_v16 = vadd.f32 %v4581_v29, %v6314_v8  ;;  %2598 = vmax.xlane.f32.xlu1 %v6530_v48  ;;  %v2566_v9 = vpop.f32.mrb[79].mxu0 }
 0x938   : > { %v6542_v35 = vadd.f32 %v2566_v9, %v6332_v28 }
 0x939   : > { %2608 = vmax.xlane.f32.xlu0 %v6534_v16 }
 0x93b   : > { %2594 = vmax.xlane.f32.xlu1 %v6538_v24 }
 0x93d   : > { %2604 = vmax.xlane.f32.xlu0 %v6542_v35 }
 0x94c   : > { %2710 = vrot.lane.b32.xlu1 %v5586_v50, %s5220_s21  ;;  %v7500_v50 = vld [vmem:[#allocation40_spill] sm:$0xff] }
 0x953   : > { %2712 = vrot.lane.b32.xlu0 %v5584_v49, %s5220_s21  ;;  %v7499_v49 = vld [vmem:[#allocation35_spill] sm:$0xff] }
 0x970   : > { %2602 = vmax.xlane.f32.xlu1 %v6551_v2 }
 0x972   : > { %1712 = vadd.xlane.f32.xlu0 %v6064_v13  ;;  %v7501_v13 = vld [vmem:[#allocation37_spill] sm:$0xff] }
 0x974   : > { %2606 = vmax.xlane.f32.xlu1 %v6555_v37 }
 0x976   : > { %1718 = vadd.xlane.f32.xlu0 %v6079_v22 }
 0x978   : > { %1710 = vadd.xlane.f32.xlu1 %v6066_v25  ;;  %v7502_v25 = vld [vmem:[#allocation4_spill] sm:$0xff] }
 0x97a   : > { %1722 = vadd.xlane.f32.xlu0 %v6090_v14 }
 0x97c   : > { %1714 = vadd.xlane.f32.xlu1 %v6070_v57  ;;  %v7503_v57 = vld [vmem:[#allocation36_spill] sm:$0xff] }
 0x97e   : > { %2192 = vadd.xlane.f32.xlu0 %v6387_v12 }
 0x980   : > { %1716 = vadd.xlane.f32.xlu1 %v6073_v42  ;;  %v7504_v42 = vld [vmem:[#allocation5_spill] sm:$0xff] }
 0x982   : > { %2196 = vadd.xlane.f32.xlu0 %v6398_v59 }
 0x984   : > { %2184 = vadd.xlane.f32.xlu1 %v6374_v38 }
 0x986   : > { %1726 = vadd.xlane.f32.xlu0 %v6100_v32  ;;  %v7505_v32 = vld [vmem:[#allocation7_spill] sm:$0xff] }
 0x988   : > { %2186 = vadd.xlane.f32.xlu1 %v6372_v6  ;;  %v7507_v6 = vld [vmem:[#allocation39_spill] sm:$0xff] }
 0x98a   : > { %1730 = vadd.xlane.f32.xlu0 %v6108_v15 }
 0x98c   : > { %2188 = vadd.xlane.f32.xlu1 %v6378_v27 }
 0x98e   : > { %2200 = vadd.xlane.f32.xlu0 %v6408_v55 }
 0x990   : > { %2190 = vadd.xlane.f32.xlu1 %v6381_v60 }
 0x992   : > { %2204 = vadd.xlane.f32.xlu0 %v6416_v63 }
 0x994   : > { %1720 = vadd.xlane.f32.xlu1 %v6083_v19 }
 0x996   : > { %1734 = vadd.xlane.f32.xlu0 %v6129_v47 }
 0x998   : > { %1724 = vadd.xlane.f32.xlu1 %v7499_v49 }
 0x99a   : > { %1738 = vadd.xlane.f32.xlu0 %v7500_v50 }
 0x99c   : > { %2194 = vadd.xlane.f32.xlu1 %v6391_v39  ;;  %v7508_v39 = vld [vmem:[#allocation38_spill] sm:$0xff] }
 0x99e   : > { %2208 = vadd.xlane.f32.xlu0 %v6437_v1 }
 0x9a0   : > { %2198 = vadd.xlane.f32.xlu1 %v6400_v56 }
 0x9a2   : > { %2212 = vadd.xlane.f32.xlu0 %v6444_v30 }
 0x9a4   : > { %1728 = vadd.xlane.f32.xlu1 %v7501_v13 }
 0x9a6   : > { %1236 = vadd.xlane.f32.xlu0 %v7502_v25  ;;  %v7510_v25 = vld [vmem:[#allocation6_spill] sm:$0xff] }
 0x9a8   : > { %1732 = vadd.xlane.f32.xlu1 %v7503_v57 }
 0x9aa   : > { %1240 = vadd.xlane.f32.xlu0 %v7504_v42 }
 0x9ac   : > { %v2583_v22 = vpop.xlane.xlu1 %2582  ;;  %2202 = vadd.xlane.f32.xlu1 %v6412_v5 }
 0x9ad   : > { %v2612_v19 = vsub.f32 %v6491_v10, %v2583_v22  ;;  %v2579_v14 = vpop.xlane.xlu0 %2578 }
 0x9ae   : > { %1244 = vadd.xlane.f32.xlu0 %v7505_v32  ;;  %v2610_v47 = vsub.f32 %v6494_v51, %v2579_v14  ;;  %v7511_v14 = vld [vmem:[#allocation8_spill] sm:$0xff] }
 0x9af   : > { %v2630_v15 = vmul.f32 1.442695, %v2612_v19 }
 0x9b0   : > { %v2585_v41 = vpop.xlane.xlu1 %2584  ;;  %2206 = vadd.xlane.f32.xlu1 %v6410_v36  ;;  %v2626_v8 = vmul.f32 1.442695, %v2610_v47  ;;  %v7512_v47 = vld [vmem:[#allocation10_spill] sm:$0xff] }
 0x9b1   : > { %4914 = vpow2.f32 %v2630_v15  ;;  %v2613_v5 = vsub.f32 %v6499_v4, %v2585_v41 }
 0x9b2   : > { %1248 = vadd.xlane.f32.xlu0 %v7506_v34  ;;  %4916 = vpow2.f32 %v2626_v8 }
 0x9b3   : > { %v2632_v10 = vmul.f32 1.442695, %v2613_v5  ;;  %v7514_v5 = vld [vmem:[#allocation12_spill] sm:$0xff] }
 0x9b4   : > { %v2581_v28 = vpop.xlane.xlu1 %2580  ;;  %1736 = vadd.xlane.f32.xlu1 %v7507_v6 }
 0x9b5   : > { %v2611_v38 = vsub.f32 %v6503_v11, %v2581_v28  ;;  %v2587_v27 = vpop.xlane.xlu0 %2586 }
 0x9b6   : > { %v2614_v59 = vsub.f32 %v6506_v31, %v2587_v27 }
 0x9b7   : > { %v2628_v60 = vmul.f32 1.442695, %v2611_v38 }
 0x9b8   : > { %v2591_v12 = vpop.xlane.xlu1 %2590  ;;  %1740 = vadd.xlane.f32.xlu1 %v7508_v39  ;;  %v2634_v1 = vmul.f32 1.442695, %v2614_v59 }
 0x9b9   : > { %4918 = vpow2.f32 %v2628_v60  ;;  %v2616_v56 = vsub.f32 %v6511_v53, %v2591_v12 }
 0x9bb   : > { %v6597_v55 = vpop.eup %4914  ;;  %v2638_v36 = vmul.f32 1.442695, %v2616_v56 }
 0x9bc   : > { %v2593_v63 = vpop.xlane.xlu1 %2592  ;;  %2662 = vadd.xlane.f32.xlu0 %v6597_v55  ;;  %2210 = vadd.xlane.f32.xlu1 %v6442_v33  ;;  %v4917_v31 = vpop.eup %4916 }
 0x9bd   : > { %4920 = vpow2.f32 %v2638_v36  ;;  %v2617_v30 = vsub.f32 %v6515_v40, %v2593_v63  ;;  %v7513_v36 = vld [vmem:[#allocation13_spill] sm:$0xff] }
 0x9be   : > { %v2601_v11 = vpop.xlane.xlu0 %2600  ;;  %4922 = vpow2.f32 %v2634_v1 }
 0x9bf   : > { %v2640_v46 = vmul.f32 1.442695, %v2617_v30  ;;  %4924 = vpow2.f32 %v2632_v10  ;;  %v2621_v49 = vsub.f32 %v6518_v44, %v2601_v11 }
 0x9c0   : > { %v2589_v51 = vpop.xlane.xlu1 %2588  ;;  %2214 = vadd.xlane.f32.xlu1 %v6440_v61 }
 0x9c1   : > { %v2615_v53 = vsub.f32 %v6522_v18, %v2589_v51  ;;  %v2648_v19 = vmul.f32 1.442695, %v2621_v49  ;;  %v7515_v51 = vld [vmem:[#allocation17_spill] sm:$0xff] }
 0x9c2   : > { %v2597_v4 = vpop.xlane.xlu0 %2596 }
 0x9c3   : > { %v4919_v3 = vpop.eup %4918  ;;  %v2636_v45 = vmul.f32 1.442695, %v2615_v53  ;;  %v2619_v33 = vsub.f32 %v6526_v58, %v2597_v4  ;;  %v7516_v4 = vld [vmem:[#allocation16_spill] sm:$0xff] }
 0x9c4   : > { %v2599_v0 = vpop.xlane.xlu1 %2598  ;;  %1238 = vadd.xlane.f32.xlu1 %v7509_v21  ;;  %v2690_v40 = vpack.c.bf16 %v4919_v3, %v4917_v31 }
 0x9c5   : > { %4926 = vpow2.f32 %v2636_v45  ;;  %v2620_v29 = vsub.f32 %v6530_v48, %v2599_v0  ;;  %v2644_v50 = vmul.f32 1.442695, %v2619_v33 }
 0x9c6   : > { %4928 = vpow2.f32 %v2640_v46  ;;  %4598 = vmatprep.mubr.bf16.mxu0 %v2690_v40  ;;  %v2609_v61 = vpop.xlane.xlu0 %2608 }
 0x9c7   : > { %v4921_v9 = vpop.eup %4920  ;;  %v2646_v18 = vmul.f32 1.442695, %v2620_v29  ;;  %v2625_v39 = vsub.f32 %v6534_v16, %v2609_v61 }
 0x9c8   : > { %v2595_v13 = vpop.xlane.xlu1 %2594  ;;  %2670 = vadd.xlane.f32.xlu0 %v4921_v9  ;;  %1242 = vadd.xlane.f32.xlu1 %v7510_v25  ;;  %v4923_v42 = vpop.eup %4922  ;;  %v7518_v25 = vld [vmem:[#allocation44_spill] sm:$0xff] }
 0x9c9   : > { %4930 = vpow2.f32 %v2646_v18  ;;  %v2618_v58 = vsub.f32 %v6538_v24, %v2595_v13  ;;  %v4925_v44 = vpop.eup %4924  ;;  %v2656_v59 = vmul.f32 1.442695, %v2625_v39  ;;  %v7523_v39 = vld [vmem:[#allocation15_spill] sm:$0xff] }
 0x9ca   : > { %v2605_v57 = vpop.xlane.xlu0 %2604  ;;  %4932 = vpow2.f32 %v2644_v50  ;;  %v2691_v8 = vpack.c.bf16 %v4925_v44, %v6597_v55  ;;  %v7517_v50 = vld [vmem:[#allocation42_spill] sm:$0xff] }
 0x9cb   : > { %v2642_v22 = vmul.f32 1.442695, %v2618_v58  ;;  %v2623_v56 = vsub.f32 %v6542_v35, %v2605_v57 }
 0x9cc   : > { %v2711_v48 = vpop.permute.xlu1 %2710  ;;  %1246 = vadd.xlane.f32.xlu1 %v7511_v14  ;;  %2666 = vadd.xlane.f32.xlu0 %v4923_v42 }
 0x9cd   : > { %4934 = vpow2.f32 %v2642_v22  ;;  %4594 = vmatprep.subr.bf16.mxu0 %v2711_v48  ;;  %4692 = vmatprep.subr.bf16.mxu1 %v2711_v48  ;;  %v2652_v55 = vmul.f32 1.442695, %v2623_v56 }
 0x9ce   : > { %4595 = vmatpush3.bf16.msra.mxu0 %v2711_v48  ;;  %4700 = vmatpush3.bf16.msra.mxu1 %v2711_v48  ;;  %v2713_v32 = vpop.permute.xlu0 %2712  ;;  %4936 = vpow2.f32 %v2648_v19 }
 0x9cf   : > { %v4927_v15 = vpop.eup %4926  ;;  %4596 = vmatprep.subr.bf16.mxu0 %v2713_v32  ;;  %4693 = vmatprep.subr.bf16.mxu1 %v2713_v32  ;;  %4938 = vpow2.f32 %v2656_v59 }
 0x9d0   : > { %v4929_v24 = vpop.eup %4928  ;;  %1250 = vadd.xlane.f32.xlu1 %v7512_v47  ;;  %v2692_v41 = vpack.c.bf16 %v4927_v15, %v4923_v42  ;;  %4940 = vpow2.f32 %v2652_v55  ;;  %v7521_v47 = vld [vmem:[#allocation43_spill] sm:$0xff] }
 0x9d1   : > { %v2693_v28 = vpack.c.bf16 %v4929_v24, %v4921_v9 }
 0x9d2   : > { %4597 = vmatpush3.bf16.msra.mxu0 %v2713_v32  ;;  %4701 = vmatpush3.bf16.msra.mxu1 %v2713_v32  ;;  %v7519_v32 = vld [vmem:[#allocation11_spill] sm:$0xff] }
 0x9d3   : > { %v4931_v34 = vpop.eup %4930  ;;  %4602 = vmatprep.mubr.bf16.mxu1 %v2692_v41 }
 0x9d4   : > { %2658 = vadd.xlane.f32.xlu1 %v4917_v31  ;;  %2678 = vadd.xlane.f32.xlu0 %v4931_v34  ;;  %v4933_v6 = vpop.eup %4932 }
 0x9d5   : > { %4599 = vmatmul.mubr.bf16.vlgmr.msra.gmra.mrb[80].mxu0 %v2691_v8  ;;  %4603 = vmatmul.mubr.bf16.vlgmr.msra.gmra.mrb[48].mxu1 %v2693_v28 }
 0x9d7   : > { %v4935_v38 = vpop.eup %4934 }
 0x9d8   : > { %2664 = vadd.xlane.f32.xlu1 %v4925_v44  ;;  %2674 = vadd.xlane.f32.xlu0 %v4935_v38  ;;  %v2694_v27 = vpack.c.bf16 %v4933_v6, %v4935_v38  ;;  %v4937_v60 = vpop.eup %4936 }
 0x9d9   : > { %v2695_v12 = vpack.c.bf16 %v4937_v60, %v4931_v34  ;;  %v4939_v63 = vpop.eup %4938 }
 0x9da   : > { %4606 = vmatprep.mubr.bf16.mxu1 %v2694_v27  ;;  %v4941_v1 = vpop.eup %4940 }
 0x9dc   : > { %2660 = vadd.xlane.f32.xlu1 %v4919_v3 }
 0x9dd   : > { %4607 = vmatmul.mubr.bf16.gmra.mrb[52].mxu1 %v2695_v12 }
 0x9e0   : > { %2672 = vadd.xlane.f32.xlu1 %v4929_v24 }
 0x9e4   : > { %2668 = vadd.xlane.f32.xlu1 %v4927_v15  ;;  %v7520_v15 = vld [vmem:[#allocation41_spill] sm:$0xff] }
 0x9e8   : > { %2680 = vadd.xlane.f32.xlu1 %v4937_v60 }
 0x9ec   : > { %2676 = vadd.xlane.f32.xlu1 %v4933_v6  ;;  %v7522_v6 = vld [vmem:[#allocation14_spill] sm:$0xff] }
 0x9f0   : > { %1254 = vadd.xlane.f32.xlu1 %v7513_v36 }
 0x9f4   : > { %1258 = vadd.xlane.f32.xlu1 %v7514_v5 }
 0x9f8   : > { %2688 = vadd.xlane.f32.xlu1 %v4939_v63 }
 0x9fc   : > { %2684 = vadd.xlane.f32.xlu1 %v4941_v1 }
 0x9fd   : > { %v2603_v30 = vpop.xlane.xlu1 %2602 }
 0x9fe   : > { %v2622_v11 = vsub.f32 %v6551_v2, %v2603_v30 }
 0x9ff   : > { %v1713_v16 = vpop.xlane.xlu0 %1712 }
 0xa00   : > { %v2650_v10 = vmul.f32 1.442695, %v2622_v11  ;;  %1262 = vadd.xlane.f32.xlu1 %v7515_v51 }
 0xa01   : > { %v2607_v35 = vpop.xlane.xlu1 %2606 }
 0xa02   : > { %4942 = vpow2.f32 %v2650_v10  ;;  %v2624_v53 = vsub.f32 %v6555_v37, %v2607_v35 }
 0xa03   : > { %v1719_v31 = vpop.xlane.xlu0 %1718  ;;  %4944 = vrcp.f32 %v1713_v16 }
 0xa04   : > { %v2654_v46 = vmul.f32 1.442695, %v2624_v53  ;;  %1266 = vadd.xlane.f32.xlu1 %v7516_v4 }
 0xa05   : > { %v1711_v3 = vpop.xlane.xlu1 %1710 }
 0xa06   : > { %4946 = vpow2.f32 %v2654_v46  ;;  %v7525_v46 = vld [vmem:[#allocation46_spill] sm:$0xff] }
 0xa07   : > { %4948 = vrcp.f32 %v1711_v3  ;;  %v1723_v45 = vpop.xlane.xlu0 %1722  ;;  %v7526_v3 = vld [vmem:[#allocation48_spill] sm:$0xff] }
 0xa09   : > { %v1715_v33 = vpop.xlane.xlu1 %1714 }
 0xa0a   : > { %4950 = vrcp.f32 %v1715_v33 }
 0xa0b   : > { %v2193_v0 = vpop.xlane.xlu0 %2192 }
 0xa0c   : > { %v4943_v2 = vpop.eup %4942 }
 0xa0d   : > { %v1717_v21 = vpop.xlane.xlu1 %1716  ;;  %v2696_v40 = vpack.c.bf16 %v4941_v1, %v4943_v2  ;;  %v4945_v29 = vpop.eup %4944 }
 0xa0e   : > { %4952 = vrcp.f32 %v1717_v21  ;;  %v6626_v58 = vmul.f32 %v4945_v29, %v7518_v25  ;;  %v7527_v21 = vld [vmem:[#allocation45_spill] sm:$0xff]  ;;  %v7528_v29 = vld [vmem:[#allocation47_spill] sm:$0xff] }
 0xa0f   : > { %4610 = vmatprep.mubr.bf16.mxu1 %v2696_v40  ;;  %v2197_v61 = vpop.xlane.xlu0 %2196 }
 0xa10   : > { %v4947_v37 = vpop.eup %4946 }
 0xa11   : > { %v4949_v9 = vpop.eup %4948  ;;  %v2185_v18 = vpop.xlane.xlu1 %2184  ;;  %2686 = vadd.xlane.f32.xlu0 %v4947_v37  ;;  %v2697_v49 = vpack.c.bf16 %v4939_v63, %v4947_v37  ;;  %v7524_v63 = vld [vmem:[#allocation18_spill] sm:$0xff] }
 0xa12   : > { %v6623_v13 = vmul.f32 %v4949_v9, %v7517_v50  ;;  %4954 = vrcp.f32 %v2185_v18 }
 0xa13   : > { %4611 = vmatmul.mubr.bf16.gmra.mrb[56].mxu1 %v2697_v49  ;;  %v1727_v57 = vpop.xlane.xlu0 %1726 }
 0xa14   : > { %v1903_v42 = vpack.c.bf16 %v6626_v58, %v6623_v13  ;;  %v4951_v19 = vpop.eup %4950  ;;  %v7531_v13 = vld [vmem:[#allocation20_spill] sm:$0xff] }
 0xa15   : > { %v2187_v22 = vpop.xlane.xlu1 %2186  ;;  %2682 = vadd.xlane.f32.xlu0 %v4943_v2  ;;  %v1889_v24 = vmul.f32 %v4951_v19, %v7520_v15 }
 0xa16   : > { %4956 = vrcp.f32 %v2187_v22 }
 0xa17   : > { %v1731_v48 = vpop.xlane.xlu0 %1730 }
 0xa18   : > { %v4953_v14 = vpop.eup %4952 }
 0xa19   : > { %v2189_v44 = vpop.xlane.xlu1 %2188  ;;  %1252 = vadd.xlane.f32.xlu0 %v7519_v32  ;;  %v1890_v41 = vmul.f32 %v4953_v14, %v7521_v47 }
 0xa1a   : > { %4958 = vrcp.f32 %v2189_v44 }
 0xa1b   : > { %v2201_v34 = vpop.xlane.xlu0 %2200  ;;  %v1904_v8 = vpack.c.bf16 %v1890_v41, %v1889_v24 }
 0xa1c   : > { %v4955_v38 = vpop.eup %4954 }
 0xa1d   : > { %v2191_v28 = vpop.xlane.xlu1 %2190  ;;  %1256 = vadd.xlane.f32.xlu0 %v7522_v6  ;;  %2869 = vrot.lane.b32.xlu1 %v1904_v8, %s5221_s24  ;;  %v2361_v59 = vmul.f32 %v4955_v38, %v6460_v54  ;;  %v7529_v8 = vld [vmem:[#allocation50_spill] sm:$0xff] }
 0xa1e   : > { %4960 = vrcp.f32 %v2191_v28 }
 0xa1f   : > { %v6635_v27 = vpop.xlane.xlu0 %2204  ;;  %4962 = vrcp.f32 %v1719_v31 }
 0xa20   : > { %v4957_v60 = vpop.eup %4956 }
 0xa21   : > { %v1721_v12 = vpop.xlane.xlu1 %1720  ;;  %1260 = vadd.xlane.f32.xlu0 %v7523_v39  ;;  %v2362_v56 = vmul.f32 %v4957_v60, %v6464_v23  ;;  %v7532_v39 = vld [vmem:[#allocation49_spill] sm:$0xff] }
 0xa22   : > { %4964 = vrcp.f32 %v1721_v12 }
 0xa23   : > { %v6640_v55 = vpop.xlane.xlu0 %1734  ;;  %v2377_v36 = vpack.c.bf16 %v2362_v56, %v2361_v59  ;;  %4966 = vrcp.f32 %v1723_v45  ;;  %v7533_v56 = vld [vmem:[#allocation51_spill] sm:$0xff] }
 0xa24   : > { %v4959_v1 = vpop.eup %4958 }
 0xa25   : > { %v1725_v5 = vpop.xlane.xlu1 %1724  ;;  %1264 = vadd.xlane.f32.xlu0 %v7524_v63  ;;  %2891 = vrot.lane.b32.xlu1 %v2377_v36, %s5222_s23  ;;  %v2363_v23 = vmul.f32 %v4959_v1, %v6458_v43  ;;  %v7534_v63 = vld [vmem:[#allocation19_spill] sm:$0xff] }
 0xa26   : > { %4968 = vrcp.f32 %v1725_v5 }
 0xa27   : > { %v6644_v30 = vpop.xlane.xlu0 %1738  ;;  %4970 = vrcp.f32 %v2193_v0 }
 0xa28   : > { %v4961_v11 = vpop.eup %4960 }
 0xa29   : > { %v2195_v54 = vpop.xlane.xlu1 %2194  ;;  %v2364_v16 = vmul.f32 %v4961_v11, %v6462_v17  ;;  %v4963_v10 = vpop.eup %4962 }
 0xa2a   : > { %4972 = vrcp.f32 %v2195_v54  ;;  %v1891_v4 = vmul.f32 %v4963_v10, %v7525_v46  ;;  %v7535_v10 = vld [vmem:[#allocation59_spill] sm:$0xff] }
 0xa2b   : > { %v6648_v51 = vpop.xlane.xlu0 %2208  ;;  %v2378_v35 = vpack.c.bf16 %v2364_v16, %v2363_v23  ;;  %4974 = vrcp.f32 %v2197_v61 }
 0xa2c   : > { %v4965_v53 = vpop.eup %4964 }
 0xa2d   : > { %v2199_v31 = vpop.xlane.xlu1 %2198  ;;  %v1892_v45 = vmul.f32 %v4965_v53, %v7526_v3  ;;  %v4967_v33 = vpop.eup %4966 }
 0xa2e   : > { %4976 = vrcp.f32 %v2199_v31  ;;  %v1893_v40 = vmul.f32 %v4967_v33, %v7527_v21  ;;  %v7536_v31 = vld [vmem:[#allocation24_spill] sm:$0xff] }
 0xa2f   : > { %v6652_v0 = vpop.xlane.xlu0 %2212  ;;  %v1905_v2 = vpack.c.bf16 %v1892_v45, %v1891_v4  ;;  %4978 = vrcp.f32 %v1727_v57 }
 0xa30   : > { %v4969_v43 = vpop.eup %4968 }
 0xa31   : > { %v1729_v17 = vpop.xlane.xlu1 %1728  ;;  %2871 = vrot.lane.b32.xlu1 %v1905_v2, %s5221_s24  ;;  %v1894_v37 = vmul.f32 %v4969_v43, %v7528_v29  ;;  %v4971_v61 = vpop.eup %4970  ;;  %v7538_v2 = vld [vmem:[#allocation58_spill] sm:$0xff] }
 0xa32   : > { %4980 = vrcp.f32 %v1729_v17  ;;  %v2365_v25 = vmul.f32 %v4971_v61, %v6468_v62  ;;  %v7540_v61 = vld [vmem:[#allocation54_spill] sm:$0xff] }
 0xa33   : > { %4982 = vrcp.f32 %v1731_v48  ;;  %v1237_v9 = vpop.xlane.xlu0 %1236  ;;  %v1906_v18 = vpack.c.bf16 %v1894_v37, %v1893_v40  ;;  %v7539_v40 = vld [vmem:[#allocation23_spill] sm:$0xff] }
 0xa34   : > { %v4973_v49 = vpop.eup %4972  ;;  %4984 = vrcp.f32 %v1237_v9 }
 0xa35   : > { %v1733_v50 = vpop.xlane.xlu1 %1732  ;;  %v2366_v22 = vmul.f32 %v4973_v49, %v6472_v7  ;;  %v4975_v57 = vpop.eup %4974 }
 0xa36   : > { %4986 = vrcp.f32 %v1733_v50  ;;  %v2367_v48 = vmul.f32 %v4975_v57, %v6466_v20  ;;  %v7530_v20 = vld [vmem:[#allocation52_spill] sm:$0xff] }
 0xa37   : > { %4988 = vrcp.f32 %v2201_v34  ;;  %v1241_v19 = vpop.xlane.xlu0 %1240  ;;  %v2379_v14 = vpack.c.bf16 %v2366_v22, %v2365_v25 }
 0xa38   : > { %v4977_v44 = vpop.eup %4976  ;;  %4990 = vrcp.f32 %v1241_v19  ;;  %v7542_v19 = vld [vmem:[#allocation53_spill] sm:$0xff] }
 0xa39   : > { %v2203_v32 = vpop.xlane.xlu1 %2202  ;;  %2895 = vrot.lane.b32.xlu1 %v2379_v14, %s5222_s23  ;;  %v2368_v15 = vmul.f32 %v4977_v44, %v6470_v52  ;;  %v4979_v24 = vpop.eup %4978  ;;  %v7543_v44 = vld [vmem:[#allocation55_spill] sm:$0xff] }
 0xa3a   : > { %4992 = vrcp.f32 %v2203_v32  ;;  %v1895_v28 = vmul.f32 %v4979_v24, %v7529_v8 }
 0xa3b   : > { %4994 = vrcp.f32 %v6635_v27  ;;  %2867 = vrot.lane.b32.xlu0 %v1903_v42, %s5221_s24  ;;  %v1245_v62 = vpop.xlane.xlu0 %1244  ;;  %v2380_v7 = vpack.c.bf16 %v2368_v15, %v2367_v48 }
 0xa3c   : > { %v4981_v47 = vpop.eup %4980  ;;  %4996 = vrcp.f32 %v1245_v62  ;;  %v7544_v62 = vld [vmem:[#allocation61_spill] sm:$0xff] }
 0xa3d   : > { %v4983_v41 = vpop.eup %4982  ;;  %v2207_v34 = vpop.xlane.xlu1 %2206  ;;  %v1896_v6 = vmul.f32 %v4981_v47, %v7530_v20  ;;  %v7545_v47 = vld [vmem:[#allocation63_spill] sm:$0xff] }
 0xa3e   : > { %v4985_v52 = vpop.eup %4984  ;;  %4998 = vrcp.f32 %v2207_v34  ;;  %v1897_v59 = vmul.f32 %v4983_v41, %v7532_v39 }
 0xa3f   : > { %5000 = vrcp.f32 %v6640_v55  ;;  %2893 = vrot.lane.b32.xlu0 %v2378_v35, %s5222_s23  ;;  %v1249_v38 = vpop.xlane.xlu0 %1248  ;;  %v1907_v27 = vpack.c.bf16 %v1896_v6, %v1895_v28  ;;  %v6672_v58 = vmul.f32 %v4985_v52, %v7531_v13  ;;  %v7546_v6 = vld [vmem:[#allocation60_spill] sm:$0xff] }
 0xa40   : > { %v4987_v42 = vpop.eup %4986  ;;  %5002 = vrcp.f32 %v1249_v38  ;;  %v7547_v38 = vld [vmem:[#allocation62_spill] sm:$0xff] }
 0xa41   : > { %v4989_v60 = vpop.eup %4988  ;;  %v1737_v12 = vpop.xlane.xlu1 %1736  ;;  %2875 = vrot.lane.b32.xlu1 %v1907_v27, %s5221_s24  ;;  %v1898_v36 = vmul.f32 %v4987_v42, %v7533_v56 }
 0xa42   : > { %v4991_v5 = vpop.eup %4990  ;;  %5004 = vrcp.f32 %v1737_v12  ;;  %v6683_v16 = vmul.f32 %v4989_v60, %v6476_v26  ;;  %v7537_v26 = vld [vmem:[#allocation57_spill] sm:$0xff]  ;;  %v7548_v12 = vld [vmem:[#allocation22_spill] sm:$0xff] }
 0xa43   : > { %2873 = vrot.lane.b32.xlu0 %v1906_v18, %s5221_s24  ;;  %v1908_v55 = vpack.c.bf16 %v1898_v36, %v1897_v59  ;;  %v6679_v1 = vmul.f32 %v4991_v5, %v7534_v63  ;;  %5006 = vrcp.f32 %v6644_v30  ;;  %v7541_v18 = vld [vmem:[#allocation56_spill] sm:$0xff]  ;;  %v7549_v5 = vld [vmem:[#allocation21_spill] sm:$0xff] }
 0xa44   : > { %v4993_v11 = vpop.eup %4992 }
 0xa45   : > { %v4995_v54 = vpop.eup %4994  ;;  %v1741_v23 = vpop.xlane.xlu1 %1740  ;;  %v6686_v35 = vmul.f32 %v4993_v11, %v7535_v10 }
 0xa46   : > { %v4997_v53 = vpop.eup %4996  ;;  %5008 = vrcp.f32 %v1741_v23  ;;  %v6696_v33 = vmul.f32 %v4995_v54, %v7537_v26  ;;  %v7550_v23 = vld [vmem:[#allocation26_spill] sm:$0xff] }
 0xa47   : > { %2897 = vrot.lane.b32.xlu0 %v2380_v7, %s5222_s23  ;;  %v6690_v46 = vmul.f32 %v4997_v53, %v7536_v31  ;;  %v2381_v4 = vpack.c.bf16 %v6686_v35, %v6683_v16  ;;  %5010 = vrcp.f32 %v6648_v51  ;;  %v7558_v16 = vld [vmem:[#allocation32_spill] sm:$0xff] }
 0xa48   : > { %v4999_v3 = vpop.eup %4998 }
 0xa49   : > { %v5001_v30 = vpop.eup %5000  ;;  %v2211_v45 = vpop.xlane.xlu1 %2210  ;;  %v6699_v43 = vmul.f32 %v4999_v3, %v7538_v2 }
 0xa4a   : > { %v5003_v17 = vpop.eup %5002  ;;  %5012 = vrcp.f32 %v2211_v45  ;;  %v6709_v9 = vmul.f32 %v5001_v30, %v7540_v61  ;;  %v7551_v30 = vld [vmem:[#allocation25_spill] sm:$0xff] }
 0xa4b   : > { %2877 = vrot.lane.b32.xlu0 %v1908_v55, %s5221_s24  ;;  %v2382_v21 = vpack.c.bf16 %v6699_v43, %v6696_v33  ;;  %v6705_v29 = vmul.f32 %v5003_v17, %v7539_v40  ;;  %5014 = vrcp.f32 %v6652_v0  ;;  %v4774_v17 = vld [vmem:[%s7404_s3] sm:$0xff]   ;;  %v4775_v40 = vld [vmem:[%s7404_s3 + $0x8] sm:$0xff]  }
 0xa4c   : > { %v5005_v37 = vpop.eup %5004  ;;  %4614 = vmatprep.subr.bf16.mxu1 %v4774_v17 }
 0xa4d   : > { %v2215_v51 = vpop.xlane.xlu1 %2214  ;;  %v6712_v49 = vmul.f32 %v5005_v37, %v7541_v18  ;;  %v5007_v50 = vpop.eup %5006  ;;  %4615 = vmatpush3.bf16.msra.mxu1 %v4774_v17 }
 0xa4e   : > { %5016 = vrcp.f32 %v2215_v51  ;;  %v6717_v14 = vmul.f32 %v5007_v50, %v7542_v19  ;;  %4616 = vmatprep.subr.bf16.mxu1 %v4775_v40 }
 0xa4f   : > { %v1909_v25 = vpack.c.bf16 %v6712_v49, %v6709_v9 }
 0xa50   : > { %v5009_v22 = vpop.eup %5008 }
 0xa51   : > { %v1239_v57 = vpop.xlane.xlu1 %1238  ;;  %v6720_v32 = vmul.f32 %v5009_v22, %v7543_v44  ;;  %v5011_v0 = vpop.eup %5010  ;;  %4617 = vmatpush3.bf16.msra.mxu1 %v4775_v40 }
 0xa52   : > { %5018 = vrcp.f32 %v1239_v57  ;;  %v6725_v7 = vmul.f32 %v5011_v0, %v7544_v62  ;;  %v2663_v57 = vpop.xlane.xlu0 %2662  ;;  %v7552_v0 = vld [vmem:[#allocation30_spill] sm:$0xff] }
 0xa53   : > { %v1910_v48 = vpack.c.bf16 %v6720_v32, %v6717_v14 }
 0xa54   : > { %v5013_v15 = vpop.eup %5012 }
 0xa55   : > { %v1243_v24 = vpop.xlane.xlu1 %1242  ;;  %v6728_v41 = vmul.f32 %v5013_v15, %v7545_v47  ;;  %v5015_v34 = vpop.eup %5014 }
 0xa56   : > { %5020 = vrcp.f32 %v1243_v24  ;;  %v6733_v52 = vmul.f32 %v5015_v34, %v7546_v6  ;;  %v2671_v24 = vpop.xlane.xlu0 %2670  ;;  %v7553_v34 = vld [vmem:[#allocation29_spill] sm:$0xff] }
 0xa57   : > { %v7560_v9 = vpack.c.bf16 %v6728_v41, %v6725_v7 }
 0xa58   : > { %v5017_v28 = vpop.eup %5016 }
 0xa59   : > { %v1247_v20 = vpop.xlane.xlu1 %1246  ;;  %v6736_v27 = vmul.f32 %v5017_v28, %v7547_v38 }
 0xa5a   : > { %5022 = vrcp.f32 %v1247_v20  ;;  %v2667_v20 = vpop.xlane.xlu0 %2666 }
 0xa5b   : > { %v2384_v13 = vpack.c.bf16 %v6736_v27, %v6733_v52 }
 0xa5c   : > { %v5019_v42 = vpop.eup %5018 }
 0xa5d   : > { %v1251_v60 = vpop.xlane.xlu1 %1250  ;;  %v6741_v39 = vmul.f32 %v5019_v42, %v7548_v12 }
 0xa5e   : > { %5024 = vrcp.f32 %v1251_v60  ;;  %v7554_v60 = vld [vmem:[#allocation34_spill] sm:$0xff] }
 0xa60   : > { %v5021_v56 = vpop.eup %5020 }
 0xa61   : > { %v2659_v36 = vpop.xlane.xlu1 %2658  ;;  %v6746_v55 = vmul.f32 %v5021_v56, %v7549_v5  ;;  %v2679_v38 = vpop.xlane.xlu0 %2678 }
 0xa64   : > { %v5023_v11 = vpop.eup %5022 }
 0xa65   : > { %v2665_v54 = vpop.xlane.xlu1 %2664  ;;  %v6751_v10 = vmul.f32 %v5023_v11, %v7550_v23  ;;  %v2675_v56 = vpop.xlane.xlu0 %2674  ;;  %v7555_v11 = vld [vmem:[#allocation33_spill] sm:$0xff] }
 0xa68   : > { %v5025_v31 = vpop.eup %5024 }
 0xa69   : > { %v2661_v3 = vpop.xlane.xlu1 %2660  ;;  %v6756_v45 = vmul.f32 %v5025_v31, %v7551_v30 }
 0xa6d   : > { %v2673_v2 = vpop.xlane.xlu1 %2672 }
 0xa71   : > { %v2669_v37 = vpop.xlane.xlu1 %2668 }
 0xa75   : > { %v2681_v51 = vpop.xlane.xlu1 %2680 }
 0xa79   : > { %v2677_v61 = vpop.xlane.xlu1 %2676 }
 0xa7d   : > { %v1255_v18 = vpop.xlane.xlu1 %1254 }
 0xa7e   : > { %5026 = vrcp.f32 %v1255_v18 }
 0xa81   : > { %v1259_v50 = vpop.xlane.xlu1 %1258 }
 0xa82   : > { %5028 = vrcp.f32 %v1259_v50 }
 0xa85   : > { %v6766_v22 = vpop.xlane.xlu1 %2688 }
 0xa88   : > { %v5027_v19 = vpop.eup %5026 }
 0xa89   : > { %v6768_v44 = vpop.xlane.xlu1 %2684  ;;  %v6771_v15 = vmul.f32 %v5027_v19, %v7552_v0 }
 0xa8c   : > { %v5029_v62 = vpop.eup %5028 }
 0xa8d   : > { %v1263_v47 = vpop.xlane.xlu1 %1262  ;;  %v6774_v28 = vmul.f32 %v5029_v62, %v7553_v34 }
 0xa8e   : > { %5030 = vrcp.f32 %v1263_v47 }
 0xa91   : > { %v1267_v6 = vpop.xlane.xlu1 %1266 }
 0xa92   : > { %5032 = vrcp.f32 %v1267_v6 }
 0xa93   : > { %5034 = vrcp.f32 %v2663_v57 }
 0xa94   : > { %5036 = vrcp.f32 %v2671_v24 }
 0xa95   : > { %5038 = vrcp.f32 %v2667_v20 }
 0xa96   : > { %5040 = vrcp.f32 %v2659_v36 }
 0xa97   : > { %5042 = vrcp.f32 %v2665_v54 }
 0xa98   : > { %v5031_v42 = vpop.eup %5030  ;;  %5044 = vrcp.f32 %v2673_v2 }
 0xa99   : > { %v6777_v12 = vmul.f32 %v5031_v42, %v7554_v60  ;;  %5046 = vrcp.f32 %v2661_v3 }
 0xa9a   : > { %5048 = vrcp.f32 %v2669_v37 }
 0xa9b   : > { %5050 = vrcp.f32 %v2679_v38 }
 0xa9c   : > { %v5033_v5 = vpop.eup %5032  ;;  %5052 = vrcp.f32 %v2675_v56 }
 0xa9d   : > { %v6780_v23 = vmul.f32 %v5033_v5, %v7555_v11  ;;  %v5035_v17 = vpop.eup %5034 }
 0xa9e   : > { %v6782_v31 = vpop.xlane.xlu0 %2686  ;;  %v5037_v40 = vpop.eup %5036 }
 0xa9f   : > { %v5039_v50 = vpop.eup %5038 }
 0xaa0   : > { %v5041_v57 = vpop.eup %5040 }
 0xaa1   : > { %v5043_v36 = vpop.eup %5042 }
 0xaa2   : > { %v6784_v30 = vpop.xlane.xlu0 %2682  ;;  %v5045_v2 = vpop.eup %5044 }
 0xaa3   : > { %v5047_v62 = vpop.eup %5046 }
 0xaa4   : > { %v5049_v60 = vpop.eup %5048 }
 0xaa5   : > { %v5051_v63 = vpop.eup %5050 }
 0xaa6   : > { %v1253_v18 = vpop.xlane.xlu0 %1252 }
 0xaa7   : > { %5054 = vrcp.f32 %v1253_v18 }
 0xaa8   : > { %5056 = vrcp.f32 %v2681_v51  ;;  %v4600_v19 = vpop.f32.mrb[80].mxu0  ;;  %v4604_v0 = vpop.f32.mrb[48].mxu1 }
 0xaa9   : > { %5058 = vrcp.f32 %v2677_v61  ;;  %v2756_v24 = vpop.f32.mrb[81].mxu0  ;;  %v2772_v54 = vpop.f32.mrb[49].mxu1  ;;  %v2837_v47 = vmul.f32 %v5035_v17, %v4600_v19  ;;  %v2841_v34 = vmul.f32 %v5037_v40, %v4604_v0 }
 0xaaa   : > { %v4601_v3 = vpop.f32.mrb[82].mxu0  ;;  %v4605_v37 = vpop.f32.mrb[50].mxu1  ;;  %v2835_v56 = vmul.f32 %v5041_v57, %v2756_v24  ;;  %v2839_v11 = vmul.f32 %v5039_v50, %v2772_v54  ;;  %v7556_v50 = vld [vmem:[#allocation28_spill] sm:$0xff] }
 0xaab   : > { %v2838_v20 = vmul.f32 %v5043_v36, %v4601_v3  ;;  %v2842_v6 = vmul.f32 %v5045_v2, %v4605_v37  ;;  %v1257_v38 = vpop.xlane.xlu0 %1256  ;;  %v2759_v42 = vpop.f32.mrb[83].mxu0 }
 0xaac   : > { %5060 = vrcp.f32 %v1257_v38  ;;  %v2836_v51 = vmul.f32 %v5047_v62, %v2759_v42  ;;  %v2775_v5 = vpop.f32.mrb[51].mxu1  ;;  %v5053_v17 = vpop.eup %5052 }
 0xaad   : > { %v2852_v18 = vpack.c.bf16 %v2838_v20, %v2837_v47  ;;  %v2854_v61 = vpack.c.bf16 %v2842_v6, %v2841_v34  ;;  %v2840_v26 = vmul.f32 %v5049_v60, %v2775_v5  ;;  %v7557_v20 = vld [vmem:[#allocation27_spill] sm:$0xff] }
 0xaae   : > { %v2851_v53 = vpack.c.bf16 %v2836_v51, %v2835_v56 }
 0xaaf   : > { %v2853_v59 = vpack.c.bf16 %v2840_v26, %v2839_v11  ;;  %v1261_v8 = vpop.xlane.xlu0 %1260  ;;  %2917 = vrot.lane.b32.xlu0 %v2852_v18, %s5223_s28 }
 0xab0   : > { %5062 = vrcp.f32 %v1261_v8  ;;  %v4608_v40 = vpop.f32.mrb[52].mxu1  ;;  %2915 = vrot.lane.b32.xlu1 %v2851_v53, %s5223_s28 }
 0xab1   : > { %v5055_v57 = vpop.eup %5054  ;;  %v2788_v19 = vpop.f32.mrb[53].mxu1  ;;  %v2845_v2 = vmul.f32 %v5051_v63, %v4608_v40 }
 0xab2   : > { %v5057_v0 = vpop.eup %5056  ;;  %v4609_v36 = vpop.f32.mrb[54].mxu1  ;;  %v6789_v24 = vmul.f32 %v5055_v57, %v7556_v50  ;;  %v2843_v8 = vmul.f32 %v5053_v17, %v2788_v19  ;;  %v7561_v19 = vpack.c.bf16 %v6741_v39, %v6672_v58  ;;  %v7562_v50 = vpack.c.bf16 %v6746_v55, %v6679_v1 }
 0xab3   : > { %v5059_v54 = vpop.eup %5058  ;;  %v2846_v3 = vmul.f32 %v5057_v0, %v4609_v36  ;;  %v1265_v26 = vpop.xlane.xlu0 %1264  ;;  %2901 = vrot.lane.b32.xlu0 %v2382_v21, %s5222_s23  ;;  %v7563_v1 = vpack.c.bf16 %v6751_v10, %v6690_v46 }
 0xab4   : > { %v2791_v37 = vpop.f32.mrb[55].mxu1  ;;  %5064 = vrcp.f32 %v1265_v26  ;;  %v1433_v62 = vpack.c.bf16 %v6771_v15, %v6789_v24  ;;  %2899 = vrot.lane.b32.xlu1 %v2381_v4, %s5222_s23 }
 0xab5   : > { %v2844_v53 = vmul.f32 %v5059_v54, %v2791_v37  ;;  %v2856_v63 = vpack.c.bf16 %v2846_v3, %v2845_v2  ;;  %5066 = vrcp.f32 %v6766_v22 }
 0xab6   : > { %v5061_v47 = vpop.eup %5060  ;;  %5068 = vrcp.f32 %v6768_v44 }
 0xab7   : > { %v2855_v34 = vpack.c.bf16 %v2844_v53, %v2843_v8  ;;  %2921 = vrot.lane.b32.xlu0 %v2854_v61, %s5223_s28  ;;  %v6803_v6 = vmul.f32 %v5061_v47, %v7557_v20  ;;  %5070 = vrcp.f32 %v6782_v31  ;;  %v2868_v44 = vpop.permute.xlu0 %2867  ;;  %v7564_v47 = vpack.c.bf16 %v6756_v45, %v6705_v29 }
 0xab8   : > { %2919 = vrot.lane.b32.xlu1 %v2853_v59, %s5223_s28  ;;  %v7559_v59 = vld [vmem:[#allocation31_spill] sm:$0xff]  ;;  %5072 = vrcp.f32 %v6784_v30  ;;  %v2870_v30 = vpop.permute.xlu1 %2869  ;;  %v2933_v0 = vsel %vm1010_vm1, %v7561_v19, %v2868_v44 }
 0xab9   : > { %v1434_v33 = vpack.c.bf16 %v6774_v28, %v6803_v6  ;;  %v2936_v54 = vsel %vm1010_vm1, %v7562_v50, %v2870_v30 }
 0xaba   : > { %v5063_v43 = vpop.eup %5062 }
 0xabb   : > { %2881 = vrot.lane.b32.xlu0 %v1910_v48, %s5221_s24  ;;  %v6813_v35 = vmul.f32 %v5063_v43, %v7558_v16  ;;  %v2894_v31 = vpop.permute.xlu0 %2893 }
 0xabc   : > { %2879 = vrot.lane.b32.xlu1 %v1909_v25, %s5221_s24  ;;  %v2892_v11 = vpop.permute.xlu1 %2891  ;;  %v2959_v26 = vsel %vm2955_vm3, %v2936_v54, %v2894_v31 }
 0xabd   : > { %v1435_v4 = vpack.c.bf16 %v6777_v12, %v6813_v35  ;;  %v2957_v3 = vsel %vm2955_vm3, %v2933_v0, %v2892_v11 }
 0xabe   : > { %v5065_v21 = vpop.eup %5064 }
 0xabf   : > { %2925 = vrot.lane.b32.xlu0 %v2856_v63, %s5223_s28  ;;  %v6823_v38 = vmul.f32 %v5065_v21, %v7559_v59  ;;  %v5067_v49 = vpop.eup %5066  ;;  %v2874_v5 = vpop.permute.xlu0 %2873 }
 0xac0   : > { %2923 = vrot.lane.b32.xlu1 %v2855_v34, %s5223_s28  ;;  %v5069_v32 = vpop.eup %5068  ;;  %v2872_v18 = vpop.permute.xlu1 %2871  ;;  %v2942_v34 = vsel %vm1010_vm1, %v7564_v47, %v2874_v5  ;;  %v5172_v5 = vld [vmem:[%s5325_s20 + $0x18] sm:$0xff] }
 0xac1   : > { %v1436_v14 = vpack.c.bf16 %v6780_v23, %v6823_v38  ;;  %v5071_v42 = vpop.eup %5070  ;;  %v2939_v55 = vsel %vm1010_vm1, %v7563_v1, %v2872_v18  ;;  %v6901_v23 = vld [vmem:[%s7405_s4] ss:$0 sm:$0xff] }
 0xac2   : > { %v5073_v27 = vpop.eup %5072  ;;  %v5175_v1 = vld [vmem:[%s5325_s20 + $0x20] sm:$0xff] }
 0xac3   : > { %2905 = vrot.lane.b32.xlu0 %v2384_v13, %s5222_s23  ;;  %v2898_v61 = vpop.permute.xlu0 %2897 }
 0xac4   : > { %2903 = vrot.lane.b32.xlu1 %v7560_v9, %s5222_s23  ;;  %v2896_v17 = vpop.permute.xlu1 %2895  ;;  %v2963_v43 = vsel %vm2955_vm3, %v2942_v34, %v2898_v61  ;;  %v5173_v61 = vld [vmem:[%s5325_s20 + $0x8] sm:$0xff]  ;;  %v5176_v34 = vld [vmem:[%s5325_s20 + $0x38] sm:$0xff] }
 0xac5   : > { %v2961_v63 = vsel %vm2955_vm3, %v2939_v55, %v2896_v17 }
 0xac7   : > { %v2878_v40 = vpop.permute.xlu0 %2877 }
 0xac8   : > { %v2876_v57 = vpop.permute.xlu1 %2875  ;;  %v2948_v59 = vsel %vm1010_vm1, %v1434_v33, %v2878_v40 }
 0xac9   : > { %v2945_v29 = vsel %vm1010_vm1, %v1433_v62, %v2876_v57 }
 0xae6   : > { %v4612_v25 = vpop.f32.mrb[56].mxu1 }
 0xae7   : > { %v2804_v48 = vpop.f32.mrb[57].mxu1  ;;  %v2849_v13 = vmul.f32 %v5071_v42, %v4612_v25 }
 0xae8   : > { %v4613_v52 = vpop.f32.mrb[58].mxu1  ;;  %v2847_v7 = vmul.f32 %v5073_v27, %v2804_v48 }
 0xae9   : > { %v2850_v60 = vmul.f32 %v5067_v49, %v4613_v52  ;;  %v2807_v56 = vpop.f32.mrb[59].mxu1 }
 0xaea   : > { %v2848_v41 = vmul.f32 %v5069_v32, %v2807_v56  ;;  %v5170_v56 = vld [vmem:[%s5325_s20 + $0x10] sm:$0xff] }
 0xaeb   : > { %v2858_v51 = vpack.c.bf16 %v2850_v60, %v2849_v13 }
 0xaec   : > { %v2857_v22 = vpack.c.bf16 %v2848_v41, %v2847_v7 }
 0xaed   : > { %2929 = vrot.lane.b32.xlu0 %v2858_v51, %s5223_s28 }
 0xaee   : > { %2927 = vrot.lane.b32.xlu1 %v2857_v22, %s5223_s28  ;;  %v5171_v22 = vld [vmem:[%s5325_s20] sm:$0xff] }
 0xb21   : > { %v2918_v36 = vpop.permute.xlu0 %2917 }
 0xb22   : > { %v2916_v2 = vpop.permute.xlu1 %2915  ;;  %v2976_v8 = vsel %vm2972_vm2, %v2959_v26, %v2918_v36 }
 0xb23   : > { %v2974_v37 = vsel %vm2972_vm2, %v2957_v3, %v2916_v2 }
 0xb24   : > { %4618 = vmatprep.mubr.msk.bf16.mxu1 %vm556_vm0, %v2974_v37  ;;  %v5174_v37 = vld [vmem:[%s5325_s20 + $0x30] sm:$0xff] }
 0xb25   : > { %4619 = vmatmul.mubr.msk.bf16.vlgmr.msra.gmra.mrb[60].mxu1 %vm556_vm0, %v2976_v8  ;;  %v2902_v58 = vpop.permute.xlu0 %2901 }
 0xb26   : > { %v2900_v39 = vpop.permute.xlu1 %2899  ;;  %v2967_v25 = vsel %vm2955_vm3, %v2948_v59, %v2902_v58 }
 0xb27   : > { %v2965_v9 = vsel %vm2955_vm3, %v2945_v29, %v2900_v39 }
 0xb29   : > { %v2922_v53 = vpop.permute.xlu0 %2921 }
 0xb2a   : > { %v2920_v20 = vpop.permute.xlu1 %2919  ;;  %v2980_v21 = vsel %vm2972_vm2, %v2963_v43, %v2922_v53 }
 0xb2b   : > { %v2978_v16 = vsel %vm2972_vm2, %v2961_v63, %v2920_v20 }
 0xb2c   : > { %4622 = vmatprep.mubr.msk.bf16.mxu1 %vm556_vm0, %v2978_v16  ;;  %v5177_v16 = vld [vmem:[%s5325_s20 + $0x28] sm:$0xff] }
 0xb2d   : > { %4623 = vmatmul.mubr.msk.bf16.gmra.mrb[64].mxu1 %vm556_vm0, %v2980_v21  ;;  %v2882_v46 = vpop.permute.xlu0 %2881 }
 0xb2e   : > { %v2880_v10 = vpop.permute.xlu1 %2879  ;;  %v2954_v6 = vsel %vm1010_vm1, %v1436_v14, %v2882_v46  ;;  %v6907_v14 = vld [vmem:[%s7414_s13] ss:$0 sm:$0xff] }
 0xb2f   : > { %v2951_v28 = vsel %vm1010_vm1, %v1435_v4, %v2880_v10 }
 0xb31   : > { %v2926_v45 = vpop.permute.xlu0 %2925 }
 0xb32   : > { %v2924_v49 = vpop.permute.xlu1 %2923  ;;  %v2984_v48 = vsel %vm2972_vm2, %v2967_v25, %v2926_v45 }
 0xb33   : > { %v2982_v32 = vsel %vm2972_vm2, %v2965_v9, %v2924_v49 }
 0xb34   : > { %4626 = vmatprep.mubr.msk.bf16.mxu1 %vm556_vm0, %v2982_v32 }
 0xb35   : > { %4627 = vmatmul.mubr.msk.bf16.gmra.mrb[68].mxu1 %vm556_vm0, %v2984_v48  ;;  %v2906_v15 = vpop.permute.xlu0 %2905  ;;  %v5178_v48 = vld [vmem:[%s5325_s20 + $0x50] sm:$0xff] }
 0xb36   : > { %v2904_v24 = vpop.permute.xlu1 %2903  ;;  %v2971_v52 = vsel %vm2955_vm3, %v2954_v6, %v2906_v15 }
 0xb37   : > { %v2969_v33 = vsel %vm2955_vm3, %v2951_v28, %v2904_v24 }
 0xb5f   : > { %v2930_v62 = vpop.permute.xlu0 %2929 }
 0xb60   : > { %v2928_v42 = vpop.permute.xlu1 %2927  ;;  %v2988_v12 = vsel %vm2972_vm2, %v2971_v52, %v2930_v62  ;;  %v5179_v62 = vld [vmem:[%s5325_s20 + $0x40] sm:$0xff] }
 0xb61   : > { %v2986_v27 = vsel %vm2972_vm2, %v2969_v33, %v2928_v42 }
 0xb62   : > { %4630 = vmatprep.mubr.msk.bf16.mxu1 %vm556_vm0, %v2986_v27 }
 0xb63   : > { %4631 = vmatmul.mubr.msk.bf16.gmra.mrb[72].mxu1 %vm556_vm0, %v2988_v12  ;;  %v5180_v12 = vld [vmem:[%s5325_s20 + $0x58] sm:$0xff] }
 0xbf8   : > { %v4620_v35 = vpop.f32.mrb[60].mxu1 }
 0xbf9   : > { %v3071_v4 = vadd.f32 %v4620_v35, %v6901_v23  ;;  %v3062_v38 = vpop.f32.mrb[61].mxu1 }
 0xbfa   : > { %v3063_v13 = vadd.f32 %v6901_v23, %v3062_v38  ;;  %v4621_v60 = vpop.f32.mrb[62].mxu1  ;;  %v5181_v38 = vld [vmem:[%s5325_s20 + $0x48] sm:$0xff] }
 0xbfb   : > { %v6911_v7 = vadd.f32 %v5170_v56, %v3071_v4  ;;  %v3074_v41 = vadd.f32 %v4621_v60, %v6901_v23  ;;  %v3065_v51 = vpop.f32.mrb[63].mxu1 }
 0xbfc   : > { %v6922_v44 = vadd.f32 %v5171_v22, %v3063_v13  ;;  %v3066_v31 = vadd.f32 %v6901_v23, %v3065_v51 }
 0xbfd   : > { %v3150_v30 = vadd.f32 %v6907_v14, %v6911_v7  ;;  %v6928_v11 = vadd.f32 %v5172_v5, %v3074_v41  ;;  %v3188_v63 = vsel %vm556_vm0, %v6911_v7, 0.0 }
 0xbfe   : > { %v3148_v18 = vadd.f32 %v6907_v14, %v6922_v44  ;;  %v6933_v17 = vadd.f32 %v5173_v61, %v3066_v31  ;;  %v3182_v40 = vsel %vm556_vm0, %v6922_v44, 0.0 }
 0xbff   : > { %3166 = vst.msk [vmem:[%s6919_s25 + $0x10] sm:$0xff] %vm556_vm0, %v3150_v30  ;;  %v3151_v57 = vadd.f32 %v6907_v14, %v6928_v11  ;;  %3183 = vadd.xlane.f32.xlu1 %v3182_v40  ;;  %v3191_v26 = vsel %vm556_vm0, %v6928_v11, 0.0 }
 0xc00   : > { %3164 = vst.msk [vmem:[%s6919_s25] sm:$0xff] %vm556_vm0, %v3148_v18  ;;  %v3149_v19 = vadd.f32 %v6907_v14, %v6933_v17  ;;  %v4624_v0 = vpop.f32.mrb[64].mxu1  ;;  %v3185_v36 = vsel %vm556_vm0, %v6933_v17, 0.0 }
 0xc01   : > { %3167 = vst.msk [vmem:[%s6919_s25 + $0x18] sm:$0xff] %vm556_vm0, %v3151_v57  ;;  %v3087_v50 = vadd.f32 %v4624_v0, %v6901_v23  ;;  %3186 = vadd.xlane.f32.xlu0 %v3185_v36  ;;  %v3078_v54 = vpop.f32.mrb[65].mxu1  ;;  %v5182_v57 = vld [vmem:[%s5325_s20 + $0x70] sm:$0xff] }
 0xc02   : > { %3165 = vst.msk [vmem:[%s6919_s25 + $0x8] sm:$0xff] %vm556_vm0, %v3149_v19  ;;  %v3079_v2 = vadd.f32 %v6901_v23, %v3078_v54  ;;  %v4625_v3 = vpop.f32.mrb[66].mxu1 }
 0xc03   : > { %v6956_v8 = vadd.f32 %v5174_v37, %v3087_v50  ;;  %v3090_v58 = vadd.f32 %v4625_v3, %v6901_v23  ;;  %3192 = vadd.xlane.f32.xlu1 %v3191_v26  ;;  %v3081_v39 = vpop.f32.mrb[67].mxu1  ;;  %v5183_v50 = vld [vmem:[%s5325_s20 + $0x60] sm:$0xff]  ;;  %v5184_v26 = vld [vmem:[%s5325_s20 + $0x78] sm:$0xff] }
 0xc04   : > { %v6960_v55 = vadd.f32 %v5175_v1, %v3079_v2  ;;  %v3082_v53 = vadd.f32 %v6901_v23, %v3081_v39  ;;  %v5185_v39 = vld [vmem:[%s5325_s20 + $0x68] sm:$0xff] }
 0xc05   : > { %v3154_v47 = vadd.f32 %v6907_v14, %v6956_v8  ;;  %v6968_v20 = vadd.f32 %v5176_v34, %v3090_v58  ;;  %3189 = vadd.xlane.f32.xlu0 %v3188_v63  ;;  %v3200_v52 = vsel %vm556_vm0, %v6956_v8, 0.0 }
 0xc06   : > { %v3152_v43 = vadd.f32 %v6907_v14, %v6960_v55  ;;  %v6973_v21 = vadd.f32 %v5177_v16, %v3082_v53  ;;  %v3194_v59 = vsel %vm556_vm0, %v6960_v55, 0.0 }
 0xc07   : > { %3170 = vst.msk [vmem:[%s6919_s25 + $0x30] sm:$0xff] %vm556_vm0, %v3154_v47  ;;  %v3155_v46 = vadd.f32 %v6907_v14, %v6968_v20  ;;  %v3203_v42 = vsel %vm556_vm0, %v6968_v20, 0.0 }
 0xc08   : > { %3168 = vst.msk [vmem:[%s6919_s25 + $0x20] sm:$0xff] %vm556_vm0, %v3152_v43  ;;  %v3153_v10 = vadd.f32 %v6907_v14, %v6973_v21  ;;  %v4628_v29 = vpop.f32.mrb[68].mxu1  ;;  %v3197_v45 = vsel %vm556_vm0, %v6973_v21, 0.0 }
 0xc09   : > { %3171 = vst.msk [vmem:[%s6919_s25 + $0x38] sm:$0xff] %vm556_vm0, %v3155_v46  ;;  %v3103_v9 = vadd.f32 %v4628_v29, %v6901_v23  ;;  %3198 = vadd.xlane.f32.xlu1 %v3197_v45  ;;  %3195 = vadd.xlane.f32.xlu0 %v3194_v59  ;;  %v3094_v49 = vpop.f32.mrb[69].mxu1 }
 0xc0a   : > { %3169 = vst.msk [vmem:[%s6919_s25 + $0x28] sm:$0xff] %vm556_vm0, %v3153_v10  ;;  %v3095_v25 = vadd.f32 %v6901_v23, %v3094_v49  ;;  %v4629_v32 = vpop.f32.mrb[70].mxu1 }
 0xc0b   : > { %v6994_v15 = vadd.f32 %v5178_v48, %v3103_v9  ;;  %v3106_v24 = vadd.f32 %v4629_v32, %v6901_v23  ;;  %v3097_v28 = vpop.f32.mrb[71].mxu1 }
 0xc0c   : > { %v6998_v6 = vadd.f32 %v5179_v62, %v3095_v25  ;;  %v3098_v33 = vadd.f32 %v6901_v23, %v3097_v28 }
 0xc0d   : > { %v3158_v27 = vadd.f32 %v6907_v14, %v6994_v15  ;;  %v7008_v35 = vadd.f32 %v5180_v12, %v3106_v24  ;;  %3204 = vadd.xlane.f32.xlu1 %v3203_v42  ;;  %3201 = vadd.xlane.f32.xlu0 %v3200_v52  ;;  %v3212_v31 = vsel %vm556_vm0, %v6994_v15, 0.0 }
 0xc0e   : > { %v3156_v4 = vadd.f32 %v6907_v14, %v6998_v6  ;;  %v7013_v13 = vadd.f32 %v5181_v38, %v3098_v33  ;;  %v3206_v51 = vsel %vm556_vm0, %v6998_v6, 0.0 }
 0xc0f   : > { %3174 = vst.msk [vmem:[%s6919_s25 + $0x50] sm:$0xff] %vm556_vm0, %v3158_v27  ;;  %v3159_v60 = vadd.f32 %v6907_v14, %v7008_v35  ;;  %v3215_v22 = vsel %vm556_vm0, %v7008_v35, 0.0 }
 0xc10   : > { %3172 = vst.msk [vmem:[%s6919_s25 + $0x40] sm:$0xff] %vm556_vm0, %v3156_v4  ;;  %v3157_v56 = vadd.f32 %v6907_v14, %v7013_v13  ;;  %v3209_v41 = vsel %vm556_vm0, %v7013_v13, 0.0 }
 0xc11   : > { %3175 = vst.msk [vmem:[%s6919_s25 + $0x58] sm:$0xff] %vm556_vm0, %v3159_v60  ;;  %3210 = vadd.xlane.f32.xlu1 %v3209_v41  ;;  %3207 = vadd.xlane.f32.xlu0 %v3206_v51 }
 0xc12   : > { %3173 = vst.msk [vmem:[%s6919_s25 + $0x48] sm:$0xff] %vm556_vm0, %v3157_v56 }
 0xc15   : > { %3216 = vadd.xlane.f32.xlu1 %v3215_v22  ;;  %3213 = vadd.xlane.f32.xlu0 %v3212_v31 }
 0xc36   : > { %v4632_v30 = vpop.f32.mrb[72].mxu1 }
 0xc37   : > { %v3119_v5 = vadd.f32 %v4632_v30, %v6901_v23  ;;  %v3110_v18 = vpop.f32.mrb[73].mxu1 }
 0xc38   : > { %v3111_v61 = vadd.f32 %v6901_v23, %v3110_v18  ;;  %v4633_v40 = vpop.f32.mrb[74].mxu1 }
 0xc39   : > { %v7038_v19 = vadd.f32 %v5182_v57, %v3119_v5  ;;  %v3122_v0 = vadd.f32 %v4633_v40, %v6901_v23  ;;  %v3113_v36 = vpop.f32.mrb[75].mxu1 }
 0xc3a   : > { %v7042_v54 = vadd.f32 %v5183_v50, %v3111_v61  ;;  %v3114_v2 = vadd.f32 %v6901_v23, %v3113_v36 }
 0xc3b   : > { %v3162_v3 = vadd.f32 %v6907_v14, %v7038_v19  ;;  %v7048_v37 = vadd.f32 %v5184_v26, %v3122_v0  ;;  %v3224_v34 = vsel %vm556_vm0, %v7038_v19, 0.0 }
 0xc3c   : > { %v3160_v58 = vadd.f32 %v6907_v14, %v7042_v54  ;;  %v7053_v1 = vadd.f32 %v5185_v39, %v3114_v2  ;;  %v3218_v53 = vsel %vm556_vm0, %v7042_v54, 0.0 }
 0xc3d   : > { %3178 = vst.msk [vmem:[%s6919_s25 + $0x70] sm:$0xff] %vm556_vm0, %v3162_v3  ;;  %v3163_v23 = vadd.f32 %v6907_v14, %v7048_v37  ;;  %3219 = vadd.xlane.f32.xlu0 %v3218_v53  ;;  %v3227_v43 = vsel %vm556_vm0, %v7048_v37, 0.0 }
 0xc3e   : > { %3176 = vst.msk [vmem:[%s6919_s25 + $0x60] sm:$0xff] %vm556_vm0, %v3160_v58  ;;  %v3161_v63 = vadd.f32 %v6907_v14, %v7053_v1  ;;  %v3221_v47 = vsel %vm556_vm0, %v7053_v1, 0.0 }
 0xc3f   : > { %3179 = vst.msk [vmem:[%s6919_s25 + $0x78] sm:$0xff] %vm556_vm0, %v3163_v23  ;;  %3222 = vadd.xlane.f32.xlu1 %v3221_v47 }
 0xc40   : > { %3177 = vst.msk [vmem:[%s6919_s25 + $0x68] sm:$0xff] %vm556_vm0, %v3161_v63 }
 0xc41   : > { %3225 = vadd.xlane.f32.xlu0 %v3224_v34 }
 0xc43   : > { %3228 = vadd.xlane.f32.xlu1 %v3227_v43 }
 0xc8c   : > { %v3184_v16 = vpop.xlane.xlu1 %3183 }
 0xc8d   : > { %v3230_v46 = vmul.f32 0.03125, %v3184_v16 }
 0xc8e   : > { %v3187_v10 = vpop.xlane.xlu0 %3186 }
 0xc8f   : > { %v7076_v14 = vsub.f32 %v6922_v44, %v3230_v46  ;;  %v3231_v29 = vmul.f32 0.03125, %v3187_v10  ;;  %v4777_v46 = vld [vmem:[%s7411_s10 + $0x8] sm:$0xff]  }
 0xc90   : > { %v3193_v45 = vpop.xlane.xlu1 %3192 }
 0xc91   : > { %v7079_v59 = vsub.f32 %v6933_v17, %v3231_v29  ;;  %v3233_v9 = vmul.f32 0.03125, %v3193_v45  ;;  %v3262_v49 = vmul.f32 %v7076_v14, %v7076_v14 }
 0xc92   : > { %v3190_v25 = vpop.xlane.xlu0 %3189 }
 0xc93   : > { %v7084_v32 = vsub.f32 %v6928_v11, %v3233_v9  ;;  %v3232_v48 = vmul.f32 0.03125, %v3190_v25  ;;  %v3278_v24 = vsel %vm556_vm0, %v3262_v49, 0.0  ;;  %v3263_v44 = vmul.f32 %v7079_v59, %v7079_v59 }
 0xc94   : > { %3279 = vadd.xlane.f32.xlu0 %v3278_v24 }
 0xc95   : > { %v7090_v28 = vsub.f32 %v6911_v7, %v3232_v48  ;;  %v3281_v17 = vsel %vm556_vm0, %v3263_v44, 0.0  ;;  %v3265_v62 = vmul.f32 %v7084_v32, %v7084_v32 }
 0xc96   : > { %v3199_v33 = vpop.xlane.xlu1 %3198  ;;  %3282 = vadd.xlane.f32.xlu1 %v3281_v17  ;;  %v3196_v42 = vpop.xlane.xlu0 %3195 }
 0xc97   : > { %v3235_v11 = vmul.f32 0.03125, %v3199_v33  ;;  %v3234_v52 = vmul.f32 0.03125, %v3196_v42  ;;  %v3264_v27 = vmul.f32 %v7090_v28, %v7090_v28  ;;  %v3287_v7 = vsel %vm556_vm0, %v3265_v62, 0.0 }
 0xc99   : > { %v7098_v12 = vsub.f32 %v6973_v21, %v3235_v11  ;;  %v7101_v4 = vsub.f32 %v6960_v55, %v3234_v52  ;;  %v3284_v38 = vsel %vm556_vm0, %v3264_v27, 0.0 }
 0xc9a   : > { %v3205_v60 = vpop.xlane.xlu1 %3204  ;;  %3288 = vadd.xlane.f32.xlu1 %v3287_v7  ;;  %3285 = vadd.xlane.f32.xlu0 %v3284_v38  ;;  %v3202_v56 = vpop.xlane.xlu0 %3201 }
 0xc9b   : > { %v3237_v41 = vmul.f32 0.03125, %v3205_v60  ;;  %v3236_v51 = vmul.f32 0.03125, %v3202_v56  ;;  %v3267_v22 = vmul.f32 %v7098_v12, %v7098_v12  ;;  %v3266_v21 = vmul.f32 %v7101_v4, %v7101_v4 }
 0xc9d   : > { %v7110_v31 = vsub.f32 %v6968_v20, %v3237_v41  ;;  %v7113_v55 = vsub.f32 %v6956_v8, %v3236_v51  ;;  %v3293_v30 = vsel %vm556_vm0, %v3267_v22, 0.0  ;;  %v3290_v5 = vsel %vm556_vm0, %v3266_v21, 0.0 }
 0xc9e   : > { %v3211_v18 = vpop.xlane.xlu1 %3210  ;;  %3294 = vadd.xlane.f32.xlu1 %v3293_v30  ;;  %3291 = vadd.xlane.f32.xlu0 %v3290_v5  ;;  %v3208_v61 = vpop.xlane.xlu0 %3207 }
 0xc9f   : > { %v3239_v40 = vmul.f32 0.03125, %v3211_v18  ;;  %v3238_v57 = vmul.f32 0.03125, %v3208_v61  ;;  %v3269_v0 = vmul.f32 %v7110_v31, %v7110_v31  ;;  %v3268_v20 = vmul.f32 %v7113_v55, %v7113_v55 }
 0xca1   : > { %v7122_v36 = vsub.f32 %v7013_v13, %v3239_v40  ;;  %v7125_v8 = vsub.f32 %v6998_v6, %v3238_v57  ;;  %v3299_v50 = vsel %vm556_vm0, %v3269_v0, 0.0  ;;  %v3296_v2 = vsel %vm556_vm0, %v3268_v20, 0.0 }
 0xca2   : > { %v3217_v3 = vpop.xlane.xlu1 %3216  ;;  %3300 = vadd.xlane.f32.xlu1 %v3299_v50  ;;  %3297 = vadd.xlane.f32.xlu0 %v3296_v2  ;;  %v3214_v26 = vpop.xlane.xlu0 %3213 }
 0xca3   : > { %v3241_v58 = vmul.f32 0.03125, %v3217_v3  ;;  %v3240_v39 = vmul.f32 0.03125, %v3214_v26  ;;  %v3271_v53 = vmul.f32 %v7122_v36, %v7122_v36  ;;  %v3270_v13 = vmul.f32 %v7125_v8, %v7125_v8 }
 0xca5   : > { %v7134_v23 = vsub.f32 %v7008_v35, %v3241_v58  ;;  %v7137_v6 = vsub.f32 %v6994_v15, %v3240_v39  ;;  %v3305_v63 = vsel %vm556_vm0, %v3271_v53, 0.0  ;;  %v3302_v47 = vsel %vm556_vm0, %v3270_v13, 0.0  ;;  %v4776_v15 = vld [vmem:[%s7411_s10] sm:$0xff]  }
 0xca6   : > { %3306 = vadd.xlane.f32.xlu1 %v3305_v63  ;;  %3303 = vadd.xlane.f32.xlu0 %v3302_v47  ;;  %v7180_v39 = vld [vmem:[%s7408_s7] ss:$0 sm:$0xff] }
 0xca7   : > { %v3273_v34 = vmul.f32 %v7134_v23, %v7134_v23  ;;  %v3272_v43 = vmul.f32 %v7137_v6, %v7137_v6  ;;  %4634 = vmatprep.subr.bf16.mxu0 %v4776_v15 }
 0xca8   : > { %4635 = vmatpush3.bf16.msra.mxu0 %v4776_v15 }
 0xca9   : > { %v3311_v16 = vsel %vm556_vm0, %v3273_v34, 0.0  ;;  %v3308_v35 = vsel %vm556_vm0, %v3272_v43, 0.0  ;;  %4636 = vmatprep.subr.bf16.mxu0 %v4777_v46 }
 0xcaa   : > { %3312 = vadd.xlane.f32.xlu1 %v3311_v16  ;;  %3309 = vadd.xlane.f32.xlu0 %v3308_v35 }
 0xcac   : > { %4637 = vmatpush3.bf16.msra.mxu0 %v4777_v46 }
 0xcca   : > { %v3220_v10 = vpop.xlane.xlu0 %3219 }
 0xccb   : > { %v3242_v29 = vmul.f32 0.03125, %v3220_v10  ;;  %v7188_v10 = vld [vmem:[%s7409_s8] ss:$0 sm:$0xff] }
 0xccc   : > { %v3223_v45 = vpop.xlane.xlu1 %3222 }
 0xccd   : > { %v7154_v9 = vsub.f32 %v7042_v54, %v3242_v29  ;;  %v3243_v49 = vmul.f32 0.03125, %v3223_v45 }
 0xcce   : > { %v3226_v25 = vpop.xlane.xlu0 %3225 }
 0xccf   : > { %v7157_v48 = vsub.f32 %v7053_v1, %v3243_v49  ;;  %v3244_v24 = vmul.f32 0.03125, %v3226_v25  ;;  %v3274_v44 = vmul.f32 %v7154_v9, %v7154_v9 }
 0xcd0   : > { %v3229_v17 = vpop.xlane.xlu1 %3228 }
 0xcd1   : > { %v7162_v62 = vsub.f32 %v7038_v19, %v3244_v24  ;;  %v3245_v33 = vmul.f32 0.03125, %v3229_v17  ;;  %v3314_v42 = vsel %vm556_vm0, %v3274_v44, 0.0  ;;  %v3275_v54 = vmul.f32 %v7157_v48, %v7157_v48 }
 0xcd2   : > { %3315 = vadd.xlane.f32.xlu0 %v3314_v42 }
 0xcd3   : > { %v7168_v11 = vsub.f32 %v7048_v37, %v3245_v33  ;;  %v3317_v1 = vsel %vm556_vm0, %v3275_v54, 0.0  ;;  %v3276_v52 = vmul.f32 %v7162_v62, %v7162_v62 }
 0xcd4   : > { %3318 = vadd.xlane.f32.xlu1 %v3317_v1 }
 0xcd5   : > { %v3320_v27 = vsel %vm556_vm0, %v3276_v52, 0.0  ;;  %v3277_v19 = vmul.f32 %v7168_v11, %v7168_v11 }
 0xcd6   : > { %3321 = vadd.xlane.f32.xlu0 %v3320_v27 }
 0xcd7   : > { %v3323_v7 = vsel %vm556_vm0, %v3277_v19, 0.0 }
 0xcd8   : > { %3324 = vadd.xlane.f32.xlu1 %v3323_v7 }
 0xd21   : > { %v3280_v38 = vpop.xlane.xlu0 %3279 }
 0xd22   : > { %v3326_v60 = vmul.f32 0.03125, %v3280_v38 }
 0xd23   : > { %v3283_v56 = vpop.xlane.xlu1 %3282 }
 0xd24   : > { %v3342_v37 = vadd.f32 1e-12, %v3326_v60  ;;  %v3327_v41 = vmul.f32 0.03125, %v3283_v56 }
 0xd26   : > { %5074 = vrsqrt.f32 %v3342_v37  ;;  %v3343_v51 = vadd.f32 1e-12, %v3327_v41 }
 0xd27   : > { %v3289_v22 = vpop.xlane.xlu1 %3288  ;;  %v3286_v21 = vpop.xlane.xlu0 %3285 }
 0xd28   : > { %5076 = vrsqrt.f32 %v3343_v51  ;;  %v3329_v30 = vmul.f32 0.03125, %v3289_v22  ;;  %v3328_v5 = vmul.f32 0.03125, %v3286_v21 }
 0xd2a   : > { %v3345_v18 = vadd.f32 1e-12, %v3329_v30  ;;  %v3344_v61 = vadd.f32 1e-12, %v3328_v5 }
 0xd2b   : > { %v3295_v40 = vpop.xlane.xlu1 %3294  ;;  %v3292_v57 = vpop.xlane.xlu0 %3291 }
 0xd2c   : > { %5078 = vrsqrt.f32 %v3345_v18  ;;  %v3331_v0 = vmul.f32 0.03125, %v3295_v40  ;;  %v3330_v20 = vmul.f32 0.03125, %v3292_v57 }
 0xd2d   : > { %5080 = vrsqrt.f32 %v3344_v61 }
 0xd2e   : > { %v3347_v50 = vadd.f32 1e-12, %v3331_v0  ;;  %v3346_v2 = vadd.f32 1e-12, %v3330_v20 }
 0xd2f   : > { %v3301_v3 = vpop.xlane.xlu1 %3300  ;;  %v3298_v26 = vpop.xlane.xlu0 %3297 }
 0xd30   : > { %v5075_v58 = vpop.eup %5074  ;;  %5082 = vrsqrt.f32 %v3347_v50  ;;  %v3333_v53 = vmul.f32 0.03125, %v3301_v3  ;;  %v3332_v13 = vmul.f32 0.03125, %v3298_v26 }
 0xd31   : > { %v3374_v63 = vmul.f32 %v5075_v58, %v7076_v14  ;;  %5084 = vrsqrt.f32 %v3346_v2 }
 0xd32   : > { %v5077_v47 = vpop.eup %5076  ;;  %v3349_v34 = vadd.f32 1e-12, %v3333_v53  ;;  %v3348_v43 = vadd.f32 1e-12, %v3332_v13 }
 0xd33   : > { %v3396_v16 = vmul.f32 %v7180_v39, %v3374_v63  ;;  %v3375_v35 = vmul.f32 %v5077_v47, %v7079_v59  ;;  %v3307_v15 = vpop.xlane.xlu1 %3306  ;;  %v3304_v46 = vpop.xlane.xlu0 %3303 }
 0xd34   : > { %5086 = vrsqrt.f32 %v3349_v34  ;;  %v3335_v29 = vmul.f32 0.03125, %v3307_v15  ;;  %v3334_v45 = vmul.f32 0.03125, %v3304_v46 }
 0xd35   : > { %v3397_v14 = vmul.f32 %v7180_v39, %v3375_v35  ;;  %5088 = vrsqrt.f32 %v3348_v43  ;;  %v3418_v17 = vadd.f32 %v7188_v10, %v3396_v16 }
 0xd36   : > { %v5079_v49 = vpop.eup %5078  ;;  %v3351_v25 = vadd.f32 1e-12, %v3335_v29  ;;  %v3350_v24 = vadd.f32 1e-12, %v3334_v45 }
 0xd37   : > { %v5081_v44 = vpop.eup %5080  ;;  %v3419_v59 = vadd.f32 %v7188_v10, %v3397_v14  ;;  %v3377_v33 = vmul.f32 %v5079_v49, %v7084_v32  ;;  %v3313_v42 = vpop.xlane.xlu1 %3312 }
 0xd38   : > { %v3310_v54 = vpop.xlane.xlu0 %3309  ;;  %v3376_v1 = vmul.f32 %v5081_v44, %v7090_v28  ;;  %5090 = vrsqrt.f32 %v3351_v25  ;;  %v3337_v52 = vmul.f32 0.03125, %v3313_v42 }
 0xd39   : > { %v3336_v27 = vmul.f32 0.03125, %v3310_v54  ;;  %v3434_v19 = vpack.c.bf16 %v3419_v59, %v3418_v17  ;;  %v3399_v7 = vmul.f32 %v7180_v39, %v3377_v33  ;;  %5092 = vrsqrt.f32 %v3350_v24 }
 0xd3a   : > { %v5083_v38 = vpop.eup %5082  ;;  %v3398_v60 = vmul.f32 %v7180_v39, %v3376_v1  ;;  %v3353_v56 = vadd.f32 1e-12, %v3337_v52 }
 0xd3b   : > { %v3352_v37 = vadd.f32 1e-12, %v3336_v27  ;;  %v5085_v41 = vpop.eup %5084  ;;  %3442 = vst.msk [vmem:[#allocation2] sm:$0xff] %vm556_vm0, %v3434_v19  ;;  %v3421_v32 = vadd.f32 %v7188_v10, %v3399_v7  ;;  %v3379_v51 = vmul.f32 %v5083_v38, %v7098_v12 }
 0xd3c   : > { %v3420_v28 = vadd.f32 %v7188_v10, %v3398_v60  ;;  %v3378_v22 = vmul.f32 %v5085_v41, %v7101_v4  ;;  %5094 = vrsqrt.f32 %v3353_v56 }
 0xd3d   : > { %v3401_v21 = vmul.f32 %v7180_v39, %v3379_v51  ;;  %5096 = vrsqrt.f32 %v3352_v37 }
 0xd3e   : > { %v5087_v30 = vpop.eup %5086  ;;  %v3435_v5 = vpack.c.bf16 %v3421_v32, %v3420_v28  ;;  %v3400_v18 = vmul.f32 %v7180_v39, %v3378_v22 }
 0xd3f   : > { %v5089_v61 = vpop.eup %5088  ;;  %v3423_v40 = vadd.f32 %v7188_v10, %v3401_v21  ;;  %v3381_v57 = vmul.f32 %v5087_v30, %v7110_v31 }
 0xd40   : > { %3443 = vst.msk [vmem:[#allocation2 + $0x8] sm:$0xff] %vm556_vm0, %v3435_v5  ;;  %v3422_v12 = vadd.f32 %v7188_v10, %v3400_v18  ;;  %v3380_v0 = vmul.f32 %v5089_v61, %v7113_v55 }
 0xd41   : > { %v3403_v4 = vmul.f32 %v7180_v39, %v3381_v57 }
 0xd42   : > { %v5091_v20 = vpop.eup %5090  ;;  %v3436_v50 = vpack.c.bf16 %v3423_v40, %v3422_v12  ;;  %v3402_v2 = vmul.f32 %v7180_v39, %v3380_v0  ;;  %v3450_v3 = vld [vmem:[#allocation2] sm:$0xff] }
 0xd43   : > { %v5093_v26 = vpop.eup %5092  ;;  %v3425_v58 = vadd.f32 %v7188_v10, %v3403_v4  ;;  %v3383_v53 = vmul.f32 %v5091_v20, %v7122_v36  ;;  %4638 = vmatprep.mubr.msk.bf16.mxu0 %vm556_vm0, %v3450_v3  ;;  %v4781_v20 = vld [vmem:[%s7413_s12 + $0x18] sm:$0xff]   ;;  %v4784_v3 = vld [vmem:[%s7413_s12 + $0x30] sm:$0xff]  }
 0xd44   : > { %3444 = vst.msk [vmem:[#allocation2 + $0x10] sm:$0xff] %vm556_vm0, %v3436_v50  ;;  %v3424_v31 = vadd.f32 %v7188_v10, %v3402_v2  ;;  %v3382_v55 = vmul.f32 %v5093_v26, %v7125_v8  ;;  %v4782_v50 = vld [vmem:[%s7413_s12 + $0x20] sm:$0xff]   ;;  %v4783_v2 = vld [vmem:[%s7413_s12 + $0x28] sm:$0xff]   ;;  %v4785_v26 = vld [vmem:[%s7413_s12 + $0x38] sm:$0xff]  }
 0xd45   : > { %v3405_v13 = vmul.f32 %v7180_v39, %v3383_v53 }
 0xd46   : > { %v5095_v63 = vpop.eup %5094  ;;  %v3437_v47 = vpack.c.bf16 %v3425_v58, %v3424_v31  ;;  %v3404_v34 = vmul.f32 %v7180_v39, %v3382_v55  ;;  %v7278_v58 = vld [vmem:[%s7412_s11] ss:$0 sm:$0xff] }
 0xd47   : > { %v5097_v43 = vpop.eup %5096  ;;  %v3427_v16 = vadd.f32 %v7188_v10, %v3405_v13  ;;  %v3385_v35 = vmul.f32 %v5095_v63, %v7134_v23  ;;  %v3451_v36 = vld [vmem:[#allocation2 + $0x8] sm:$0xff] }
 0xd48   : > { %3445 = vst.msk [vmem:[#allocation2 + $0x18] sm:$0xff] %vm556_vm0, %v3437_v47  ;;  %v3426_v15 = vadd.f32 %v7188_v10, %v3404_v34  ;;  %v3384_v46 = vmul.f32 %v5097_v43, %v7137_v6  ;;  %4639 = vmatmul.mubr.msk.bf16.vlgmr.msra.gmra.mrb[84].mxu0 %vm556_vm0, %v3451_v36 }
 0xd49   : > { %v3407_v8 = vmul.f32 %v7180_v39, %v3385_v35 }
 0xd4a   : > { %v3438_v29 = vpack.c.bf16 %v3427_v16, %v3426_v15  ;;  %v3406_v45 = vmul.f32 %v7180_v39, %v3384_v46 }
 0xd4b   : > { %v3429_v14 = vadd.f32 %v7188_v10, %v3407_v8  ;;  %v3452_v49 = vld [vmem:[#allocation2 + $0x10] sm:$0xff] }
 0xd4c   : > { %3446 = vst.msk [vmem:[#allocation2 + $0x20] sm:$0xff] %vm556_vm0, %v3438_v29  ;;  %v3428_v23 = vadd.f32 %v7188_v10, %v3406_v45  ;;  %4642 = vmatprep.mubr.msk.bf16.mxu0 %vm556_vm0, %v3452_v49 }
 0xd4e   : > { %v3439_v25 = vpack.c.bf16 %v3429_v14, %v3428_v23 }
 0xd4f   : > { %v3453_v24 = vld [vmem:[#allocation2 + $0x18] sm:$0xff] }
 0xd50   : > { %3447 = vst.msk [vmem:[#allocation2 + $0x28] sm:$0xff] %vm556_vm0, %v3439_v25  ;;  %4643 = vmatmul.mubr.msk.bf16.gmra.mrb[88].mxu0 %vm556_vm0, %v3453_v24 }
 0xd53   : > { %v3454_v6 = vld [vmem:[#allocation2 + $0x20] sm:$0xff] }
 0xd54   : > { %4646 = vmatprep.mubr.msk.bf16.mxu0 %vm556_vm0, %v3454_v6 }
 0xd57   : > { %v3455_v44 = vld [vmem:[#allocation2 + $0x28] sm:$0xff] }
 0xd58   : > { %4647 = vmatmul.mubr.msk.bf16.gmra.mrb[92].mxu0 %vm556_vm0, %v3455_v44 }
 0xd5f   : > { %v3316_v17 = vpop.xlane.xlu0 %3315 }
 0xd60   : > { %v3338_v59 = vmul.f32 0.03125, %v3316_v17 }
 0xd61   : > { %v3319_v33 = vpop.xlane.xlu1 %3318 }
 0xd62   : > { %v3354_v42 = vadd.f32 1e-12, %v3338_v59  ;;  %v3339_v54 = vmul.f32 0.03125, %v3319_v33 }
 0xd63   : > { %v3322_v1 = vpop.xlane.xlu0 %3321 }
 0xd64   : > { %5098 = vrsqrt.f32 %v3354_v42  ;;  %v3355_v52 = vadd.f32 1e-12, %v3339_v54  ;;  %v3340_v27 = vmul.f32 0.03125, %v3322_v1 }
 0xd65   : > { %v3325_v19 = vpop.xlane.xlu1 %3324 }
 0xd66   : > { %5100 = vrsqrt.f32 %v3355_v52  ;;  %v3356_v7 = vadd.f32 1e-12, %v3340_v27  ;;  %v3341_v38 = vmul.f32 0.03125, %v3325_v19 }
 0xd68   : > { %5102 = vrsqrt.f32 %v3356_v7  ;;  %v3357_v60 = vadd.f32 1e-12, %v3341_v38 }
 0xd6a   : > { %5104 = vrsqrt.f32 %v3357_v60 }
 0xd6e   : > { %v5099_v56 = vpop.eup %5098 }
 0xd6f   : > { %v3386_v37 = vmul.f32 %v5099_v56, %v7154_v9 }
 0xd70   : > { %v5101_v41 = vpop.eup %5100 }
 0xd71   : > { %v3408_v32 = vmul.f32 %v7180_v39, %v3386_v37  ;;  %v3387_v51 = vmul.f32 %v5101_v41, %v7157_v48 }
 0xd72   : > { %v5103_v28 = vpop.eup %5102 }
 0xd73   : > { %v3409_v22 = vmul.f32 %v7180_v39, %v3387_v51  ;;  %v3388_v21 = vmul.f32 %v5103_v28, %v7162_v62  ;;  %v3430_v5 = vadd.f32 %v7188_v10, %v3408_v32 }
 0xd74   : > { %v5105_v30 = vpop.eup %5104 }
 0xd75   : > { %v3431_v18 = vadd.f32 %v7188_v10, %v3409_v22  ;;  %v3410_v61 = vmul.f32 %v7180_v39, %v3388_v21  ;;  %v3389_v40 = vmul.f32 %v5105_v30, %v7168_v11  ;;  %v4778_v11 = vld [vmem:[%s7413_s12] sm:$0xff]  }
 0xd76   : > { %4654 = vmatprep.subr.bf16.mxu1 %v4778_v11 }
 0xd77   : > { %v3440_v9 = vpack.c.bf16 %v3431_v18, %v3430_v5  ;;  %v3411_v57 = vmul.f32 %v7180_v39, %v3389_v40  ;;  %v3432_v48 = vadd.f32 %v7188_v10, %v3410_v61  ;;  %4655 = vmatpush3.bf16.msra.mxu1 %v4778_v11  ;;  %v4779_v39 = vld [vmem:[%s7413_s12 + $0x8] sm:$0xff]  }
 0xd78   : > { %4656 = vmatprep.subr.bf16.mxu1 %v4779_v39 }
 0xd79   : > { %3448 = vst.msk [vmem:[#allocation2 + $0x30] sm:$0xff] %vm556_vm0, %v3440_v9  ;;  %v3433_v12 = vadd.f32 %v7188_v10, %v3411_v57  ;;  %v4780_v10 = vld [vmem:[%s7413_s12 + $0x10] sm:$0xff]  }
 0xd7b   : > { %v3441_v0 = vpack.c.bf16 %v3433_v12, %v3432_v48  ;;  %4657 = vmatpush3.bf16.msra.mxu1 %v4779_v39 }
 0xd7c   : > { %4658 = vmatprep.subr.bf16.mxu1 %v4780_v10 }
 0xd7d   : > { %3449 = vst.msk [vmem:[#allocation2 + $0x38] sm:$0xff] %vm556_vm0, %v3441_v0 }
 0xd7f   : > { %4659 = vmatpush3.bf16.msra.mxu1 %v4780_v10 }
 0xd80   : > { %v3456_v62 = vld [vmem:[#allocation2 + $0x30] sm:$0xff]  ;;  %4660 = vmatprep.subr.bf16.mxu1 %v4781_v20 }
 0xd81   : > { %4650 = vmatprep.mubr.msk.bf16.mxu0 %vm556_vm0, %v3456_v62 }
 0xd83   : > { %4661 = vmatpush3.bf16.msra.mxu1 %v4781_v20 }
 0xd84   : > { %v3457_v4 = vld [vmem:[#allocation2 + $0x38] sm:$0xff]  ;;  %4662 = vmatprep.subr.bf16.mxu1 %v4782_v50 }
 0xd85   : > { %4651 = vmatmul.mubr.msk.bf16.gmra.mrb[96].mxu0 %vm556_vm0, %v3457_v4 }
 0xd87   : > { %4663 = vmatpush3.bf16.msra.mxu1 %v4782_v50 }
 0xd88   : > { %4664 = vmatprep.subr.bf16.mxu1 %v4783_v2 }
 0xd8b   : > { %4665 = vmatpush3.bf16.msra.mxu1 %v4783_v2 }
 0xd8c   : > { %4666 = vmatprep.subr.bf16.mxu1 %v4784_v3 }
 0xd8f   : > { %4667 = vmatpush3.bf16.msra.mxu1 %v4784_v3 }
 0xd90   : > { %4668 = vmatprep.subr.bf16.mxu1 %v4785_v26 }
 0xd93   : > { %4669 = vmatpush3.bf16.msra.mxu1 %v4785_v26 }
 0xe1b   : > { %v4640_v53 = vpop.f32.mrb[84].mxu0 }
 0xe1c   : > { %v7281_v31 = vadd.f32 %v4640_v53, %v7278_v58  ;;  %v3540_v55 = vpop.f32.mrb[85].mxu0 }
 0xe1d   : > { %v7284_v13 = vadd.f32 %v7278_v58, %v3540_v55  ;;  %v4641_v63 = vpop.f32.mrb[86].mxu0 }
 0xe1e   : > { %v4138_v47 = vmul.f32 -1.702, %v7281_v31  ;;  %v7288_v34 = vadd.f32 %v4641_v63, %v7278_v58  ;;  %v3543_v43 = vpop.f32.mrb[87].mxu0 }
 0xe1f   : > { %v4136_v16 = vmul.f32 -1.702, %v7284_v13  ;;  %v7292_v35 = vadd.f32 %v7278_v58, %v3543_v43 }
 0xe20   : > { %v3639_v36 = vmul.f32 1.442695, %v4138_v47  ;;  %v4139_v15 = vmul.f32 -1.702, %v7288_v34 }
 0xe21   : > { %v3635_v46 = vmul.f32 1.442695, %v4136_v16  ;;  %v4137_v8 = vmul.f32 -1.702, %v7292_v35 }
 0xe22   : > { %5106 = vpow2.f32 %v3639_v36  ;;  %v3641_v29 = vmul.f32 1.442695, %v4139_v15 }
 0xe23   : > { %5108 = vpow2.f32 %v3635_v46  ;;  %v3637_v45 = vmul.f32 1.442695, %v4137_v8  ;;  %v4644_v14 = vpop.f32.mrb[88].mxu0 }
 0xe24   : > { %5110 = vpow2.f32 %v3641_v29  ;;  %v7297_v49 = vadd.f32 %v4644_v14, %v7278_v58  ;;  %v3556_v23 = vpop.f32.mrb[89].mxu0 }
 0xe25   : > { %5112 = vpow2.f32 %v3637_v45  ;;  %v7300_v25 = vadd.f32 %v7278_v58, %v3556_v23  ;;  %v4645_v24 = vpop.f32.mrb[90].mxu0 }
 0xe26   : > { %v4142_v6 = vmul.f32 -1.702, %v7297_v49  ;;  %v7304_v44 = vadd.f32 %v4645_v24, %v7278_v58  ;;  %v3559_v17 = vpop.f32.mrb[91].mxu0 }
 0xe27   : > { %v4140_v59 = vmul.f32 -1.702, %v7300_v25  ;;  %v7308_v33 = vadd.f32 %v7278_v58, %v3559_v17 }
 0xe28   : > { %v3647_v42 = vmul.f32 1.442695, %v4142_v6  ;;  %v4143_v54 = vmul.f32 -1.702, %v7304_v44 }
 0xe29   : > { %v3643_v1 = vmul.f32 1.442695, %v4140_v59  ;;  %v4141_v52 = vmul.f32 -1.702, %v7308_v33 }
 0xe2a   : > { %5114 = vpow2.f32 %v3647_v42  ;;  %v3649_v27 = vmul.f32 1.442695, %v4143_v54 }
 0xe2b   : > { %5116 = vpow2.f32 %v3643_v1  ;;  %v3645_v19 = vmul.f32 1.442695, %v4141_v52  ;;  %v4648_v7 = vpop.f32.mrb[92].mxu0 }
 0xe2c   : > { %v5107_v38 = vpop.eup %5106  ;;  %5118 = vpow2.f32 %v3649_v27  ;;  %v7313_v60 = vadd.f32 %v4648_v7, %v7278_v58  ;;  %v3572_v56 = vpop.f32.mrb[93].mxu0 }
 0xe2d   : > { %v5109_v37 = vpop.eup %5108  ;;  %v3669_v41 = vadd.f32 1.0, %v5107_v38  ;;  %5120 = vpow2.f32 %v3645_v19  ;;  %v7316_v32 = vadd.f32 %v7278_v58, %v3572_v56  ;;  %v4649_v51 = vpop.f32.mrb[94].mxu0 }
 0xe2e   : > { %v5111_v28 = vpop.eup %5110  ;;  %v3667_v22 = vadd.f32 1.0, %v5109_v37  ;;  %v4146_v21 = vmul.f32 -1.702, %v7313_v60  ;;  %v7320_v30 = vadd.f32 %v4649_v51, %v7278_v58  ;;  %v3575_v5 = vpop.f32.mrb[95].mxu0 }
 0xe2f   : > { %v5113_v18 = vpop.eup %5112  ;;  %5122 = vrcp.f32 %v3669_v41  ;;  %v3670_v61 = vadd.f32 1.0, %v5111_v28  ;;  %v4144_v40 = vmul.f32 -1.702, %v7316_v32  ;;  %v7324_v9 = vadd.f32 %v7278_v58, %v3575_v5 }
 0xe30   : > { %5124 = vrcp.f32 %v3667_v22  ;;  %v3668_v57 = vadd.f32 1.0, %v5113_v18  ;;  %v3655_v48 = vmul.f32 1.442695, %v4146_v21  ;;  %v4147_v12 = vmul.f32 -1.702, %v7320_v30 }
 0xe31   : > { %5126 = vrcp.f32 %v3670_v61  ;;  %v3651_v0 = vmul.f32 1.442695, %v4144_v40  ;;  %v4145_v62 = vmul.f32 -1.702, %v7324_v9 }
 0xe32   : > { %5128 = vrcp.f32 %v3668_v57  ;;  %v3657_v4 = vmul.f32 1.442695, %v4147_v12 }
 0xe33   : > { %5130 = vpow2.f32 %v3655_v48  ;;  %v3653_v11 = vmul.f32 1.442695, %v4145_v62 }
 0xe34   : > { %v5115_v39 = vpop.eup %5114  ;;  %5132 = vpow2.f32 %v3651_v0 }
 0xe35   : > { %v5117_v10 = vpop.eup %5116  ;;  %v3673_v20 = vadd.f32 1.0, %v5115_v39  ;;  %5134 = vpow2.f32 %v3657_v4 }
 0xe36   : > { %v5119_v50 = vpop.eup %5118  ;;  %v3671_v2 = vadd.f32 1.0, %v5117_v10  ;;  %5136 = vpow2.f32 %v3653_v11 }
 0xe37   : > { %v5121_v3 = vpop.eup %5120  ;;  %5138 = vrcp.f32 %v3673_v20  ;;  %v3674_v26 = vadd.f32 1.0, %v5119_v50 }
 0xe38   : > { %5140 = vrcp.f32 %v3671_v2  ;;  %v3672_v53 = vadd.f32 1.0, %v5121_v3 }
 0xe39   : > { %v5123_v55 = vpop.eup %5122  ;;  %5142 = vrcp.f32 %v3674_v26 }
 0xe3a   : > { %v5125_v63 = vpop.eup %5124  ;;  %5144 = vrcp.f32 %v3672_v53  ;;  %v3717_v16 = vmul.f32 %v5123_v55, %v7281_v31 }
 0xe3b   : > { %v5127_v47 = vpop.eup %5126  ;;  %v3715_v46 = vmul.f32 %v5125_v63, %v7284_v13 }
 0xe3c   : > { %v5129_v43 = vpop.eup %5128  ;;  %v3718_v36 = vmul.f32 %v5127_v47, %v7288_v34 }
 0xe3d   : > { %v5131_v15 = vpop.eup %5130  ;;  %v3716_v8 = vmul.f32 %v5129_v43, %v7292_v35 }
 0xe3e   : > { %v5133_v29 = vpop.eup %5132  ;;  %v3732_v45 = vpack.c.bf16 %v3718_v36, %v3717_v16  ;;  %v3677_v14 = vadd.f32 1.0, %v5131_v15 }
 0xe3f   : > { %v5135_v23 = vpop.eup %5134  ;;  %v3675_v24 = vadd.f32 1.0, %v5133_v29  ;;  %v3731_v6 = vpack.c.bf16 %v3716_v8, %v3715_v46  ;;  %v3741_v8 = vld [vmem:[%s6919_s25 + $0x10] sm:$0xff] }
 0xe40   : > { %v5137_v17 = vpop.eup %5136  ;;  %5146 = vrcp.f32 %v3677_v14  ;;  %v3678_v59 = vadd.f32 1.0, %v5135_v23  ;;  %v3739_v14 = vld [vmem:[%s6919_s25] sm:$0xff] }
 0xe41   : > { %v5139_v42 = vpop.eup %5138  ;;  %5148 = vrcp.f32 %v3675_v24  ;;  %v3676_v54 = vadd.f32 1.0, %v5137_v17  ;;  %4670 = vmatprep.mubr.bf16.mxu1 %v3731_v6  ;;  %v3742_v6 = vld [vmem:[%s6919_s25 + $0x18] sm:$0xff] }
 0xe42   : > { %v5141_v31 = vpop.eup %5140  ;;  %5150 = vrcp.f32 %v3678_v59  ;;  %4671 = vmatmul.mubr.bf16.vlgmr.msra.gmra.mrb[76].mxu1 %v3732_v45  ;;  %v3721_v35 = vmul.f32 %v5139_v42, %v7297_v49  ;;  %v3740_v42 = vld [vmem:[%s6919_s25 + $0x8] sm:$0xff] }
 0xe43   : > { %v5143_v34 = vpop.eup %5142  ;;  %5152 = vrcp.f32 %v3676_v54  ;;  %v3719_v52 = vmul.f32 %v5141_v31, %v7300_v25 }
 0xe44   : > { %v5145_v13 = vpop.eup %5144  ;;  %v3722_v1 = vmul.f32 %v5143_v34, %v7304_v44  ;;  %v3745_v34 = vld [vmem:[%s6919_s25 + $0x30] sm:$0xff] }
 0xe45   : > { %v3720_v27 = vmul.f32 %v5145_v13, %v7308_v33 }
 0xe46   : > { %v3734_v19 = vpack.c.bf16 %v3722_v1, %v3721_v35  ;;  %v3743_v1 = vld [vmem:[%s6919_s25 + $0x20] sm:$0xff] }
 0xe47   : > { %v3733_v7 = vpack.c.bf16 %v3720_v27, %v3719_v52 }
 0xe49   : > { %4674 = vmatprep.mubr.bf16.mxu1 %v3733_v7 }
 0xe4a   : > { %v5147_v38 = vpop.eup %5146  ;;  %4675 = vmatmul.mubr.bf16.gmra.mrb[80].mxu1 %v3734_v19  ;;  %v3746_v19 = vld [vmem:[%s6919_s25 + $0x38] sm:$0xff] }
 0xe4b   : > { %v5149_v56 = vpop.eup %5148  ;;  %v3725_v51 = vmul.f32 %v5147_v38, %v7313_v60 }
 0xe4c   : > { %v5151_v37 = vpop.eup %5150  ;;  %v3723_v49 = vmul.f32 %v5149_v56, %v7316_v32  ;;  %v3744_v56 = vld [vmem:[%s6919_s25 + $0x28] sm:$0xff] }
 0xe4d   : > { %v5153_v41 = vpop.eup %5152  ;;  %v3726_v28 = vmul.f32 %v5151_v37, %v7320_v30 }
 0xe4e   : > { %v3724_v44 = vmul.f32 %v5153_v41, %v7324_v9 }
 0xe4f   : > { %v3736_v22 = vpack.c.bf16 %v3726_v28, %v3725_v51  ;;  %v3749_v51 = vld [vmem:[%s6919_s25 + $0x50] sm:$0xff] }
 0xe50   : > { %v3735_v25 = vpack.c.bf16 %v3724_v44, %v3723_v49  ;;  %v3747_v44 = vld [vmem:[%s6919_s25 + $0x40] sm:$0xff] }
 0xe52   : > { %4678 = vmatprep.mubr.bf16.mxu1 %v3735_v25 }
 0xe53   : > { %4679 = vmatmul.mubr.bf16.gmra.mrb[84].mxu1 %v3736_v22 }
 0xe58   : > { %v4652_v33 = vpop.f32.mrb[96].mxu0 }
 0xe59   : > { %v3597_v21 = vadd.f32 %v4652_v33, %v7278_v58  ;;  %v3588_v5 = vpop.f32.mrb[97].mxu0  ;;  %v3750_v33 = vld [vmem:[%s6919_s25 + $0x58] sm:$0xff] }
 0xe5a   : > { %v3589_v18 = vadd.f32 %v7278_v58, %v3588_v5  ;;  %v4653_v61 = vpop.f32.mrb[98].mxu0 }
 0xe5b   : > { %v4150_v40 = vmul.f32 -1.702, %v3597_v21  ;;  %v3600_v60 = vadd.f32 %v4653_v61, %v7278_v58  ;;  %v3591_v57 = vpop.f32.mrb[99].mxu0 }
 0xe5c   : > { %v4148_v30 = vmul.f32 -1.702, %v3589_v18  ;;  %v3592_v32 = vadd.f32 %v7278_v58, %v3591_v57 }
 0xe5d   : > { %v3663_v48 = vmul.f32 1.442695, %v4150_v40  ;;  %v4151_v9 = vmul.f32 -1.702, %v3600_v60 }
 0xe5e   : > { %v3659_v12 = vmul.f32 1.442695, %v4148_v30  ;;  %v4149_v0 = vmul.f32 -1.702, %v3592_v32 }
 0xe5f   : > { %5154 = vpow2.f32 %v3663_v48  ;;  %v3665_v62 = vmul.f32 1.442695, %v4151_v9 }
 0xe60   : > { %5156 = vpow2.f32 %v3659_v12  ;;  %v3661_v4 = vmul.f32 1.442695, %v4149_v0  ;;  %v3754_v12 = vld [vmem:[%s6919_s25 + $0x78] sm:$0xff] }
 0xe61   : > { %5158 = vpow2.f32 %v3665_v62 }
 0xe62   : > { %5160 = vpow2.f32 %v3661_v4  ;;  %v3752_v4 = vld [vmem:[%s6919_s25 + $0x68] sm:$0xff] }
 0xe69   : > { %v5155_v11 = vpop.eup %5154 }
 0xe6a   : > { %v5157_v39 = vpop.eup %5156  ;;  %v3681_v10 = vadd.f32 1.0, %v5155_v11 }
 0xe6b   : > { %v5159_v20 = vpop.eup %5158  ;;  %v3679_v50 = vadd.f32 1.0, %v5157_v39 }
 0xe6c   : > { %v5161_v2 = vpop.eup %5160  ;;  %5162 = vrcp.f32 %v3681_v10  ;;  %v3682_v3 = vadd.f32 1.0, %v5159_v20 }
 0xe6d   : > { %5164 = vrcp.f32 %v3679_v50  ;;  %v3680_v58 = vadd.f32 1.0, %v5161_v2 }
 0xe6e   : > { %5166 = vrcp.f32 %v3682_v3 }
 0xe6f   : > { %5168 = vrcp.f32 %v3680_v58 }
 0xe76   : > { %v5163_v26 = vpop.eup %5162 }
 0xe77   : > { %v5165_v53 = vpop.eup %5164  ;;  %v3729_v47 = vmul.f32 %v5163_v26, %v3597_v21 }
 0xe78   : > { %v5167_v55 = vpop.eup %5166  ;;  %v3727_v16 = vmul.f32 %v5165_v53, %v3589_v18  ;;  %v3748_v18 = vld [vmem:[%s6919_s25 + $0x48] sm:$0xff] }
 0xe79   : > { %v5169_v63 = vpop.eup %5168  ;;  %v3730_v43 = vmul.f32 %v5167_v55, %v3600_v60  ;;  %v3753_v60 = vld [vmem:[%s6919_s25 + $0x70] sm:$0xff] }
 0xe7a   : > { %v3728_v36 = vmul.f32 %v5169_v63, %v3592_v32  ;;  %v3751_v32 = vld [vmem:[%s6919_s25 + $0x60] sm:$0xff] }
 0xe7b   : > { %v3738_v15 = vpack.c.bf16 %v3730_v43, %v3729_v47 }
 0xe7c   : > { %v3737_v46 = vpack.c.bf16 %v3728_v36, %v3727_v16 }
 0xe7e   : > { %4682 = vmatprep.mubr.bf16.mxu1 %v3737_v46 }
 0xe7f   : > { %4683 = vmatmul.mubr.bf16.gmra.mrb[88].mxu1 %v3738_v15 }
 0xf15   : > { %v4672_v29 = vpop.f32.mrb[76].mxu1 }
 0xf16   : > { %v3918_v45 = vadd.f32 %v4672_v29, %v3741_v8  ;;  %v3853_v23 = vpop.f32.mrb[77].mxu1 }
 0xf17   : > { %v3916_v24 = vadd.f32 %v3853_v23, %v3739_v14  ;;  %v4673_v17 = vpop.f32.mrb[78].mxu1 }
 0xf18   : > { %3934 = vst.msk [vmem:[%s6919_s25 + $0x10] sm:$0xff] %vm556_vm0, %v3918_v45  ;;  %v3919_v59 = vadd.f32 %v4673_v17, %v3742_v6  ;;  %v3856_v54 = vpop.f32.mrb[79].mxu1 }
 0xf19   : > { %3932 = vst.msk [vmem:[%s6919_s25] sm:$0xff] %vm556_vm0, %v3916_v24  ;;  %v3917_v31 = vadd.f32 %v3856_v54, %v3740_v42 }
 0xf1a   : > { %3935 = vst.msk [vmem:[%s6919_s25 + $0x18] sm:$0xff] %vm556_vm0, %v3919_v59 }
 0xf1b   : > { %3933 = vst.msk [vmem:[%s6919_s25 + $0x8] sm:$0xff] %vm556_vm0, %v3917_v31 }
 0xf1d   : > { %v4676_v13 = vpop.f32.mrb[80].mxu1 }
 0xf1e   : > { %v3922_v35 = vadd.f32 %v4676_v13, %v3745_v34  ;;  %v3869_v52 = vpop.f32.mrb[81].mxu1 }
 0xf1f   : > { %v3920_v27 = vadd.f32 %v3869_v52, %v3743_v1  ;;  %v4677_v7 = vpop.f32.mrb[82].mxu1 }
 0xf20   : > { %3938 = vst.msk [vmem:[%s6919_s25 + $0x30] sm:$0xff] %vm556_vm0, %v3922_v35  ;;  %v3923_v38 = vadd.f32 %v4677_v7, %v3746_v19  ;;  %v3872_v37 = vpop.f32.mrb[83].mxu1 }
 0xf21   : > { %3936 = vst.msk [vmem:[%s6919_s25 + $0x20] sm:$0xff] %vm556_vm0, %v3920_v27  ;;  %v3921_v41 = vadd.f32 %v3872_v37, %v3744_v56 }
 0xf22   : > { %3939 = vst.msk [vmem:[%s6919_s25 + $0x38] sm:$0xff] %vm556_vm0, %v3923_v38 }
 0xf23   : > { %3937 = vst.msk [vmem:[%s6919_s25 + $0x28] sm:$0xff] %vm556_vm0, %v3921_v41 }
 0xf26   : > { %v4680_v28 = vpop.f32.mrb[84].mxu1 }
 0xf27   : > { %v3926_v49 = vadd.f32 %v4680_v28, %v3749_v51  ;;  %v3885_v22 = vpop.f32.mrb[85].mxu1 }
 0xf28   : > { %v3924_v25 = vadd.f32 %v3885_v22, %v3747_v44  ;;  %v4681_v21 = vpop.f32.mrb[86].mxu1 }
 0xf29   : > { %3942 = vst.msk [vmem:[%s6919_s25 + $0x50] sm:$0xff] %vm556_vm0, %v3926_v49  ;;  %v3927_v5 = vadd.f32 %v4681_v21, %v3750_v33  ;;  %v3888_v61 = vpop.f32.mrb[87].mxu1 }
 0xf2a   : > { %3940 = vst.msk [vmem:[%s6919_s25 + $0x40] sm:$0xff] %vm556_vm0, %v3924_v25  ;;  %v3925_v40 = vadd.f32 %v3888_v61, %v3748_v18 }
 0xf2b   : > { %3943 = vst.msk [vmem:[%s6919_s25 + $0x58] sm:$0xff] %vm556_vm0, %v3927_v5 }
 0xf2c   : > { %3941 = vst.msk [vmem:[%s6919_s25 + $0x48] sm:$0xff] %vm556_vm0, %v3925_v40 }
 0xf52   : > { %v4684_v57 = vpop.f32.mrb[88].mxu1 }
 0xf53   : > { %v3930_v30 = vadd.f32 %v4684_v57, %v3753_v60  ;;  %v3901_v48 = vpop.f32.mrb[89].mxu1 }
 0xf54   : > { %v3928_v9 = vadd.f32 %v3901_v48, %v3751_v32  ;;  %v4685_v0 = vpop.f32.mrb[90].mxu1 }
 0xf55   : > { %3946 = vst.msk [vmem:[%s6919_s25 + $0x70] sm:$0xff] %vm556_vm0, %v3930_v30  ;;  %v3931_v62 = vadd.f32 %v4685_v0, %v3754_v12  ;;  %v3904_v11 = vpop.f32.mrb[91].mxu1 }
 0xf56   : > { %3944 = vst.msk [vmem:[%s6919_s25 + $0x60] sm:$0xff] %vm556_vm0, %v3928_v9  ;;  %v3929_v39 = vadd.f32 %v3904_v11, %v3752_v4 }
 0xf57   : > { %3947 = vst.msk [vmem:[%s6919_s25 + $0x78] sm:$0xff] %vm556_vm0, %v3931_v62 }
 0xf58   : > { %3945 = vst.msk [vmem:[%s6919_s25 + $0x68] sm:$0xff] %vm556_vm0, %v3929_v39 }
 0xf59 PF: > { %s24_s15 = sadd.s32 1, %s5208_s15   ;;  %s7565_s29 = smov %s5204_s30 }
 0xf5a   : > { %p21_p5 = scmp.ge.s32.totalorder %s24_s15, 4   ;;  %s7566_s30 = smov %s7568_s16 }
 0xf5c   :  { %23 = sbr.rel (!%p21_p5) target bundleno = 2 (0x2), region = 119 }

</bundles_post_ra>
